<compile_context>
chip_gen: v5e
topology: v5e:2x2
jax: 0.10.0
libtpu: 0.0.40
codegen_flags: <defaults>
</compile_context>

<pallas_src>
import functools

import jax
import jax.numpy as jnp
from jax.experimental import pallas as pl
from jax.experimental.pallas import tpu as pltpu


def _round_up(x, m):
    return (x + m - 1) // m * m


def _choose_tiling(m_rows, max_tile_rows):
    """Pick (rows-per-tile, num_tiles). Rows live on the sublane axis."""
    m8 = _round_up(m_rows, 8)                  # sublane granularity
    if m8 <= max_tile_rows:
        return m8, 1                           # one tile: no pipeline overhead
    num = pl.cdiv(m8, max_tile_rows)
    if num % 2:                                # even tile count so v7x's two
        num += 1                               # TensorCores both get work
    mt = _round_up(pl.cdiv(m8, num), 128)
    return mt, num


# ----------------------------- Pallas kernel --------------------------------
def _solver_kernel(x_ref, t_ref, w1x_ref, w1tb1_ref, w2_ref, b2_ref, o_ref,
                   *, mxu_bf16):
    x = x_ref[...]                        # (mt, D) f32, natural layout
    t = t_ref[...]                        # (mt, 1) f32
    w1t = w1tb1_ref[0:1, :]               # (1, H)   packed scale/bias operand
    b1 = w1tb1_ref[1:2, :]                # (1, H)
    w1x = w1x_ref[...]                    # (D, H)   resident
    w2 = w2_ref[...]                      # (H, D)   resident

    if mxu_bf16:                          # v6e/v7x: bf16 MXU operands,
        x_mm = x.astype(jnp.bfloat16)     # f32 accumulation + f32 residual
        w1x = w1x.astype(jnp.bfloat16)
        w2 = w2.astype(jnp.bfloat16)
    else:
        x_mm = x

    xw = jnp.dot(x_mm, w1x, preferred_element_type=jnp.float32)     # MXU
    # t-term kept as a broadcast FMA (VPU has plenty of slack; folding t into
    # the matmul would need an in-kernel lane concat for no measurable gain).
    h1 = jnp.tanh(xw + t * w1t + b1)                                 # f32 (v5e-safe)
    h1_mm = h1.astype(jnp.bfloat16) if mxu_bf16 else h1
    h2 = jnp.dot(h1_mm, w2, preferred_element_type=jnp.float32) + b2_ref[...]
    o_ref[...] = (x + jnp.tanh(t) * h2).astype(o_ref.dtype)


def _solver_pallas(x_flat, t_col, params, *, max_tile_rows=4096, mxu_bf16=False):
    """x_flat: (M, D), t_col: (M, 1).  Returns y_flat: (M, D)."""
    M, D = x_flat.shape
    H = params["w1x"].shape[1]
    mt, num_tiles = _choose_tiling(M, max_tile_rows)
    m_pad = mt * num_tiles

    if m_pad != M:
        # Only for tile-misaligned M; tile-aligned inputs go straight through.
        x_in = jnp.pad(x_flat, ((0, m_pad - M), (0, 0)))
        t_in = jnp.pad(t_col, ((0, m_pad - M), (0, 0)))
    else:
        x_in, t_in = x_flat, t_col

    # Pack the two (1, H) operands into one resident (2, H) array.
    w1tb1 = jnp.concatenate([params["w1t"], params["b1"]], axis=0)

    resident = lambda i: (0, 0)
    kernel = functools.partial(_solver_kernel, mxu_bf16=mxu_bf16)
    out = pl.pallas_call(
        kernel,
        out_shape=jax.ShapeDtypeStruct((m_pad, D), x_flat.dtype),
        grid_spec=pltpu.PrefetchScalarGridSpec(
            num_scalar_prefetch=0,
            grid=(num_tiles,),
            in_specs=[
                pl.BlockSpec((mt, D), lambda i: (i, 0)),    # x row tile (streamed)
                pl.BlockSpec((mt, 1), lambda i: (i, 0)),    # t row tile (streamed)
                pl.BlockSpec((D, H), resident),             # W1x      (resident)
                pl.BlockSpec((2, H), resident),             # [w1t;b1] (resident)
                pl.BlockSpec((H, D), resident),             # W2       (resident)
                pl.BlockSpec((1, D), resident),             # b2       (resident)
            ],
            out_specs=pl.BlockSpec((mt, D), lambda i: (i, 0)),
        ),
        # Weights are a few KiB here, so no vmem_limit_bytes / Buffered(1) is
        # needed; revisit both if D/H or mt scale up (v7x has 64 MiB VMEM).
        compiler_params=pltpu.CompilerParams(
            dimension_semantics=(
                ("arbitrary",) if num_tiles == 1 else ("parallel",))),
    )(x_in, t_in, params["w1x"], w1tb1, params["w2"], params["b2"])

    return out if m_pad == M else out[:M]


# -------------------------- SolverWrapper.forward ----------------------------
def solver_wrapper_forward(params, x, t, h=None, *, min_rows_for_pallas=1024,
                           max_tile_rows=4096, mxu_bf16=False):
    """Exact port of SolverWrapper.forward semantics (t-shaping + solver)."""
    assert h is None, "latent-ODE path passes h=None; non-None h is unsupported"
    assert x.ndim - t.ndim == 1
    t = t[..., None]                                   # t.unsqueeze(-1)
    if t.shape[-3] != x.shape[-3]:
        t = jnp.repeat(t, x.shape[-3], axis=-3)        # repeat_interleave(dim=-3)
    if x.ndim == 4:
        t = jnp.repeat(t, x.shape[0], axis=0)          # repeat_interleave(dim=0)
    t = jnp.broadcast_to(t, x.shape[:-1] + (1,))

    D = x.shape[-1]
    M = 1
    for s in x.shape[:-1]:
        M *= s
    x_flat = x.reshape(M, D)
    t_col = t.reshape(M, 1)

    if M < min_rows_for_pallas:
        # Dispatch + kernel launch exceeds the work for tiny M; use plain XLA.
        y_flat = _solver_reference_flat(params, x_flat, t_col)
    else:
        y_flat = _solver_pallas(x_flat, t_col, params,
                                max_tile_rows=max_tile_rows, mxu_bf16=mxu_bf16)
    return y_flat.reshape(x.shape)


# Pure-JAX reference of the synthetic solver (also the small-M fallback).
def _solver_reference_flat(params, x_flat, t_col):
    h1 = jnp.tanh(x_flat @ params["w1x"] + t_col * params["w1t"] + params["b1"])
    h2 = h1 @ params["w2"] + params["b2"]
    return x_flat + jnp.tanh(t_col) * h2


# ------------------------------------ main -----------------------------------
if __name__ == "__main__":
    K, B, S, D, H = 2, 4, 256, 32, 64     # n_traj_samples, batch, seq, latent, hidden

    key = jax.random.PRNGKey(0)
    kx4, kt4, kx3, kt3, kxs, kts, k1, k2, k3, k4 = jax.random.split(key, 10)

    params = {
        "w1x": jax.random.normal(k1, (D, H), jnp.float32) * 0.1,
        "w1t": jax.random.normal(k2, (1, H), jnp.float32) * 0.1,
        "b1":  jnp.zeros((1, H), jnp.float32),
        "w2":  jax.random.normal(k3, (H, D), jnp.float32) * 0.1,
        "b2":  jax.random.normal(k4, (1, D), jnp.float32) * 0.01,
    }

    # Pure-XLA reference path (Pallas gated off).
    ref_fwd = functools.partial(solver_wrapper_forward, params,
                                min_rows_for_pallas=1 << 62)

    # Case 1: 4-D x (K,B,S,D), t (1,1,S); M = 2048 rows.  Force two 1024-row
    # tiles to exercise the pipelined "parallel" path (both TCs on v7x).
    x4 = jax.random.normal(kx4, (K, B, S, D), jnp.float32)
    t4 = jax.random.uniform(kt4, (1, 1, S), jnp.float32)
    fwd_multi = jax.jit(functools.partial(
        solver_wrapper_forward, params, min_rows_for_pallas=0, max_tile_rows=1024))
    y4 = jax.block_until_ready(fwd_multi(x4, t4))
    assert y4.shape == x4.shape
    assert jnp.allclose(y4, ref_fwd(x4, t4), atol=1e-5, rtol=1e-5)

    # Case 1b: same inputs, default tiling (single 2048-row tile).
    fwd_single = jax.jit(functools.partial(
        solver_wrapper_forward, params, min_rows_for_pallas=0))
    y4b = jax.block_until_ready(fwd_single(x4, t4))
    assert jnp.allclose(y4b, ref_fwd(x4, t4), atol=1e-5, rtol=1e-5)

    # Case 2: 3-D x (3,7,D), t (1,7); M = 21 (not a multiple of 8) — pad path.
    x3 = jax.random.normal(kx3, (3, 7, D), jnp.float32)
    t3 = jax.random.uniform(kt3, (1, 7), jnp.float32)
    y3 = jax.block_until_ready(fwd_single(x3, t3))
    assert y3.shape == x3.shape
    assert jnp.allclose(y3, ref_fwd(x3, t3), atol=1e-5, rtol=1e-5)

    # Case 3: bf16 MXU operands (v6e/v7x fast path), f32 accumulation/residual.
    fwd_bf16 = jax.jit(functools.partial(
        solver_wrapper_forward, params, min_rows_for_pallas=0, mxu_bf16=True))
    y4c = jax.block_until_ready(fwd_bf16(x4, t4))
    assert jnp.allclose(y4c, ref_fwd(x4, t4), atol=2e-2, rtol=2e-2)

    # Case 4: tiny M with the default gate — falls back to plain XLA.
    xs = jax.random.normal(kxs, (2, 4, 8, D), jnp.float32)
    ts = jax.random.uniform(kts, (1, 1, 8), jnp.float32)
    fwd_default = jax.jit(functools.partial(solver_wrapper_forward, params))
    ys = jax.block_until_ready(fwd_default(xs, ts))
    assert jnp.allclose(ys, ref_fwd(xs, ts), atol=1e-5, rtol=1e-5)

    print("KERNEL_OK")
</pallas_src>

<mosaic_0001>
module attributes {stable_mosaic.version = 11 : i64} {
  func.func @_solver_kernel(%arg0: i32, %arg1: memref<1024x32xf32, #tpu.memory_space<vmem>>, %arg2: memref<1024x1xf32, #tpu.memory_space<vmem>>, %arg3: memref<32x64xf32, #tpu.memory_space<vmem>>, %arg4: memref<2x64xf32, #tpu.memory_space<vmem>>, %arg5: memref<64x32xf32, #tpu.memory_space<vmem>>, %arg6: memref<1x32xf32, #tpu.memory_space<vmem>>, %arg7: memref<1024x32xf32, #tpu.memory_space<vmem>>) attributes {dimension_semantics = [#tpu.dimension_semantics<parallel>], iteration_bounds = array<i64: 2>, scalar_prefetch = 0 : i64, scratch_operands = 0 : i64, tpu.core_type = #tpu.core_type<tc>, window_params = [{transform_indices = @transform_0, window_bounds = array<i64: 1024, 32>}, {transform_indices = @transform_1, window_bounds = array<i64: 1024, 1>}, {pipeline_mode = #tpu.pipeline_mode<synchronous>, transform_indices = @transform_2, window_bounds = array<i64: 32, 64>}, {pipeline_mode = #tpu.pipeline_mode<synchronous>, transform_indices = @transform_3, window_bounds = array<i64: 2, 64>}, {pipeline_mode = #tpu.pipeline_mode<synchronous>, transform_indices = @transform_4, window_bounds = array<i64: 64, 32>}, {pipeline_mode = #tpu.pipeline_mode<synchronous>, transform_indices = @transform_5, window_bounds = array<i64: 1, 32>}, {transform_indices = @transform_6, window_bounds = array<i64: 1024, 32>}]} {
    %c0 = arith.constant 0 : index
    %c0_0 = arith.constant 0 : index
    %0 = vector.load %arg1[%c0, %c0_0] : memref<1024x32xf32, #tpu.memory_space<vmem>>, vector<1024x32xf32>
    %c0_1 = arith.constant 0 : index
    %c0_2 = arith.constant 0 : index
    %1 = vector.load %arg2[%c0_1, %c0_2] : memref<1024x1xf32, #tpu.memory_space<vmem>>, vector<1024x1xf32>
    %c0_3 = arith.constant 0 : index
    %c0_4 = arith.constant 0 : index
    %2 = vector.load %arg4[%c0_3, %c0_4] : memref<2x64xf32, #tpu.memory_space<vmem>>, vector<1x64xf32>
    %c1 = arith.constant 1 : index
    %c0_5 = arith.constant 0 : index
    %3 = vector.load %arg4[%c1, %c0_5] : memref<2x64xf32, #tpu.memory_space<vmem>>, vector<1x64xf32>
    %c0_6 = arith.constant 0 : index
    %c0_7 = arith.constant 0 : index
    %4 = vector.load %arg3[%c0_6, %c0_7] : memref<32x64xf32, #tpu.memory_space<vmem>>, vector<32x64xf32>
    %c0_8 = arith.constant 0 : index
    %c0_9 = arith.constant 0 : index
    %5 = vector.load %arg5[%c0_8, %c0_9] : memref<64x32xf32, #tpu.memory_space<vmem>>, vector<64x32xf32>
    %cst = arith.constant dense<0.000000e+00> : vector<1024x64xf32>
    %6 = tpu.matmul %0, %4, %cst {dimension_numbers = #tpu.dot_dimension_numbers<[1], [0], [0], [1], [0, 0, 1, 1], [], []>} : vector<1024x32xf32>, vector<32x64xf32>, vector<1024x64xf32> -> vector<1024x64xf32>
    %7 = vector.broadcast %1 : vector<1024x1xf32> to vector<1024x64xf32>
    %8 = vector.broadcast %2 : vector<1x64xf32> to vector<1024x64xf32>
    %9 = arith.mulf %7, %8 : vector<1024x64xf32>
    %10 = arith.addf %6, %9 : vector<1024x64xf32>
    %11 = vector.broadcast %3 : vector<1x64xf32> to vector<1024x64xf32>
    %12 = arith.addf %10, %11 : vector<1024x64xf32>
    %13 = math.tanh %12 : vector<1024x64xf32>
    %cst_10 = arith.constant dense<0.000000e+00> : vector<1024x32xf32>
    %14 = tpu.matmul %13, %5, %cst_10 {dimension_numbers = #tpu.dot_dimension_numbers<[1], [0], [0], [1], [0, 0, 1, 1], [], []>} : vector<1024x64xf32>, vector<64x32xf32>, vector<1024x32xf32> -> vector<1024x32xf32>
    %c0_11 = arith.constant 0 : index
    %c0_12 = arith.constant 0 : index
    %15 = vector.load %arg6[%c0_11, %c0_12] : memref<1x32xf32, #tpu.memory_space<vmem>>, vector<1x32xf32>
    %16 = vector.broadcast %15 : vector<1x32xf32> to vector<1024x32xf32>
    %17 = arith.addf %14, %16 : vector<1024x32xf32>
    %18 = math.tanh %1 : vector<1024x1xf32>
    %19 = vector.broadcast %18 : vector<1024x1xf32> to vector<1024x32xf32>
    %20 = arith.mulf %19, %17 : vector<1024x32xf32>
    %21 = arith.addf %0, %20 : vector<1024x32xf32>
    %c0_13 = arith.constant 0 : index
    %c0_14 = arith.constant 0 : index
    %22 = vector.load %arg7[%c0_13, %c0_14] : memref<1024x32xf32, #tpu.memory_space<vmem>>, vector<1024x32xf32>
    tpu.vector_store %arg7[%c0_13, %c0_14], %21 {strides = array<i32>} : memref<1024x32xf32, #tpu.memory_space<vmem>>, vector<1024x32xf32>,
    return
  }
  func.func @transform_0(%arg0: i32) -> (i32, i32) {
    %c0_i32 = arith.constant 0 : i32
    %c0_i32_0 = arith.constant 0 : i32
    return %arg0, %c0_i32 : i32, i32
  }
  func.func @transform_1(%arg0: i32) -> (i32, i32) {
    %c0_i32 = arith.constant 0 : i32
    %c0_i32_0 = arith.constant 0 : i32
    return %arg0, %c0_i32 : i32, i32
  }
  func.func @transform_2(%arg0: i32) -> (i32, i32) {
    %c0_i32 = arith.constant 0 : i32
    %c0_i32_0 = arith.constant 0 : i32
    %c0_i32_1 = arith.constant 0 : i32
    return %c0_i32, %c0_i32_0 : i32, i32
  }
  func.func @transform_3(%arg0: i32) -> (i32, i32) {
    %c0_i32 = arith.constant 0 : i32
    %c0_i32_0 = arith.constant 0 : i32
    %c0_i32_1 = arith.constant 0 : i32
    return %c0_i32, %c0_i32_0 : i32, i32
  }
  func.func @transform_4(%arg0: i32) -> (i32, i32) {
    %c0_i32 = arith.constant 0 : i32
    %c0_i32_0 = arith.constant 0 : i32
    %c0_i32_1 = arith.constant 0 : i32
    return %c0_i32, %c0_i32_0 : i32, i32
  }
  func.func @transform_5(%arg0: i32) -> (i32, i32) {
    %c0_i32 = arith.constant 0 : i32
    %c0_i32_0 = arith.constant 0 : i32
    %c0_i32_1 = arith.constant 0 : i32
    return %c0_i32, %c0_i32_0 : i32, i32
  }
  func.func @transform_6(%arg0: i32) -> (i32, i32) {
    %c0_i32 = arith.constant 0 : i32
    %c0_i32_0 = arith.constant 0 : i32
    return %arg0, %c0_i32 : i32, i32
  }
}

</mosaic_0001>

<bundles_post_ra>
// kernel: solver_wrapper_forward.1
= control target key start
LH: loop header
LB: loop body
LE: loop exit
PB: predicated region body
PF: predicated region fallthrough
CT: control target
= control target key end

     0   :  { %s5488_s21 = smov 0   ;;  %s7639_s0 = inlined_call_operand.vmem [shape: f32[2048,32], index: 0, kind: input, shape index: {}]   ;;  %s7640_s1 = inlined_call_operand.vmem [shape: f32[2048,1], index: 1, kind: input, shape index: {}]   ;;  %s7641_s2 = inlined_call_operand.vmem [shape: f32[32,64], index: 2, kind: input, shape index: {}]   ;;  %s7642_s3 = inlined_call_operand.vmem [shape: f32[2,64], index: 3, kind: input, shape index: {}]   ;;  %s7643_s4 = inlined_call_operand.vmem [shape: f32[64,32], index: 4, kind: input, shape index: {}]   ;;  %s7644_s5 = inlined_call_operand.vmem [shape: f32[1,32], index: 5, kind: input, shape index: {}]   ;;  %s7645_s6 = inlined_call_operand.vmem [shape: f32[2048,32], index: 6, kind: output, shape index: {}]  }
   0x1 LB: > { %s4369_s22 = sadd.s32 4294967295, %s5450_s21   ;;  %p4373_p0 = scmp.ge.s32.totalorder %s5450_s21, 1  ;;  %s5450_s21 = sphi %s5488_s21, %s16_s21  }
   0x2   : > { %p224_p1 = scmp.lt.s32.totalorder %s5450_s21, 3 }
   0x4   : > { %p225_p2 = pnand %p4373_p0, %p224_p1 }
   0x6   : > { %228 = sbr.rel (%p225_p2) target bundleno = 1312 (0x520), region = 44 }
   0xb   : > { %v538_v0 = vld [vmem:[%s7641_s2 + $0x18] sm:$0xff]  ;;  %v537_v1 = vld [vmem:[%s7641_s2 + $0x10] sm:$0xff]  ;;  %s4374_s27 = sshll.u32 %s4369_s22, 7  ;;  %v536_v2 = vld [vmem:[%s7641_s2 + $0x8] sm:$0xff]  ;;  %v5452_v3 = vmov 0   ;;  %vm1316_vm0 = vcmask 261120  }
   0xc   : > { %1713 = vmatpush.msra.mxu0 %v538_v0  ;;  %4638 = vmatpush.msra.mxu3 %v538_v0  ;;  %p260_p3 = scmp.lt.s32.totalorder %s4374_s27, 255  ;;  %v535_v4 = vld [vmem:[%s7641_s2] sm:$0xff]  ;;  %vm2363_vm1 = vcmask 523264  }
   0xd   : > { %4661 = vset.pattern.permute.xlu2 %v5452_v3  ;;  %4660 = vset.pattern.permute.xlu1 %v5452_v3 }
   0xe   : > { %1714 = vmatpush.msra.mxu0 %v537_v1  ;;  %4639 = vmatpush.msra.mxu3 %v537_v1  ;;  %s7841_s27 = smov (!%p260_p3, %s4374_s27), 255 }
   0xf   : > { %4659 = vset.pattern.permute.xlu0 %v5452_v3  ;;  %s5508_s8 = sshll.u32 %s7841_s27, 3  ;;  %v545_v3 = vld [vmem:[%s7643_s4 + $0x30] sm:$0xff] }
  0x10   : > { %1715 = vmatpush.msra.mxu0 %v536_v2  ;;  %4640 = vmatpush.msra.mxu3 %v536_v2  ;;  %s5514_s11 = scalar_lea.vmem %s7640_s1, %s5508_s8  ;;  %s5523_s14 = scalar_lea.vmem %s7639_s0, %s5508_s8  ;;  %v546_v2 = vld [vmem:[%s7643_s4 + $0x38] sm:$0xff] }
  0x11   : > { %v409_v5 = vld [vmem:[%s5514_s11 + $0x20] sm:$0xff]  ;;  %v407_v6 = vld [vmem:[%s5514_s11 + $0x10] sm:$0xff]  ;;  %v342_v9 = vld [vmem:[%s5523_s14 + $0x208] sm:$0xff]  ;;  %2756 = vmatpush.msra.mxu1 %v546_v2  ;;  %4642 = vmatpush.msra.mxu2 %v546_v2  ;;  %s6449_s24 = scalar_lea.vmem %s7645_s6, %s5508_s8 }
  0x12   : > { %1716 = vmatpush.msra.mxu0 %v535_v4  ;;  %4641 = vmatpush.msra.mxu3 %v535_v4  ;;  %v405_v7 = vld [vmem:[%s5514_s11] sm:$0xff]  ;;  %v410_v10 = vld [vmem:[%s5514_s11 + $0x28] sm:$0xff]  ;;  %v408_v11 = vld [vmem:[%s5514_s11 + $0x18] sm:$0xff] }
  0x13   : > { %569 = vperm.xlu2 %4661, %v409_v5   ;;  %559 = vperm.xlu1 %4660, %v407_v6   ;;  %v277_v8 = vld [vmem:[%s5523_s14] sm:$0xff]  ;;  %v406_v12 = vld [vmem:[%s5514_s11 + $0x8] sm:$0xff]  ;;  %v343_v14 = vld [vmem:[%s5523_s14 + $0x210] sm:$0xff] }
  0x14   : > { %549 = vperm.xlu0 %4659, %v405_v7   ;;  %4380 = vmatmul.msk.f32.vlgmr.msra.gmra.mxu0 %vm1316_vm0, %v277_v8  ;;  %v278_v13 = vld [vmem:[%s5523_s14 + $0x8] sm:$0xff]  ;;  %v413_v15 = vld [vmem:[%s5514_s11 + $0x40] sm:$0xff]  ;;  %v412_v16 = vld [vmem:[%s5514_s11 + $0x38] sm:$0xff] }
  0x15   : > { %4445 = vmatmul.msk.f32.vlgmr.msra.gmra.mxu3 %vm1316_vm0, %v342_v9  ;;  %v411_v17 = vld [vmem:[%s5514_s11 + $0x30] sm:$0xff]  ;;  %v344_v19 = vld [vmem:[%s5523_s14 + $0x218] sm:$0xff]  ;;  %v414_v22 = vld [vmem:[%s5514_s11 + $0x48] sm:$0xff]  ;;  %2757 = vmatpush.msra.mxu1 %v545_v3 }
  0x16   : > { %v279_v18 = vld [vmem:[%s5523_s14 + $0x10] sm:$0xff]  ;;  %v416_v20 = vld [vmem:[%s5514_s11 + $0x58] sm:$0xff]  ;;  %v345_v24 = vld [vmem:[%s5523_s14 + $0x220] sm:$0xff]  ;;  %4643 = vmatpush.msra.mxu2 %v545_v3 }
  0x17   : > { %v415_v21 = vld [vmem:[%s5514_s11 + $0x50] sm:$0xff]  ;;  %v280_v23 = vld [vmem:[%s5523_s14 + $0x18] sm:$0xff]  ;;  %v418_v26 = vld [vmem:[%s5514_s11 + $0x68] sm:$0xff] }
  0x18   : > { %v419_v25 = vld [vmem:[%s5514_s11 + $0x70] sm:$0xff]  ;;  %v417_v27 = vld [vmem:[%s5514_s11 + $0x60] sm:$0xff]  ;;  %v346_v29 = vld [vmem:[%s5523_s14 + $0x228] sm:$0xff] }
  0x19   : > { %v281_v28 = vld [vmem:[%s5523_s14 + $0x20] sm:$0xff]  ;;  %v422_v30 = vld [vmem:[%s5514_s11 + $0x88] sm:$0xff]  ;;  %v420_v32 = vld [vmem:[%s5514_s11 + $0x78] sm:$0xff] }
  0x1a   : > { %v421_v31 = vld [vmem:[%s5514_s11 + $0x80] sm:$0xff]  ;;  %v282_v33 = vld [vmem:[%s5523_s14 + $0x28] sm:$0xff]  ;;  %v347_v34 = vld [vmem:[%s5523_s14 + $0x230] sm:$0xff] }
  0x1b   : > { %574 = vperm.xlu2 %4661, %v410_v10   ;;  %564 = vperm.xlu1 %4660, %v408_v11   ;;  %v425_v35 = vld [vmem:[%s5514_s11 + $0xa0] sm:$0xff]  ;;  %v424_v36 = vld [vmem:[%s5514_s11 + $0x98] sm:$0xff]  ;;  %v423_v37 = vld [vmem:[%s5514_s11 + $0x90] sm:$0xff] }
  0x1c   : > { %554 = vperm.xlu0 %4659, %v406_v12   ;;  %4381 = vmatmul.msk.f32.gmra.mxu0 %vm1316_vm0, %v278_v13  ;;  %v283_v38 = vld [vmem:[%s5523_s14 + $0x30] sm:$0xff]  ;;  %v348_v39 = vld [vmem:[%s5523_s14 + $0x238] sm:$0xff]  ;;  %v426_v42 = vld [vmem:[%s5514_s11 + $0xa8] sm:$0xff] }
  0x1d   : > { %4446 = vmatmul.msk.f32.gmra.mxu3 %vm1316_vm0, %v343_v14  ;;  %v428_v40 = vld [vmem:[%s5514_s11 + $0xb8] sm:$0xff]  ;;  %v427_v41 = vld [vmem:[%s5514_s11 + $0xb0] sm:$0xff]  ;;  %v349_v44 = vld [vmem:[%s5523_s14 + $0x240] sm:$0xff] }
  0x1e   : > { %v284_v43 = vld [vmem:[%s5523_s14 + $0x38] sm:$0xff]  ;;  %v431_v45 = vld [vmem:[%s5514_s11 + $0xd0] sm:$0xff]  ;;  %v430_v46 = vld [vmem:[%s5514_s11 + $0xc8] sm:$0xff] }
  0x1f   : > { %v429_v47 = vld [vmem:[%s5514_s11 + $0xc0] sm:$0xff]  ;;  %v350_v49 = vld [vmem:[%s5523_s14 + $0x248] sm:$0xff]  ;;  %v432_v52 = vld [vmem:[%s5514_s11 + $0xd8] sm:$0xff] }
  0x20   : > { %v285_v48 = vld [vmem:[%s5523_s14 + $0x40] sm:$0xff]  ;;  %v434_v50 = vld [vmem:[%s5514_s11 + $0xe8] sm:$0xff]  ;;  %v351_v54 = vld [vmem:[%s5523_s14 + $0x250] sm:$0xff] }
  0x21   : > { %v433_v51 = vld [vmem:[%s5514_s11 + $0xe0] sm:$0xff]  ;;  %v286_v53 = vld [vmem:[%s5523_s14 + $0x48] sm:$0xff]  ;;  %v436_v56 = vld [vmem:[%s5514_s11 + $0xf8] sm:$0xff] }
  0x22   : > { %v437_v55 = vld [vmem:[%s5514_s11 + $0x100] sm:$0xff]  ;;  %v435_v57 = vld [vmem:[%s5514_s11 + $0xf0] sm:$0xff]  ;;  %v352_v59 = vld [vmem:[%s5523_s14 + $0x258] sm:$0xff] }
  0x23   : > { %589 = vperm.xlu2 %4661, %v413_v15   ;;  %584 = vperm.xlu1 %4660, %v412_v16   ;;  %v287_v58 = vld [vmem:[%s5523_s14 + $0x50] sm:$0xff]  ;;  %v440_v60 = vld [vmem:[%s5514_s11 + $0x118] sm:$0xff]  ;;  %v438_v62 = vld [vmem:[%s5514_s11 + $0x108] sm:$0xff] }
  0x24   : > { %579 = vperm.xlu0 %4659, %v411_v17   ;;  %4382 = vmatmul.msk.f32.gmra.mxu0 %vm1316_vm0, %v279_v18  ;;  %v439_v61 = vld [vmem:[%s5514_s11 + $0x110] sm:$0xff]  ;;  %v288_v63 = vld [vmem:[%s5523_s14 + $0x58] sm:$0xff]  ;;  %v353_v0 = vld [vmem:[%s5523_s14 + $0x260] sm:$0xff] }
  0x25   : > { %4447 = vmatmul.msk.f32.gmra.mxu3 %vm1316_vm0, %v344_v19  ;;  %v443_v4 = vld [vmem:[%s5514_s11 + $0x130] sm:$0xff]  ;;  %v442_v5 = vld [vmem:[%s5514_s11 + $0x128] sm:$0xff]  ;;  %v441_v6 = vld [vmem:[%s5514_s11 + $0x120] sm:$0xff] }
  0x26   : > { %v289_v7 = vld [vmem:[%s5523_s14 + $0x60] sm:$0xff]  ;;  %v354_v8 = vld [vmem:[%s5523_s14 + $0x268] sm:$0xff]  ;;  %v542_v12 = vld [vmem:[%s7643_s4 + $0x18] sm:$0xff] }
  0x27   : > { %v544_v9 = vld [vmem:[%s7643_s4 + $0x28] sm:$0xff]  ;;  %v543_v10 = vld [vmem:[%s7643_s4 + $0x20] sm:$0xff]  ;;  %v444_v15 = vld [vmem:[%s5514_s11 + $0x138] sm:$0xff] }
  0x28   : > { %2758 = vmatpush.msra.mxu1 %v544_v9  ;;  %4644 = vmatpush.msra.mxu2 %v544_v9  ;;  %v446_v13 = vld [vmem:[%s5514_s11 + $0x148] sm:$0xff]  ;;  %v445_v14 = vld [vmem:[%s5514_s11 + $0x140] sm:$0xff]  ;;  %v355_v17 = vld [vmem:[%s5523_s14 + $0x270] sm:$0xff] }
  0x29   : > { %v290_v16 = vld [vmem:[%s5523_s14 + $0x68] sm:$0xff]  ;;  %v541_v18 = vld [vmem:[%s7643_s4 + $0x10] sm:$0xff] }
  0x2a   : > { %2759 = vmatpush.msra.mxu1 %v543_v10  ;;  %4645 = vmatpush.msra.mxu2 %v543_v10  ;;  %v540_v19 = vld [vmem:[%s7643_s4 + $0x8] sm:$0xff]  ;;  %v295_v9 = vld [vmem:[%s5523_s14 + $0x90] sm:$0xff] }
  0x2b   : > { %604 = vperm.xlu2 %4661, %v416_v20   ;;  %599 = vperm.xlu1 %4660, %v415_v21   ;;  %v539_v21 = vld [vmem:[%s7643_s4] sm:$0xff] }
  0x2c   : > { %594 = vperm.xlu0 %4659, %v414_v22   ;;  %4383 = vmatmul.msk.f32.gmra.mxu0 %vm1316_vm0, %v280_v23  ;;  %v449_v22 = vld [vmem:[%s5514_s11 + $0x160] sm:$0xff]  ;;  %v448_v23 = vld [vmem:[%s5514_s11 + $0x158] sm:$0xff] }
  0x2d   : > { %4448 = vmatmul.msk.f32.gmra.mxu3 %vm1316_vm0, %v345_v24  ;;  %2760 = vmatpush.msra.mxu1 %v542_v12  ;;  %v447_v24 = vld [vmem:[%s5514_s11 + $0x150] sm:$0xff] }
  0x2e   : > { %4646 = vmatpush.msra.mxu2 %v542_v12  ;;  %v360_v12 = vld [vmem:[%s5523_s14 + $0x298] sm:$0xff] }
  0x2f   : > { %2761 = vmatpush.msra.mxu1 %v541_v18 }
  0x30   : > { %4647 = vmatpush.msra.mxu2 %v541_v18 }
  0x31   : > { %2762 = vmatpush.msra.mxu1 %v540_v19 }
  0x32   : > { %4648 = vmatpush.msra.mxu2 %v540_v19 }
  0x33   : > { %619 = vperm.xlu2 %4661, %v419_v25   ;;  %614 = vperm.xlu1 %4660, %v418_v26   ;;  %v291_v25 = vld [vmem:[%s5523_s14 + $0x70] sm:$0xff]  ;;  %v356_v26 = vld [vmem:[%s5523_s14 + $0x278] sm:$0xff] }
  0x34   : > { %609 = vperm.xlu0 %4659, %v417_v27   ;;  %4384 = vmatmul.msk.f32.gmra.mxu0 %vm1316_vm0, %v281_v28 }
  0x35   : > { %4449 = vmatmul.msk.f32.gmra.mxu3 %vm1316_vm0, %v346_v29  ;;  %2763 = vmatpush.msra.mxu1 %v539_v21 }
  0x36   : > { %4649 = vmatpush.msra.mxu2 %v539_v21  ;;  %v464_v21 = vld [vmem:[%s5514_s11 + $0x1d8] sm:$0xff] }
  0x3b   : > { %634 = vperm.xlu2 %4661, %v422_v30   ;;  %629 = vperm.xlu1 %4660, %v421_v31   ;;  %v452_v30 = vld [vmem:[%s5514_s11 + $0x178] sm:$0xff]  ;;  %v451_v31 = vld [vmem:[%s5514_s11 + $0x170] sm:$0xff] }
  0x3c   : > { %624 = vperm.xlu0 %4659, %v420_v32   ;;  %4385 = vmatmul.msk.f32.gmra.mxu0 %vm1316_vm0, %v282_v33  ;;  %v450_v32 = vld [vmem:[%s5514_s11 + $0x168] sm:$0xff]  ;;  %v292_v33 = vld [vmem:[%s5523_s14 + $0x78] sm:$0xff] }
  0x3d   : > { %4450 = vmatmul.msk.f32.gmra.mxu3 %vm1316_vm0, %v347_v34  ;;  %v5666_v34 = vld [vmem:[%s7642_s3] ss:$0 sm:$0xff] }
  0x43   : > { %649 = vperm.xlu2 %4661, %v425_v35   ;;  %644 = vperm.xlu1 %4660, %v424_v36   ;;  %v357_v35 = vld [vmem:[%s5523_s14 + $0x280] sm:$0xff] }
  0x44   : > { %639 = vperm.xlu0 %4659, %v423_v37   ;;  %4386 = vmatmul.msk.f32.gmra.mxu0 %vm1316_vm0, %v283_v38 }
  0x45   : > { %4451 = vmatmul.msk.f32.gmra.mxu3 %vm1316_vm0, %v348_v39 }
  0x4b   : > { %664 = vperm.xlu2 %4661, %v428_v40   ;;  %659 = vperm.xlu1 %4660, %v427_v41   ;;  %v5677_v40 = vld [vmem:[%s7642_s3 + $0x1] ss:$0 sm:$0xff]  ;;  %v455_v41 = vld [vmem:[%s5514_s11 + $0x190] sm:$0xff] }
  0x4c   : > { %654 = vperm.xlu0 %4659, %v426_v42   ;;  %4387 = vmatmul.msk.f32.gmra.mxu0 %vm1316_vm0, %v284_v43  ;;  %v454_v42 = vld [vmem:[%s5514_s11 + $0x188] sm:$0xff] }
  0x4d   : > { %4452 = vmatmul.msk.f32.gmra.mxu3 %vm1316_vm0, %v349_v44  ;;  %v453_v44 = vld [vmem:[%s5514_s11 + $0x180] sm:$0xff] }
  0x53   : > { %679 = vperm.xlu2 %4661, %v431_v45   ;;  %674 = vperm.xlu1 %4660, %v430_v46   ;;  %v293_v45 = vld [vmem:[%s5523_s14 + $0x80] sm:$0xff] }
  0x54   : > { %669 = vperm.xlu0 %4659, %v429_v47   ;;  %4388 = vmatmul.msk.f32.gmra.mxu0 %vm1316_vm0, %v285_v48  ;;  %v358_v47 = vld [vmem:[%s5523_s14 + $0x288] sm:$0xff] }
  0x55   : > { %4453 = vmatmul.msk.f32.gmra.mxu3 %vm1316_vm0, %v350_v49 }
  0x5b   : > { %694 = vperm.xlu2 %4661, %v434_v50   ;;  %689 = vperm.xlu1 %4660, %v433_v51  }
  0x5c   : > { %684 = vperm.xlu0 %4659, %v432_v52   ;;  %4389 = vmatmul.msk.f32.gmra.mxu0 %vm1316_vm0, %v286_v53 }
  0x5d   : > { %4454 = vmatmul.msk.f32.gmra.mxu3 %vm1316_vm0, %v351_v54  ;;  %v458_v54 = vld [vmem:[%s5514_s11 + $0x1a8] sm:$0xff] }
  0x63   : > { %709 = vperm.xlu2 %4661, %v437_v55   ;;  %704 = vperm.xlu1 %4660, %v436_v56   ;;  %v457_v55 = vld [vmem:[%s5514_s11 + $0x1a0] sm:$0xff] }
  0x64   : > { %699 = vperm.xlu0 %4659, %v435_v57   ;;  %4390 = vmatmul.msk.f32.gmra.mxu0 %vm1316_vm0, %v287_v58  ;;  %v456_v57 = vld [vmem:[%s5514_s11 + $0x198] sm:$0xff]  ;;  %v294_v58 = vld [vmem:[%s5523_s14 + $0x88] sm:$0xff] }
  0x65   : > { %4455 = vmatmul.msk.f32.gmra.mxu3 %vm1316_vm0, %v352_v59 }
  0x6b   : > { %724 = vperm.xlu2 %4661, %v440_v60   ;;  %719 = vperm.xlu1 %4660, %v439_v61   ;;  %v359_v60 = vld [vmem:[%s5523_s14 + $0x290] sm:$0xff] }
  0x6c   : > { %714 = vperm.xlu0 %4659, %v438_v62   ;;  %4391 = vmatmul.msk.f32.gmra.mxu0 %vm1316_vm0, %v288_v63 }
  0x6d   : > { %4456 = vmatmul.msk.f32.gmra.mxu3 %vm1316_vm0, %v353_v0  ;;  %v5606_v1 = vpop.permute.xlu2 %569 }
  0x73   : > { %739 = vperm.xlu2 %4661, %v443_v4   ;;  %734 = vperm.xlu1 %4660, %v442_v5   ;;  %v461_v5 = vld [vmem:[%s5514_s11 + $0x1c0] sm:$0xff] }
  0x74   : > { %729 = vperm.xlu0 %4659, %v441_v6   ;;  %4392 = vmatmul.msk.f32.gmra.mxu0 %vm1316_vm0, %v289_v7  ;;  %v460_v6 = vld [vmem:[%s5514_s11 + $0x1b8] sm:$0xff] }
  0x75   : > { %4457 = vmatmul.msk.f32.gmra.mxu3 %vm1316_vm0, %v354_v8  ;;  %v5627_v11 = vpop.permute.xlu2 %574  ;;  %v459_v8 = vld [vmem:[%s5514_s11 + $0x1b0] sm:$0xff] }
  0x7b   : > { %754 = vperm.xlu2 %4661, %v446_v13   ;;  %749 = vperm.xlu1 %4660, %v445_v14  }
  0x7c   : > { %744 = vperm.xlu0 %4659, %v444_v15   ;;  %4393 = vmatmul.msk.f32.gmra.mxu0 %vm1316_vm0, %v290_v16 }
  0x7d   : > { %4458 = vmatmul.msk.f32.gmra.mxu3 %vm1316_vm0, %v355_v17  ;;  %v5645_v20 = vpop.permute.xlu2 %589 }
  0x83   : > { %769 = vperm.xlu2 %4661, %v449_v22   ;;  %764 = vperm.xlu1 %4660, %v448_v23   ;;  %v463_v22 = vld [vmem:[%s5514_s11 + $0x1d0] sm:$0xff] }
  0x84   : > { %759 = vperm.xlu0 %4659, %v447_v24   ;;  %4394 = vmatmul.msk.f32.gmra.mxu0 %vm1316_vm0, %v291_v25  ;;  %v462_v24 = vld [vmem:[%s5514_s11 + $0x1c8] sm:$0xff]  ;;  %v296_v25 = vld [vmem:[%s5523_s14 + $0x98] sm:$0xff] }
  0x85   : > { %4459 = vmatmul.msk.f32.gmra.mxu3 %vm1316_vm0, %v356_v26  ;;  %v5657_v27 = vpop.permute.xlu2 %604  ;;  %v560_v28 = vpop.permute.xlu1 %559 }
  0x86   : > { %v550_v29 = vpop.permute.xlu0 %549  ;;  %v1190_v2 = vmul.f32 %v5666_v34, %v560_v28  ;;  %v361_v28 = vld [vmem:[%s5523_s14 + $0x2a0] sm:$0xff] }
  0x87   : > { %v1188_v38 = vmul.f32 %v5666_v34, %v550_v29 }
  0x8b   : > { %784 = vperm.xlu2 %4661, %v452_v30   ;;  %779 = vperm.xlu1 %4660, %v451_v31  }
  0x8c   : > { %774 = vperm.xlu0 %4659, %v450_v32   ;;  %4395 = vmatmul.msk.f32.gmra.mxu0 %vm1316_vm0, %v292_v33  ;;  %v1192_v33 = vmul.f32 %v5666_v34, %v5606_v1 }
  0x8d   : > { %4460 = vmatmul.msk.f32.gmra.mxu3 %vm1316_vm0, %v357_v35  ;;  %v5671_v36 = vpop.permute.xlu2 %619  ;;  %v565_v37 = vpop.permute.xlu1 %564 }
  0x8e   : > { %v555_v39 = vpop.permute.xlu0 %554  ;;  %v1191_v17 = vmul.f32 %v5666_v34, %v565_v37 }
  0x8f   : > { %v1189_v51 = vmul.f32 %v5666_v34, %v555_v39  ;;  %v466_v39 = vld [vmem:[%s5514_s11 + $0x1e8] sm:$0xff] }
  0x91   : > { %v1718_v43 = vpop.f32.mrf.mxu0 }
  0x92   : > { %v1719_v46 = vadd.f32 %v1718_v43, %v1188_v38  ;;  %v467_v38 = vld [vmem:[%s5514_s11 + $0x1f0] sm:$0xff]  ;;  %v297_v43 = vld [vmem:[%s5523_s14 + $0xa0] sm:$0xff] }
  0x93   : > { %799 = vperm.xlu2 %4661, %v455_v41   ;;  %794 = vperm.xlu1 %4660, %v454_v42   ;;  %v465_v42 = vld [vmem:[%s5514_s11 + $0x1e0] sm:$0xff] }
  0x94   : > { %v2103_v48 = vadd.f32 %v5677_v40, %v1719_v46  ;;  %789 = vperm.xlu0 %4659, %v453_v44   ;;  %4396 = vmatmul.msk.f32.gmra.mxu0 %vm1316_vm0, %v293_v45  ;;  %v362_v45 = vld [vmem:[%s5523_s14 + $0x2a8] sm:$0xff] }
  0x95   : > { %4461 = vmatmul.msk.f32.gmra.mxu3 %vm1316_vm0, %v358_v47  ;;  %v5687_v49 = vpop.permute.xlu2 %634  ;;  %v5689_v50 = vpop.permute.xlu1 %584 }
  0x96   : > { %4665 = vtanh.f32 %v2103_v48  ;;  %v5692_v52 = vpop.permute.xlu0 %579 }
  0x98   : > { %v5694_v53 = vpop.f32.mrf.mxu3 }
  0x99   : > { %7646 = vst [vmem:[#allocation2_spill] sm:$0xff] %v5694_v53  ;;  %v1721_v56 = vpop.f32.mrf.mxu0  ;;  %v314_v53 = vld [vmem:[%s5523_s14 + $0x128] sm:$0xff] }
  0x9a   : > { %v1722_v59 = vadd.f32 %v1721_v56, %v1189_v51  ;;  %v1193_v51 = vmul.f32 %v5666_v34, %v5627_v11  ;;  %v470_v56 = vld [vmem:[%s5514_s11 + $0x208] sm:$0xff] }
  0x9b   : > { %814 = vperm.xlu2 %4661, %v458_v54   ;;  %809 = vperm.xlu1 %4660, %v457_v55  }
  0x9c   : > { %v4666_v61 = vpop.eup %4665  ;;  %v2104_v62 = vadd.f32 %v5677_v40, %v1722_v59  ;;  %804 = vperm.xlu0 %4659, %v456_v57   ;;  %4397 = vmatmul.msk.f32.gmra.mxu0 %vm1316_vm0, %v294_v58  ;;  %v469_v57 = vld [vmem:[%s5514_s11 + $0x200] sm:$0xff]  ;;  %v468_v59 = vld [vmem:[%s5514_s11 + $0x1f8] sm:$0xff] }
  0x9d   : > { %4462 = vmatmul.msk.f32.gmra.mxu3 %vm1316_vm0, %v359_v60  ;;  %4508 = vmatmul.msk.f32.vlgmr.msra.gmra.mxu1 %vm2363_vm1, %v4666_v61  ;;  %v5705_v63 = vpop.permute.xlu2 %649  ;;  %v5707_v0 = vpop.permute.xlu1 %599  ;;  %v298_v60 = vld [vmem:[%s5523_s14 + $0xa8] sm:$0xff] }
  0x9e   : > { %4667 = vtanh.f32 %v2104_v62  ;;  %v5710_v3 = vpop.permute.xlu0 %594  ;;  %v363_v62 = vld [vmem:[%s5523_s14 + $0x2b0] sm:$0xff] }
  0xa0   : > { %v5712_v4 = vpop.f32.mrf.mxu3 }
  0xa1   : > { %7647 = vst [vmem:[#allocation3_spill] sm:$0xff] %v5712_v4  ;;  %v1724_v7 = vpop.f32.mrf.mxu0  ;;  %v516_v4 = vld [vmem:[%s5514_s11 + $0x378] sm:$0xff] }
  0xa2   : > { %v1725_v10 = vadd.f32 %v1724_v7, %v1190_v2  ;;  %v1194_v7 = vmul.f32 %v5666_v34, %v5692_v52 }
  0xa3   : > { %829 = vperm.xlu2 %4661, %v461_v5   ;;  %824 = vperm.xlu1 %4660, %v460_v6  }
  0xa4   : > { %v4668_v13 = vpop.eup %4667  ;;  %v2105_v14 = vadd.f32 %v5677_v40, %v1725_v10  ;;  %819 = vperm.xlu0 %4659, %v459_v8   ;;  %4398 = vmatmul.msk.f32.gmra.mxu0 %vm1316_vm0, %v295_v9  ;;  %v473_v10 = vld [vmem:[%s5514_s11 + $0x220] sm:$0xff] }
  0xa5   : > { %4463 = vmatmul.msk.f32.gmra.mxu3 %vm1316_vm0, %v360_v12  ;;  %4509 = vmatmul.msk.f32.gmra.mxu1 %vm2363_vm1, %v4668_v13  ;;  %v5723_v15 = vpop.permute.xlu2 %664  ;;  %v5725_v16 = vpop.permute.xlu1 %614  ;;  %v472_v12 = vld [vmem:[%s5514_s11 + $0x218] sm:$0xff] }
  0xa6   : > { %4669 = vtanh.f32 %v2105_v14  ;;  %v5728_v18 = vpop.permute.xlu0 %609  ;;  %v471_v14 = vld [vmem:[%s5514_s11 + $0x210] sm:$0xff] }
  0xa8   : > { %v5730_v19 = vpop.f32.mrf.mxu3 }
  0xa9   : > { %7648 = vst [vmem:[#allocation4_spill] sm:$0xff] %v5730_v19  ;;  %v1727_v23 = vpop.f32.mrf.mxu0 }
  0xaa   : > { %v1728_v26 = vadd.f32 %v1727_v23, %v1191_v17  ;;  %v299_v17 = vld [vmem:[%s5523_s14 + $0xb0] sm:$0xff] }
  0xab   : > { %844 = vperm.xlu2 %4661, %v464_v21   ;;  %839 = vperm.xlu1 %4660, %v463_v22   ;;  %v364_v22 = vld [vmem:[%s5523_s14 + $0x2b8] sm:$0xff] }
  0xac   : > { %v4670_v29 = vpop.eup %4669  ;;  %v2106_v30 = vadd.f32 %v5677_v40, %v1728_v26  ;;  %834 = vperm.xlu0 %4659, %v462_v24   ;;  %4399 = vmatmul.msk.f32.gmra.mxu0 %vm1316_vm0, %v296_v25  ;;  %v1195_v26 = vmul.f32 %v5666_v34, %v5689_v50 }
  0xad   : > { %4464 = vmatmul.msk.f32.gmra.mxu3 %vm1316_vm0, %v361_v28  ;;  %4510 = vmatmul.msk.f32.gmra.mxu1 %vm2363_vm1, %v4670_v29  ;;  %v5741_v31 = vpop.permute.xlu2 %679  ;;  %v5743_v32 = vpop.permute.xlu1 %629 }
  0xae   : > { %4671 = vtanh.f32 %v2106_v30  ;;  %v5747_v35 = vpop.permute.xlu0 %624  ;;  %v476_v30 = vld [vmem:[%s5514_s11 + $0x238] sm:$0xff] }
  0xb0   : > { %v5749_v37 = vpop.f32.mrf.mxu3 }
  0xb1   : > { %7649 = vst [vmem:[#allocation5_spill] sm:$0xff] %v5749_v37  ;;  %v1730_v41 = vpop.f32.mrf.mxu0  ;;  %v312_v37 = vld [vmem:[%s5523_s14 + $0x118] sm:$0xff] }
  0xb2   : > { %v1731_v44 = vadd.f32 %v1730_v41, %v1192_v33  ;;  %v475_v33 = vld [vmem:[%s5514_s11 + $0x230] sm:$0xff]  ;;  %v300_v41 = vld [vmem:[%s5523_s14 + $0xb8] sm:$0xff] }
  0xb3   : > { %859 = vperm.xlu2 %4661, %v467_v38   ;;  %854 = vperm.xlu1 %4660, %v466_v39   ;;  %v474_v39 = vld [vmem:[%s5514_s11 + $0x228] sm:$0xff] }
  0xb4   : > { %v4672_v46 = vpop.eup %4671  ;;  %v2107_v1 = vadd.f32 %v5677_v40, %v1731_v44  ;;  %849 = vperm.xlu0 %4659, %v465_v42   ;;  %4400 = vmatmul.msk.f32.gmra.mxu0 %vm1316_vm0, %v297_v43  ;;  %v365_v43 = vld [vmem:[%s5523_s14 + $0x2c0] sm:$0xff] }
  0xb5   : > { %4465 = vmatmul.msk.f32.gmra.mxu3 %vm1316_vm0, %v362_v45  ;;  %4511 = vmatmul.msk.f32.gmra.mxu1 %vm2363_vm1, %v4672_v46  ;;  %v5760_v47 = vpop.permute.xlu2 %694  ;;  %v5762_v48 = vpop.permute.xlu1 %644 }
  0xb6   : > { %4673 = vtanh.f32 %v2107_v1  ;;  %v5766_v54 = vpop.permute.xlu0 %639  ;;  %v1196_v1 = vmul.f32 %v5666_v34, %v5645_v20 }
  0xb8   : > { %v5768_v55 = vpop.f32.mrf.mxu3 }
  0xb9   : > { %7650 = vst [vmem:[#allocation6_spill] sm:$0xff] %v5768_v55  ;;  %v1733_v58 = vpop.f32.mrf.mxu0  ;;  %v510_v55 = vld [vmem:[%s5514_s11 + $0x348] sm:$0xff] }
  0xba   : > { %v1734_v61 = vadd.f32 %v1733_v58, %v1193_v51  ;;  %v478_v58 = vld [vmem:[%s5514_s11 + $0x248] sm:$0xff] }
  0xbb   : > { %874 = vperm.xlu2 %4661, %v470_v56   ;;  %869 = vperm.xlu1 %4660, %v469_v57   ;;  %v479_v57 = vld [vmem:[%s5514_s11 + $0x250] sm:$0xff] }
  0xbc   : > { %v4674_v2 = vpop.eup %4673  ;;  %v2108_v11 = vadd.f32 %v5677_v40, %v1734_v61  ;;  %864 = vperm.xlu0 %4659, %v468_v59   ;;  %4401 = vmatmul.msk.f32.gmra.mxu0 %vm1316_vm0, %v298_v60  ;;  %v477_v60 = vld [vmem:[%s5514_s11 + $0x240] sm:$0xff] }
  0xbd   : > { %4466 = vmatmul.msk.f32.gmra.mxu3 %vm1316_vm0, %v363_v62  ;;  %4512 = vmatmul.msk.f32.gmra.mxu1 %vm2363_vm1, %v4674_v2  ;;  %v5779_v5 = vpop.permute.xlu2 %709  ;;  %v5781_v6 = vpop.permute.xlu1 %659  ;;  %v301_v61 = vld [vmem:[%s5523_s14 + $0xc0] sm:$0xff]  ;;  %v366_v2 = vld [vmem:[%s5523_s14 + $0x2c8] sm:$0xff] }
  0xbe   : > { %4675 = vtanh.f32 %v2108_v11  ;;  %v5785_v8 = vpop.permute.xlu0 %654 }
  0xc0   : > { %v5787_v9 = vpop.f32.mrf.mxu3 }
  0xc1   : > { %7651 = vst [vmem:[#allocation7_spill] sm:$0xff] %v5787_v9  ;;  %v1736_v13 = vpop.f32.mrf.mxu0 }
  0xc2   : > { %v1737_v21 = vadd.f32 %v1736_v13, %v1194_v7 }
  0xc3   : > { %889 = vperm.xlu2 %4661, %v473_v10   ;;  %884 = vperm.xlu1 %4660, %v472_v12   ;;  %v1197_v12 = vmul.f32 %v5666_v34, %v5710_v3 }
  0xc4   : > { %v4676_v23 = vpop.eup %4675  ;;  %v2109_v52 = vadd.f32 %v5677_v40, %v1737_v21  ;;  %879 = vperm.xlu0 %4659, %v471_v14   ;;  %4402 = vmatmul.msk.f32.gmra.mxu0 %vm1316_vm0, %v299_v17  ;;  %v482_v17 = vld [vmem:[%s5514_s11 + $0x268] sm:$0xff]  ;;  %v481_v21 = vld [vmem:[%s5514_s11 + $0x260] sm:$0xff] }
  0xc5   : > { %4467 = vmatmul.msk.f32.gmra.mxu3 %vm1316_vm0, %v364_v22  ;;  %4513 = vmatmul.msk.f32.gmra.mxu1 %vm2363_vm1, %v4676_v23  ;;  %v5798_v24 = vpop.permute.xlu2 %724  ;;  %v5800_v25 = vpop.permute.xlu1 %674  ;;  %v480_v23 = vld [vmem:[%s5514_s11 + $0x258] sm:$0xff] }
  0xc6   : > { %4677 = vtanh.f32 %v2109_v52  ;;  %v5804_v28 = vpop.permute.xlu0 %669  ;;  %v302_v52 = vld [vmem:[%s5523_s14 + $0xc8] sm:$0xff] }
  0xc8   : > { %v5806_v29 = vpop.f32.mrf.mxu3 }
  0xc9   : > { %7652 = vst [vmem:[#allocation8_spill] sm:$0xff] %v5806_v29  ;;  %v1739_v38 = vpop.f32.mrf.mxu0  ;;  %v311_v29 = vld [vmem:[%s5523_s14 + $0x110] sm:$0xff] }
  0xca   : > { %v1740_v42 = vadd.f32 %v1739_v38, %v1195_v26 }
  0xcb   : > { %904 = vperm.xlu2 %4661, %v476_v30   ;;  %899 = vperm.xlu1 %4660, %v475_v33   ;;  %v367_v30 = vld [vmem:[%s5523_s14 + $0x2d0] sm:$0xff] }
  0xcc   : > { %v4678_v44 = vpop.eup %4677  ;;  %v2110_v50 = vadd.f32 %v5677_v40, %v1740_v42  ;;  %894 = vperm.xlu0 %4659, %v474_v39   ;;  %4403 = vmatmul.msk.f32.gmra.mxu0 %vm1316_vm0, %v300_v41  ;;  %v1198_v41 = vmul.f32 %v5666_v34, %v5707_v0 }
  0xcd   : > { %4468 = vmatmul.msk.f32.gmra.mxu3 %vm1316_vm0, %v365_v43  ;;  %4514 = vmatmul.msk.f32.gmra.mxu1 %vm2363_vm1, %v4678_v44  ;;  %v5817_v45 = vpop.permute.xlu2 %739  ;;  %v5819_v46 = vpop.permute.xlu1 %689  ;;  %v485_v43 = vld [vmem:[%s5514_s11 + $0x280] sm:$0xff]  ;;  %v484_v44 = vld [vmem:[%s5514_s11 + $0x278] sm:$0xff] }
  0xce   : > { %4679 = vtanh.f32 %v2110_v50  ;;  %v5823_v51 = vpop.permute.xlu0 %684 }
  0xd0   : > { %v5825_v56 = vpop.f32.mrf.mxu3 }
  0xd1   : > { %7653 = vst [vmem:[#allocation9_spill] sm:$0xff] %v5825_v56  ;;  %v1742_v59 = vpop.f32.mrf.mxu0  ;;  %v507_v56 = vld [vmem:[%s5514_s11 + $0x330] sm:$0xff] }
  0xd2   : > { %v1743_v62 = vadd.f32 %v1742_v59, %v1196_v1  ;;  %v483_v1 = vld [vmem:[%s5514_s11 + $0x270] sm:$0xff] }
  0xd3   : > { %919 = vperm.xlu2 %4661, %v479_v57   ;;  %914 = vperm.xlu1 %4660, %v478_v58   ;;  %v303_v57 = vld [vmem:[%s5523_s14 + $0xd0] sm:$0xff] }
  0xd4   : > { %v4680_v11 = vpop.eup %4679  ;;  %v2111_v20 = vadd.f32 %v5677_v40, %v1743_v62  ;;  %909 = vperm.xlu0 %4659, %v477_v60   ;;  %4404 = vmatmul.msk.f32.gmra.mxu0 %vm1316_vm0, %v301_v61  ;;  %v368_v60 = vld [vmem:[%s5523_s14 + $0x2d8] sm:$0xff] }
  0xd5   : > { %4469 = vmatmul.msk.f32.gmra.mxu3 %vm1316_vm0, %v366_v2  ;;  %4515 = vmatmul.msk.f32.gmra.mxu1 %vm2363_vm1, %v4680_v11  ;;  %v5836_v7 = vpop.permute.xlu2 %754  ;;  %v5838_v10 = vpop.permute.xlu1 %704  ;;  %v1199_v11 = vmul.f32 %v5666_v34, %v5657_v27 }
  0xd6   : > { %4681 = vtanh.f32 %v2111_v20  ;;  %v5842_v13 = vpop.permute.xlu0 %699 }
  0xd8   : > { %v5844_v14 = vpop.f32.mrf.mxu3 }
  0xd9   : > { %7654 = vst [vmem:[#allocation10_spill] sm:$0xff] %v5844_v14  ;;  %v1745_v22 = vpop.f32.mrf.mxu0 }
  0xda   : > { %v1746_v26 = vadd.f32 %v1745_v22, %v1197_v12  ;;  %v488_v12 = vld [vmem:[%s5514_s11 + $0x298] sm:$0xff]  ;;  %v486_v22 = vld [vmem:[%s5514_s11 + $0x288] sm:$0xff] }
  0xdb   : > { %934 = vperm.xlu2 %4661, %v482_v17   ;;  %929 = vperm.xlu1 %4660, %v481_v21   ;;  %v487_v17 = vld [vmem:[%s5514_s11 + $0x290] sm:$0xff] }
  0xdc   : > { %v4682_v33 = vpop.eup %4681  ;;  %v2112_v3 = vadd.f32 %v5677_v40, %v1746_v26  ;;  %924 = vperm.xlu0 %4659, %v480_v23   ;;  %4405 = vmatmul.msk.f32.gmra.mxu0 %vm1316_vm0, %v302_v52  ;;  %v304_v23 = vld [vmem:[%s5523_s14 + $0xd8] sm:$0xff]  ;;  %v369_v26 = vld [vmem:[%s5523_s14 + $0x2e0] sm:$0xff] }
  0xdd   : > { %4470 = vmatmul.msk.f32.gmra.mxu3 %vm1316_vm0, %v367_v30  ;;  %4516 = vmatmul.msk.f32.gmra.mxu1 %vm2363_vm1, %v4682_v33  ;;  %v5855_v38 = vpop.permute.xlu2 %769  ;;  %v5857_v39 = vpop.permute.xlu1 %719 }
  0xde   : > { %4683 = vtanh.f32 %v2112_v3  ;;  %v5861_v42 = vpop.permute.xlu0 %714 }
  0xe0   : > { %v5867_v58 = vpop.f32.mrf.mxu3 }
  0xe1   : > { %v1748_v50 = vpop.f32.mrf.mxu0  ;;  %7655 = vst [vmem:[#allocation11_spill] sm:$0xff] %v5867_v58  ;;  %v310_v58 = vld [vmem:[%s5523_s14 + $0x108] sm:$0xff] }
  0xe2   : > { %v1749_v59 = vadd.f32 %v1748_v50, %v1198_v41  ;;  %v491_v50 = vld [vmem:[%s5514_s11 + $0x2b0] sm:$0xff] }
  0xe3   : > { %949 = vperm.xlu2 %4661, %v485_v43   ;;  %944 = vperm.xlu1 %4660, %v484_v44   ;;  %v1200_v43 = vmul.f32 %v5666_v34, %v5728_v18 }
  0xe4   : > { %v4684_v61 = vpop.eup %4683  ;;  %v2113_v0 = vadd.f32 %v5677_v40, %v1749_v59  ;;  %939 = vperm.xlu0 %4659, %v483_v1   ;;  %4406 = vmatmul.msk.f32.gmra.mxu0 %vm1316_vm0, %v303_v57  ;;  %v490_v1 = vld [vmem:[%s5514_s11 + $0x2a8] sm:$0xff]  ;;  %v489_v59 = vld [vmem:[%s5514_s11 + $0x2a0] sm:$0xff] }
  0xe5   : > { %4471 = vmatmul.msk.f32.gmra.mxu3 %vm1316_vm0, %v368_v60  ;;  %4517 = vmatmul.msk.f32.gmra.mxu1 %vm2363_vm1, %v4684_v61  ;;  %v5874_v62 = vpop.permute.xlu2 %784  ;;  %v5876_v2 = vpop.permute.xlu1 %734  ;;  %v305_v60 = vld [vmem:[%s5523_s14 + $0xe0] sm:$0xff] }
  0xe6   : > { %4685 = vtanh.f32 %v2113_v0  ;;  %v5880_v20 = vpop.permute.xlu0 %729  ;;  %v370_v0 = vld [vmem:[%s5523_s14 + $0x2e8] sm:$0xff] }
  0xe8   : > { %v5887_v33 = vpop.f32.mrf.mxu3 }
  0xe9   : > { %v1751_v21 = vpop.f32.mrf.mxu0  ;;  %7656 = vst [vmem:[#allocation12_spill] sm:$0xff] %v5887_v33 }
  0xea   : > { %v1752_v52 = vadd.f32 %v1751_v21, %v1199_v11  ;;  %v1201_v21 = vmul.f32 %v5666_v34, %v5725_v16 }
  0xeb   : > { %964 = vperm.xlu2 %4661, %v488_v12   ;;  %959 = vperm.xlu1 %4660, %v487_v17  }
  0xec   : > { %v4686_v30 = vpop.eup %4685  ;;  %v2114_v27 = vadd.f32 %v5677_v40, %v1752_v52  ;;  %954 = vperm.xlu0 %4659, %v486_v22   ;;  %4407 = vmatmul.msk.f32.gmra.mxu0 %vm1316_vm0, %v304_v23  ;;  %v494_v52 = vld [vmem:[%s5514_s11 + $0x2c8] sm:$0xff] }
  0xed   : > { %4472 = vmatmul.msk.f32.gmra.mxu3 %vm1316_vm0, %v369_v26  ;;  %4518 = vmatmul.msk.f32.gmra.mxu1 %vm2363_vm1, %v4686_v30  ;;  %v5893_v3 = vpop.permute.xlu2 %799  ;;  %v5895_v41 = vpop.permute.xlu1 %749  ;;  %v493_v26 = vld [vmem:[%s5514_s11 + $0x2c0] sm:$0xff] }
  0xee   : > { %4687 = vtanh.f32 %v2114_v27  ;;  %v5899_v44 = vpop.permute.xlu0 %744  ;;  %v492_v27 = vld [vmem:[%s5514_s11 + $0x2b8] sm:$0xff] }
  0xf0   : > { %v5916_v22 = vpop.f32.mrf.mxu3 }
  0xf1   : > { %v1754_v57 = vpop.f32.mrf.mxu0  ;;  %7657 = vst [vmem:[#allocation13_spill] sm:$0xff] %v5916_v22  ;;  %v309_v22 = vld [vmem:[%s5523_s14 + $0x100] sm:$0xff] }
  0xf2   : > { %v1755_v61 = vadd.f32 %v1754_v57, %v1200_v43  ;;  %v306_v43 = vld [vmem:[%s5523_s14 + $0xe8] sm:$0xff] }
  0xf3   : > { %979 = vperm.xlu2 %4661, %v491_v50   ;;  %974 = vperm.xlu1 %4660, %v490_v1   ;;  %v371_v1 = vld [vmem:[%s5523_s14 + $0x2f0] sm:$0xff] }
  0xf4   : > { %v4688_v11 = vpop.eup %4687  ;;  %v2115_v12 = vadd.f32 %v5677_v40, %v1755_v61  ;;  %969 = vperm.xlu0 %4659, %v489_v59   ;;  %4408 = vmatmul.msk.f32.gmra.mxu0 %vm1316_vm0, %v305_v60  ;;  %v1202_v61 = vmul.f32 %v5666_v34, %v5671_v36 }
  0xf5   : > { %4473 = vmatmul.msk.f32.gmra.mxu3 %vm1316_vm0, %v370_v0  ;;  %4519 = vmatmul.msk.f32.gmra.mxu1 %vm2363_vm1, %v4688_v11  ;;  %v5910_v18 = vpop.permute.xlu2 %814  ;;  %v5912_v17 = vpop.permute.xlu1 %764 }
  0xf6   : > { %4689 = vtanh.f32 %v2115_v12  ;;  %v5918_v23 = vpop.permute.xlu0 %759  ;;  %v497_v12 = vld [vmem:[%s5514_s11 + $0x2e0] sm:$0xff] }
  0xf8   : > { %v5937_v11 = vpop.f32.mrf.mxu3 }
  0xf9   : > { %v1757_v30 = vpop.f32.mrf.mxu0  ;;  %7658 = vst [vmem:[#allocation14_spill] sm:$0xff] %v5937_v11 }
  0xfa   : > { %v1758_v50 = vadd.f32 %v1757_v30, %v1201_v21  ;;  %v496_v21 = vld [vmem:[%s5514_s11 + $0x2d8] sm:$0xff]  ;;  %v307_v30 = vld [vmem:[%s5523_s14 + $0xf0] sm:$0xff] }
  0xfb   : > { %994 = vperm.xlu2 %4661, %v494_v52   ;;  %989 = vperm.xlu1 %4660, %v493_v26   ;;  %v495_v26 = vld [vmem:[%s5514_s11 + $0x2d0] sm:$0xff] }
  0xfc   : > { %v4690_v57 = vpop.eup %4689  ;;  %v2116_v16 = vadd.f32 %v5677_v40, %v1758_v50  ;;  %984 = vperm.xlu0 %4659, %v492_v27   ;;  %4409 = vmatmul.msk.f32.gmra.mxu0 %vm1316_vm0, %v306_v43  ;;  %v372_v43 = vld [vmem:[%s5523_s14 + $0x2f8] sm:$0xff] }
  0xfd   : > { %4474 = vmatmul.msk.f32.gmra.mxu3 %vm1316_vm0, %v371_v1  ;;  %4520 = vmatmul.msk.f32.gmra.mxu1 %vm2363_vm1, %v4690_v57  ;;  %v5929_v59 = vpop.permute.xlu2 %829  ;;  %v5931_v60 = vpop.permute.xlu1 %779 }
  0xfe   : > { %4691 = vtanh.f32 %v2116_v16  ;;  %v5935_v0 = vpop.permute.xlu0 %774  ;;  %v1203_v16 = vmul.f32 %v5666_v34, %v5747_v35 }
 0x101   : > { %v1760_v52 = vpop.f32.mrf.mxu0 }
 0x102   : > { %v1761_v27 = vadd.f32 %v1760_v52, %v1202_v61 }
 0x103   : > { %1009 = vperm.xlu2 %4661, %v497_v12   ;;  %1004 = vperm.xlu1 %4660, %v496_v21   ;;  %v500_v12 = vld [vmem:[%s5514_s11 + $0x2f8] sm:$0xff]  ;;  %v499_v21 = vld [vmem:[%s5514_s11 + $0x2f0] sm:$0xff] }
 0x104   : > { %v4692_v50 = vpop.eup %4691  ;;  %v2117_v36 = vadd.f32 %v5677_v40, %v1761_v27  ;;  %999 = vperm.xlu0 %4659, %v495_v26   ;;  %4410 = vmatmul.msk.f32.gmra.mxu0 %vm1316_vm0, %v307_v30  ;;  %v498_v26 = vld [vmem:[%s5514_s11 + $0x2e8] sm:$0xff]  ;;  %v308_v27 = vld [vmem:[%s5523_s14 + $0xf8] sm:$0xff]  ;;  %v5960_v30 = vpop.f32.mrf.mxu3 }
 0x105   : > { %4475 = vmatmul.msk.f32.gmra.mxu3 %vm1316_vm0, %v372_v43  ;;  %4521 = vmatmul.msk.f32.gmra.mxu1 %vm2363_vm1, %v4692_v50  ;;  %v5948_v1 = vpop.permute.xlu2 %844  ;;  %v5950_v57 = vpop.permute.xlu1 %794  ;;  %7659 = vst [vmem:[#allocation15_spill] sm:$0xff] %v5960_v30  ;;  %v373_v50 = vld [vmem:[%s5523_s14 + $0x300] sm:$0xff] }
 0x106   : > { %4693 = vtanh.f32 %v2117_v36  ;;  %v5954_v61 = vpop.permute.xlu0 %789 }
 0x109   : > { %v1763_v52 = vpop.f32.mrf.mxu0 }
 0x10a   : > { %v1764_v43 = vadd.f32 %v1763_v52, %v1203_v16  ;;  %v503_v52 = vld [vmem:[%s5514_s11 + $0x310] sm:$0xff] }
 0x10b   : > { %1024 = vperm.xlu2 %4661, %v500_v12   ;;  %1019 = vperm.xlu1 %4660, %v499_v21   ;;  %v1204_v12 = vmul.f32 %v5666_v34, %v5743_v32 }
 0x10c   : > { %v4694_v11 = vpop.eup %4693  ;;  %v2118_v35 = vadd.f32 %v5677_v40, %v1764_v43  ;;  %1014 = vperm.xlu0 %4659, %v498_v26   ;;  %4411 = vmatmul.msk.f32.gmra.mxu0 %vm1316_vm0, %v308_v27  ;;  %v502_v43 = vld [vmem:[%s5514_s11 + $0x308] sm:$0xff]  ;;  %v501_v26 = vld [vmem:[%s5514_s11 + $0x300] sm:$0xff]  ;;  %v5980_v33 = vpop.f32.mrf.mxu3 }
 0x10d   : > { %4476 = vmatmul.msk.f32.gmra.mxu3 %vm1316_vm0, %v373_v50  ;;  %4522 = vmatmul.msk.f32.gmra.mxu1 %vm2363_vm1, %v4694_v11  ;;  %v5967_v36 = vpop.permute.xlu2 %859  ;;  %v5969_v16 = vpop.permute.xlu1 %809  ;;  %v374_v50 = vld [vmem:[%s5523_s14 + $0x308] sm:$0xff]  ;;  %7660 = vst [vmem:[#allocation16_spill] sm:$0xff] %v5980_v33  ;;  %v504_v33 = vld [vmem:[%s5514_s11 + $0x318] sm:$0xff] }
 0x10e   : > { %4695 = vtanh.f32 %v2118_v35  ;;  %v5973_v21 = vpop.permute.xlu0 %804 }
 0x111   : > { %v1766_v30 = vpop.f32.mrf.mxu0 }
 0x112   : > { %v1767_v27 = vadd.f32 %v1766_v30, %v1204_v12  ;;  %v1205_v12 = vmul.f32 %v5666_v34, %v5687_v49 }
 0x113   : > { %1039 = vperm.xlu2 %4661, %v503_v52   ;;  %1034 = vperm.xlu1 %4660, %v502_v43   ;;  %v506_v43 = vld [vmem:[%s5514_s11 + $0x328] sm:$0xff] }
 0x114   : > { %v4696_v11 = vpop.eup %4695  ;;  %v2119_v32 = vadd.f32 %v5677_v40, %v1767_v27  ;;  %1029 = vperm.xlu0 %4659, %v501_v26   ;;  %4412 = vmatmul.msk.f32.gmra.mxu0 %vm1316_vm0, %v309_v22  ;;  %v505_v27 = vld [vmem:[%s5514_s11 + $0x320] sm:$0xff] }
 0x115   : > { %4477 = vmatmul.msk.f32.gmra.mxu3 %vm1316_vm0, %v374_v50  ;;  %4523 = vmatmul.msk.f32.gmra.mxu1 %vm2363_vm1, %v4696_v11  ;;  %v5986_v30 = vpop.permute.xlu2 %874  ;;  %v5988_v35 = vpop.permute.xlu1 %824  ;;  %v375_v50 = vld [vmem:[%s5523_s14 + $0x310] sm:$0xff] }
 0x116   : > { %7661 = vst [vmem:[#allocation17_spill] sm:$0xff] %v5986_v30  ;;  %4697 = vtanh.f32 %v2119_v32  ;;  %v5992_v52 = vpop.permute.xlu0 %819 }
 0x119   : > { %v1769_v26 = vpop.f32.mrf.mxu0 }
 0x11a   : > { %v1770_v22 = vadd.f32 %v1769_v26, %v1205_v12  ;;  %v5998_v14 = vpop.f32.mrf.mxu1 }
 0x11b   : > { %1054 = vperm.xlu2 %4661, %v506_v43   ;;  %1049 = vperm.xlu1 %4660, %v505_v27   ;;  %v1206_v43 = vmul.f32 %v5666_v34, %v5766_v54  ;;  %v6011_v27 = vpop.f32.mrf.mxu3 }
 0x11c   : > { %v4698_v11 = vpop.eup %4697  ;;  %v2120_v49 = vadd.f32 %v5677_v40, %v1770_v22  ;;  %1044 = vperm.xlu0 %4659, %v504_v33   ;;  %4413 = vmatmul.msk.f32.gmra.mxu0 %vm1316_vm0, %v310_v58  ;;  %7663 = vst [vmem:[#allocation19_spill] sm:$0xff] %v6011_v27  ;;  %v509_v33 = vld [vmem:[%s5514_s11 + $0x340] sm:$0xff]  ;;  %v508_v22 = vld [vmem:[%s5514_s11 + $0x338] sm:$0xff] }
 0x11d   : > { %4478 = vmatmul.msk.f32.gmra.mxu3 %vm1316_vm0, %v375_v50  ;;  %4524 = vmatmul.msk.f32.gmra.mxu1 %vm2363_vm1, %v4698_v11  ;;  %v6005_v32 = vpop.permute.xlu2 %889  ;;  %v6007_v12 = vpop.permute.xlu1 %839  ;;  %v376_v11 = vld [vmem:[%s5523_s14 + $0x318] sm:$0xff] }
 0x11e   : > { %7662 = vst [vmem:[#allocation18_spill] sm:$0xff] %v6005_v32  ;;  %4699 = vtanh.f32 %v2120_v49  ;;  %v6013_v26 = vpop.permute.xlu0 %834  ;;  %v513_v32 = vld [vmem:[%s5514_s11 + $0x360] sm:$0xff] }
 0x121   : > { %v1772_v58 = vpop.f32.mrf.mxu0 }
 0x122   : > { %v1773_v50 = vadd.f32 %v1772_v58, %v1206_v43  ;;  %v6019_v9 = vpop.f32.mrf.mxu1 }
 0x123   : > { %1069 = vperm.xlu2 %4661, %v509_v33   ;;  %1064 = vperm.xlu1 %4660, %v508_v22   ;;  %v1207_v33 = vmul.f32 %v5666_v34, %v5762_v48  ;;  %v6034_v27 = vpop.f32.mrf.mxu3 }
 0x124   : > { %v4700_v54 = vpop.eup %4699  ;;  %v2121_v49 = vadd.f32 %v5677_v40, %v1773_v50  ;;  %1059 = vperm.xlu0 %4659, %v507_v56   ;;  %4414 = vmatmul.msk.f32.gmra.mxu0 %vm1316_vm0, %v311_v29  ;;  %7665 = vst [vmem:[#allocation21_spill] sm:$0xff] %v6034_v27  ;;  %v512_v56 = vld [vmem:[%s5514_s11 + $0x358] sm:$0xff]  ;;  %v511_v50 = vld [vmem:[%s5514_s11 + $0x350] sm:$0xff] }
 0x125   : > { %4479 = vmatmul.msk.f32.gmra.mxu3 %vm1316_vm0, %v376_v11  ;;  %4525 = vmatmul.msk.f32.gmra.mxu1 %vm2363_vm1, %v4700_v54  ;;  %v6026_v43 = vpop.permute.xlu2 %904  ;;  %v6028_v58 = vpop.permute.xlu1 %854  ;;  %v515_v27 = vld [vmem:[%s5514_s11 + $0x370] sm:$0xff] }
 0x126   : > { %7664 = vst [vmem:[#allocation20_spill] sm:$0xff] %v6026_v43  ;;  %4701 = vtanh.f32 %v2121_v49  ;;  %v6032_v22 = vpop.permute.xlu0 %849  ;;  %v377_v43 = vld [vmem:[%s5523_s14 + $0x320] sm:$0xff] }
 0x129   : > { %v1775_v29 = vpop.f32.mrf.mxu0 }
 0x12a   : > { %v1776_v11 = vadd.f32 %v1775_v29, %v1207_v33  ;;  %v6040_v54 = vpop.f32.mrf.mxu1 }
 0x12b   : > { %1084 = vperm.xlu2 %4661, %v512_v56   ;;  %1079 = vperm.xlu1 %4660, %v511_v50   ;;  %v1208_v56 = vmul.f32 %v5666_v34, %v5705_v63  ;;  %v6059_v19 = vpop.f32.mrf.mxu3 }
 0x12c   : > { %v4702_v48 = vpop.eup %4701  ;;  %v2122_v49 = vadd.f32 %v5677_v40, %v1776_v11  ;;  %1074 = vperm.xlu0 %4659, %v510_v55   ;;  %4415 = vmatmul.msk.f32.gmra.mxu0 %vm1316_vm0, %v312_v37  ;;  %v514_v11 = vld [vmem:[%s5514_s11 + $0x368] sm:$0xff]  ;;  %v313_v37 = vld [vmem:[%s5523_s14 + $0x120] sm:$0xff]  ;;  %7668 = vst [vmem:[#allocation24_spill] sm:$0xff] %v6059_v19 }
 0x12d   : > { %4480 = vmatmul.msk.f32.gmra.mxu3 %vm1316_vm0, %v377_v43  ;;  %4526 = vmatmul.msk.f32.gmra.mxu1 %vm2363_vm1, %v4702_v48  ;;  %v6047_v33 = vpop.permute.xlu2 %919  ;;  %v6049_v29 = vpop.permute.xlu1 %869  ;;  %v518_v19 = vld [vmem:[%s5514_s11 + $0x388] sm:$0xff] }
 0x12e   : > { %7666 = vst [vmem:[#allocation22_spill] sm:$0xff] %v6047_v33  ;;  %4703 = vtanh.f32 %v2122_v49  ;;  %v6053_v50 = vpop.permute.xlu0 %864  ;;  %v378_v33 = vld [vmem:[%s5523_s14 + $0x328] sm:$0xff] }
 0x12f   : > { %7667 = vst [vmem:[#allocation23_spill] sm:$0xff] %v6049_v29 }
 0x131   : > { %v1778_v55 = vpop.f32.mrf.mxu0 }
 0x132   : > { %v1779_v43 = vadd.f32 %v1778_v55, %v1208_v56  ;;  %v6061_v48 = vpop.f32.mrf.mxu1 }
 0x133   : > { %1099 = vperm.xlu2 %4661, %v515_v27   ;;  %1094 = vperm.xlu1 %4660, %v514_v11   ;;  %v1209_v27 = vmul.f32 %v5666_v34, %v5785_v8  ;;  %v6083_v8 = vpop.f32.mrf.mxu3 }
 0x134   : > { %v4704_v63 = vpop.eup %4703  ;;  %v2123_v49 = vadd.f32 %v5677_v40, %v1779_v43  ;;  %1089 = vperm.xlu0 %4659, %v513_v32   ;;  %4416 = vmatmul.msk.f32.gmra.mxu0 %vm1316_vm0, %v313_v37  ;;  %v517_v43 = vld [vmem:[%s5514_s11 + $0x380] sm:$0xff]  ;;  %7672 = vst [vmem:[#allocation28_spill] sm:$0xff] %v6083_v8 }
 0x135   : > { %4481 = vmatmul.msk.f32.gmra.mxu3 %vm1316_vm0, %v378_v33  ;;  %4527 = vmatmul.msk.f32.gmra.mxu1 %vm2363_vm1, %v4704_v63  ;;  %v6068_v56 = vpop.permute.xlu2 %934  ;;  %v6070_v55 = vpop.permute.xlu1 %884  ;;  %v379_v33 = vld [vmem:[%s5523_s14 + $0x330] sm:$0xff]  ;;  %v521_v8 = vld [vmem:[%s5514_s11 + $0x3a0] sm:$0xff] }
 0x136   : > { %7669 = vst [vmem:[#allocation25_spill] sm:$0xff] %v6068_v56  ;;  %4705 = vtanh.f32 %v2123_v49  ;;  %v6074_v11 = vpop.permute.xlu0 %879  ;;  %v519_v56 = vld [vmem:[%s5514_s11 + $0x390] sm:$0xff] }
 0x137   : > { %7670 = vst [vmem:[#allocation26_spill] sm:$0xff] %v6070_v55  ;;  %v315_v55 = vld [vmem:[%s5523_s14 + $0x130] sm:$0xff] }
 0x138   : > { %7671 = vst [vmem:[#allocation27_spill] sm:$0xff] %v6074_v11 }
 0x139   : > { %v1781_v32 = vpop.f32.mrf.mxu0 }
 0x13a   : > { %v1782_v37 = vadd.f32 %v1781_v32, %v1209_v27  ;;  %v6080_v30 = vpop.f32.mrf.mxu1 }
 0x13b   : > { %1114 = vperm.xlu2 %4661, %v518_v19   ;;  %1109 = vperm.xlu1 %4660, %v517_v43   ;;  %v1210_v19 = vmul.f32 %v5666_v34, %v5781_v6 }
 0x13c   : > { %v4706_v63 = vpop.eup %4705  ;;  %v2124_v49 = vadd.f32 %v5677_v40, %v1782_v37  ;;  %1104 = vperm.xlu0 %4659, %v516_v4   ;;  %4417 = vmatmul.msk.f32.gmra.mxu0 %vm1316_vm0, %v314_v53  ;;  %v520_v37 = vld [vmem:[%s5514_s11 + $0x398] sm:$0xff] }
 0x13d   : > { %4482 = vmatmul.msk.f32.gmra.mxu3 %vm1316_vm0, %v379_v33  ;;  %4528 = vmatmul.msk.f32.gmra.mxu1 %vm2363_vm1, %v4706_v63  ;;  %v6089_v27 = vpop.permute.xlu2 %949  ;;  %v6091_v32 = vpop.permute.xlu1 %899  ;;  %v380_v33 = vld [vmem:[%s5523_s14 + $0x338] sm:$0xff] }
 0x13e   : > { %7673 = vst [vmem:[#allocation29_spill] sm:$0xff] %v6089_v27  ;;  %v6095_v43 = vpop.permute.xlu0 %894  ;;  %4707 = vtanh.f32 %v2124_v49  ;;  %v522_v27 = vld [vmem:[%s5514_s11 + $0x3a8] sm:$0xff] }
 0x13f   : > { %7674 = vst [vmem:[#allocation30_spill] sm:$0xff] %v6091_v32  ;;  %v316_v32 = vld [vmem:[%s5523_s14 + $0x138] sm:$0xff] }
 0x140   : > { %7675 = vst [vmem:[#allocation31_spill] sm:$0xff] %v6095_v43 }
 0x141   : > { %v1784_v4 = vpop.f32.mrf.mxu0 }
 0x142   : > { %v1785_v53 = vadd.f32 %v1784_v4, %v1210_v19  ;;  %v6101_v11 = vpop.f32.mrf.mxu1  ;;  %v1211_v4 = vmul.f32 %v5666_v34, %v5723_v15 }
 0x143   : > { %1129 = vperm.xlu2 %4661, %v521_v8   ;;  %1124 = vperm.xlu1 %4660, %v520_v37   ;;  %v6113_v8 = vpop.f32.mrf.mxu3 }
 0x144   : > { %v2125_v63 = vadd.f32 %v5677_v40, %v1785_v53  ;;  %1119 = vperm.xlu0 %4659, %v519_v56   ;;  %4418 = vmatmul.msk.f32.gmra.mxu0 %vm1316_vm0, %v315_v55  ;;  %v4708_v6 = vpop.eup %4707  ;;  %7678 = vst [vmem:[#allocation34_spill] sm:$0xff] %v6113_v8  ;;  %v524_v56 = vld [vmem:[%s5514_s11 + $0x3b8] sm:$0xff]  ;;  %v523_v55 = vld [vmem:[%s5514_s11 + $0x3b0] sm:$0xff] }
 0x145   : > { %4483 = vmatmul.msk.f32.gmra.mxu3 %vm1316_vm0, %v380_v33  ;;  %v6107_v49 = vpop.permute.xlu2 %964  ;;  %v6109_v19 = vpop.permute.xlu1 %914  ;;  %4529 = vmatmul.msk.f32.gmra.mxu1 %vm2363_vm1, %v4708_v6 }
 0x146   : > { %7676 = vst [vmem:[#allocation32_spill] sm:$0xff] %v6107_v49  ;;  %v6116_v37 = vpop.permute.xlu0 %909  ;;  %4709 = vtanh.f32 %v2125_v63  ;;  %v381_v49 = vld [vmem:[%s5523_s14 + $0x340] sm:$0xff] }
 0x147   : > { %7677 = vst [vmem:[#allocation33_spill] sm:$0xff] %v6109_v19  ;;  %v5179_v19 = vld [vmem:[%s5514_s11] sm:$0xff] }
 0x148   : > { %7679 = vst [vmem:[#allocation35_spill] sm:$0xff] %v6116_v37 }
 0x149   : > { %v1787_v53 = vpop.f32.mrf.mxu0 }
 0x14a   : > { %v1788_v33 = vadd.f32 %v1787_v53, %v1211_v4  ;;  %v6122_v43 = vpop.f32.mrf.mxu1  ;;  %v6135_v4 = vld [vmem:[%s7642_s3] ss:$0 sm:$0xff] }
 0x14b   : > { %1144 = vperm.xlu2 %4661, %v524_v56   ;;  %1139 = vperm.xlu1 %4660, %v523_v55   ;;  %v526_v56 = vld [vmem:[%s5514_s11 + $0x3c8] sm:$0xff]  ;;  %v525_v53 = vld [vmem:[%s5514_s11 + $0x3c0] sm:$0xff] }
 0x14c   : > { %v2126_v34 = vadd.f32 %v5677_v40, %v1788_v33  ;;  %1134 = vperm.xlu0 %4659, %v522_v27   ;;  %4419 = vmatmul.msk.f32.gmra.mxu0 %vm1316_vm0, %v316_v32  ;;  %v4710_v15 = vpop.eup %4709  ;;  %v1212_v40 = vmul.f32 %v6135_v4, %v5804_v28  ;;  %v6142_v32 = vpop.f32.mrf.mxu3  ;;  %v317_v33 = vld [vmem:[%s5523_s14 + $0x140] sm:$0xff] }
 0x14d   : > { %4484 = vmatmul.msk.f32.gmra.mxu3 %vm1316_vm0, %v381_v49  ;;  %v6128_v63 = vpop.permute.xlu2 %979  ;;  %v6130_v6 = vpop.permute.xlu1 %929  ;;  %4530 = vmatmul.msk.f32.gmra.mxu1 %vm2363_vm1, %v4710_v15  ;;  %7683 = vst [vmem:[#allocation39_spill] sm:$0xff] %v6142_v32  ;;  %v527_v49 = vld [vmem:[%s5514_s11 + $0x3d0] sm:$0xff]  ;;  %v6154_v28 = vld [vmem:[%s7642_s3 + $0x1] ss:$0 sm:$0xff] }
 0x14e   : > { %7680 = vst [vmem:[#allocation36_spill] sm:$0xff] %v6128_v63  ;;  %v6140_v27 = vpop.permute.xlu0 %924  ;;  %4711 = vtanh.f32 %v2126_v34 }
 0x14f   : > { %7681 = vst [vmem:[#allocation37_spill] sm:$0xff] %v6130_v6  ;;  %v382_v6 = vld [vmem:[%s5523_s14 + $0x348] sm:$0xff] }
 0x150   : > { %7682 = vst [vmem:[#allocation38_spill] sm:$0xff] %v6140_v27  ;;  %v318_v27 = vld [vmem:[%s5523_s14 + $0x148] sm:$0xff] }
 0x151   : > { %v1790_v55 = vpop.f32.mrf.mxu0 }
 0x152   : > { %v1791_v63 = vadd.f32 %v1790_v55, %v1212_v40  ;;  %v6148_v8 = vpop.f32.mrf.mxu1 }
 0x153   : > { %1159 = vperm.xlu2 %4661, %v527_v49   ;;  %1154 = vperm.xlu1 %4660, %v526_v56   ;;  %v1213_v56 = vmul.f32 %v6135_v4, %v5800_v25 }
 0x154   : > { %v2127_v34 = vadd.f32 %v6154_v28, %v1791_v63  ;;  %1149 = vperm.xlu0 %4659, %v525_v53   ;;  %4420 = vmatmul.msk.f32.gmra.mxu0 %vm1316_vm0, %v317_v33  ;;  %v4712_v15 = vpop.eup %4711  ;;  %v530_v63 = vld [vmem:[%s5514_s11 + $0x3e8] sm:$0xff]  ;;  %v529_v53 = vld [vmem:[%s5514_s11 + $0x3e0] sm:$0xff]  ;;  %v528_v33 = vld [vmem:[%s5514_s11 + $0x3d8] sm:$0xff] }
 0x155   : > { %4485 = vmatmul.msk.f32.gmra.mxu3 %vm1316_vm0, %v382_v6  ;;  %v6159_v40 = vpop.permute.xlu2 %994  ;;  %v6161_v49 = vpop.permute.xlu1 %944  ;;  %4531 = vmatmul.msk.f32.gmra.mxu1 %vm2363_vm1, %v4712_v15  ;;  %v1214_v15 = vmul.f32 %v6135_v4, %v5741_v31  ;;  %v5182_v31 = vld [vmem:[%s5514_s11 + $0x8] sm:$0xff] }
 0x156   : > { %7684 = vst [vmem:[#allocation40_spill] sm:$0xff] %v6159_v40  ;;  %v6166_v55 = vpop.permute.xlu0 %939  ;;  %4713 = vtanh.f32 %v2127_v34  ;;  %v6173_v6 = vpop.f32.mrf.mxu3 }
 0x157   : > { %7685 = vst [vmem:[#allocation41_spill] sm:$0xff] %v6161_v49  ;;  %4715 = vtanh.f32 %v5179_v19  ;;  %v383_v49 = vld [vmem:[%s5523_s14 + $0x350] sm:$0xff] }
 0x158   : > { %7686 = vst [vmem:[#allocation42_spill] sm:$0xff] %v6166_v55  ;;  %v384_v55 = vld [vmem:[%s5523_s14 + $0x358] sm:$0xff] }
 0x159   : > { %v1793_v32 = vpop.f32.mrf.mxu0  ;;  %7687 = vst [vmem:[#allocation43_spill] sm:$0xff] %v6173_v6 }
 0x15a   : > { %v1794_v40 = vadd.f32 %v1793_v32, %v1213_v56  ;;  %v6175_v37 = vpop.f32.mrf.mxu1 }
 0x15b   : > { %1174 = vperm.xlu2 %4661, %v530_v63   ;;  %1169 = vperm.xlu1 %4660, %v529_v53   ;;  %v5180_v63 = vld [vmem:[%s5514_s11 + $0x10] sm:$0xff] }
 0x15c   : > { %v2128_v25 = vadd.f32 %v6154_v28, %v1794_v40  ;;  %1164 = vperm.xlu0 %4659, %v528_v33   ;;  %4421 = vmatmul.msk.f32.gmra.mxu0 %vm1316_vm0, %v318_v27  ;;  %v4714_v34 = vpop.eup %4713  ;;  %v532_v27 = vld [vmem:[%s5514_s11 + $0x3f8] sm:$0xff]  ;;  %v319_v33 = vld [vmem:[%s5523_s14 + $0x150] sm:$0xff] }
 0x15d   : > { %4486 = vmatmul.msk.f32.gmra.mxu3 %vm1316_vm0, %v383_v49  ;;  %v6181_v19 = vpop.permute.xlu2 %1009  ;;  %v6183_v32 = vpop.permute.xlu1 %959  ;;  %4532 = vmatmul.msk.f32.gmra.mxu1 %vm2363_vm1, %v4714_v34  ;;  %v531_v49 = vld [vmem:[%s5514_s11 + $0x3f0] sm:$0xff] }
 0x15e   : > { %7688 = vst [vmem:[#allocation44_spill] sm:$0xff] %v6181_v19  ;;  %v6188_v40 = vpop.permute.xlu0 %954  ;;  %4717 = vtanh.f32 %v2128_v25  ;;  %v4716_v56 = vpop.eup %4715  ;;  %v5181_v19 = vld [vmem:[%s5514_s11 + $0x18] sm:$0xff] }
 0x15f   : > { %7689 = vst [vmem:[#allocation45_spill] sm:$0xff] %v6183_v32  ;;  %4719 = vtanh.f32 %v5180_v63  ;;  %v6199_v34 = vpop.f32.mrf.mxu3 }
 0x160   : > { %7690 = vst [vmem:[#allocation46_spill] sm:$0xff] %v6188_v40  ;;  %4721 = vtanh.f32 %v5181_v19  ;;  %v385_v40 = vld [vmem:[%s5523_s14 + $0x360] sm:$0xff] }
 0x161   : > { %v1796_v53 = vpop.f32.mrf.mxu0  ;;  %4723 = vtanh.f32 %v5182_v31  ;;  %7691 = vst [vmem:[#allocation47_spill] sm:$0xff] %v6199_v34  ;;  %v320_v31 = vld [vmem:[%s5523_s14 + $0x158] sm:$0xff] }
 0x162   : > { %v1797_v6 = vadd.f32 %v1796_v53, %v1214_v15  ;;  %v6195_v32 = vpop.f32.mrf.mxu1 }
 0x163   : > { %1184 = vperm.xlu1 %4660, %v532_v27   ;;  %3279 = vperm.xlu2 %4661, %v4716_v56   ;;  %v1215_v56 = vmul.f32 %v6135_v4, %v5823_v51  ;;  %v5185_v51 = vld [vmem:[%s5514_s11 + $0x20] sm:$0xff] }
 0x164   : > { %v2129_v25 = vadd.f32 %v6154_v28, %v1797_v6  ;;  %1179 = vperm.xlu0 %4659, %v531_v49   ;;  %4422 = vmatmul.msk.f32.gmra.mxu0 %vm1316_vm0, %v319_v33  ;;  %v4718_v63 = vpop.eup %4717  ;;  %v5183_v33 = vld [vmem:[%s5514_s11 + $0x28] sm:$0xff] }
 0x165   : > { %4487 = vmatmul.msk.f32.gmra.mxu3 %vm1316_vm0, %v384_v55  ;;  %v6204_v19 = vpop.permute.xlu2 %1024  ;;  %v6206_v15 = vpop.permute.xlu1 %974  ;;  %4533 = vmatmul.msk.f32.gmra.mxu1 %vm2363_vm1, %v4718_v63 }
 0x166   : > { %7692 = vst [vmem:[#allocation48_spill] sm:$0xff] %v6204_v19  ;;  %4725 = vtanh.f32 %v2129_v25  ;;  %v6211_v6 = vpop.permute.xlu0 %969  ;;  %v4720_v27 = vpop.eup %4719  ;;  %v5184_v19 = vld [vmem:[%s5514_s11 + $0x30] sm:$0xff] }
 0x167   : > { %7693 = vst [vmem:[#allocation49_spill] sm:$0xff] %v6206_v15  ;;  %v4722_v53 = vpop.eup %4721  ;;  %4727 = vtanh.f32 %v5183_v33  ;;  %v1216_v33 = vmul.f32 %v6135_v4, %v5819_v46 }
 0x168   : > { %7694 = vst [vmem:[#allocation50_spill] sm:$0xff] %v6211_v6  ;;  %v4724_v49 = vpop.eup %4723  ;;  %4729 = vtanh.f32 %v5184_v19  ;;  %v386_v6 = vld [vmem:[%s5523_s14 + $0x368] sm:$0xff] }
 0x169   : > { %v1799_v55 = vpop.f32.mrf.mxu0  ;;  %4731 = vtanh.f32 %v5185_v51  ;;  %v321_v51 = vld [vmem:[%s5523_s14 + $0x160] sm:$0xff] }
 0x16a   : > { %v1800_v34 = vadd.f32 %v1799_v55, %v1215_v56  ;;  %v6216_v15 = vpop.f32.mrf.mxu1 }
 0x16b   : > { %3289 = vperm.xlu1 %4660, %v4720_v27   ;;  %3294 = vperm.xlu2 %4661, %v4722_v53   ;;  %v6229_v27 = vpop.f32.mrf.mxu3 }
 0x16c   : > { %v4726_v25 = vpop.eup %4725  ;;  %v2130_v63 = vadd.f32 %v6154_v28, %v1800_v34  ;;  %3284 = vperm.xlu0 %4659, %v4724_v49   ;;  %4423 = vmatmul.msk.f32.gmra.mxu0 %vm1316_vm0, %v320_v31  ;;  %7697 = vst [vmem:[#allocation53_spill] sm:$0xff] %v6229_v27  ;;  %v5188_v27 = vld [vmem:[%s5514_s11 + $0x38] sm:$0xff] }
 0x16d   : > { %4488 = vmatmul.msk.f32.gmra.mxu3 %vm1316_vm0, %v385_v40  ;;  %v6223_v19 = vpop.permute.xlu2 %1039  ;;  %v6225_v56 = vpop.permute.xlu1 %989  ;;  %4534 = vmatmul.msk.f32.gmra.mxu1 %vm2363_vm1, %v4726_v25  ;;  %v5186_v40 = vld [vmem:[%s5514_s11 + $0x40] sm:$0xff] }
 0x16e   : > { %7695 = vst [vmem:[#allocation51_spill] sm:$0xff] %v6223_v19  ;;  %4733 = vtanh.f32 %v2130_v63  ;;  %v6232_v34 = vpop.permute.xlu0 %984  ;;  %v4728_v53 = vpop.eup %4727  ;;  %v5187_v19 = vld [vmem:[%s5514_s11 + $0x48] sm:$0xff] }
 0x16f   : > { %7696 = vst [vmem:[#allocation52_spill] sm:$0xff] %v6225_v56  ;;  %v4730_v49 = vpop.eup %4729  ;;  %4735 = vtanh.f32 %v5186_v40 }
 0x170   : > { %7698 = vst [vmem:[#allocation54_spill] sm:$0xff] %v6232_v34  ;;  %v4732_v55 = vpop.eup %4731  ;;  %4737 = vtanh.f32 %v5187_v19  ;;  %v387_v34 = vld [vmem:[%s5523_s14 + $0x370] sm:$0xff] }
 0x171   : > { %v1802_v31 = vpop.f32.mrf.mxu0  ;;  %4739 = vtanh.f32 %v5188_v27  ;;  %v1217_v27 = vmul.f32 %v6135_v4, %v5760_v47 }
 0x172   : > { %v1803_v56 = vadd.f32 %v1802_v31, %v1216_v33  ;;  %v6237_v46 = vpop.f32.mrf.mxu1 }
 0x173   : > { %3304 = vperm.xlu1 %4660, %v4728_v53   ;;  %3309 = vperm.xlu2 %4661, %v4730_v49  }
 0x174   : > { %v4734_v25 = vpop.eup %4733  ;;  %v2131_v63 = vadd.f32 %v6154_v28, %v1803_v56  ;;  %3299 = vperm.xlu0 %4659, %v4732_v55   ;;  %4424 = vmatmul.msk.f32.gmra.mxu0 %vm1316_vm0, %v321_v51  ;;  %v6253_v55 = vpop.f32.mrf.mxu3  ;;  %v322_v51 = vld [vmem:[%s5523_s14 + $0x168] sm:$0xff] }
 0x175   : > { %4489 = vmatmul.msk.f32.gmra.mxu3 %vm1316_vm0, %v386_v6  ;;  %v6244_v19 = vpop.permute.xlu2 %1054  ;;  %v6246_v33 = vpop.permute.xlu1 %1004  ;;  %4535 = vmatmul.msk.f32.gmra.mxu1 %vm2363_vm1, %v4734_v25  ;;  %7702 = vst [vmem:[#allocation58_spill] sm:$0xff] %v6253_v55  ;;  %v5189_v6 = vld [vmem:[%s5514_s11 + $0x58] sm:$0xff]  ;;  %v5191_v25 = vld [vmem:[%s5514_s11 + $0x50] sm:$0xff]  ;;  %v5194_v55 = vld [vmem:[%s5514_s11 + $0x68] sm:$0xff] }
 0x176   : > { %7699 = vst [vmem:[#allocation55_spill] sm:$0xff] %v6244_v19  ;;  %v6251_v53 = vpop.permute.xlu0 %999  ;;  %v4736_v56 = vpop.eup %4735  ;;  %4741 = vtanh.f32 %v2131_v63  ;;  %v5190_v19 = vld [vmem:[%s5514_s11 + $0x60] sm:$0xff] }
 0x177   : > { %7700 = vst [vmem:[#allocation56_spill] sm:$0xff] %v6246_v33  ;;  %v4738_v49 = vpop.eup %4737  ;;  %4743 = vtanh.f32 %v5189_v6 }
 0x178   : > { %7701 = vst [vmem:[#allocation57_spill] sm:$0xff] %v6251_v53  ;;  %v4740_v40 = vpop.eup %4739  ;;  %4745 = vtanh.f32 %v5190_v19 }
 0x179   : > { %v1805_v31 = vpop.f32.mrf.mxu0  ;;  %4747 = vtanh.f32 %v5191_v25  ;;  %v323_v25 = vld [vmem:[%s5523_s14 + $0x170] sm:$0xff] }
 0x17a   : > { %v1806_v33 = vadd.f32 %v1805_v31, %v1217_v27  ;;  %v6258_v47 = vpop.f32.mrf.mxu1  ;;  %v1218_v31 = vmul.f32 %v6135_v4, %v5842_v13 }
 0x17b   : > { %3319 = vperm.xlu1 %4660, %v4736_v56   ;;  %3324 = vperm.xlu2 %4661, %v4738_v49  }
 0x17c   : > { %v2132_v63 = vadd.f32 %v6154_v28, %v1806_v33  ;;  %3314 = vperm.xlu0 %4659, %v4740_v40   ;;  %4425 = vmatmul.msk.f32.gmra.mxu0 %vm1316_vm0, %v322_v51  ;;  %v4742_v6 = vpop.eup %4741  ;;  %v5192_v51 = vld [vmem:[%s5514_s11 + $0x70] sm:$0xff] }
 0x17d   : > { %4490 = vmatmul.msk.f32.gmra.mxu3 %vm1316_vm0, %v387_v34  ;;  %v6265_v19 = vpop.permute.xlu2 %1069  ;;  %v6267_v27 = vpop.permute.xlu1 %1019  ;;  %4536 = vmatmul.msk.f32.gmra.mxu1 %vm2363_vm1, %v4742_v6 }
 0x17e   : > { %7703 = vst [vmem:[#allocation59_spill] sm:$0xff] %v6265_v19  ;;  %4749 = vtanh.f32 %v2132_v63  ;;  %v6272_v33 = vpop.permute.xlu0 %1014  ;;  %v4744_v56 = vpop.eup %4743  ;;  %v5193_v19 = vld [vmem:[%s5514_s11 + $0x78] sm:$0xff] }
 0x17f   : > { %7704 = vst [vmem:[#allocation60_spill] sm:$0xff] %v6267_v27  ;;  %v4746_v49 = vpop.eup %4745  ;;  %4751 = vtanh.f32 %v5192_v51  ;;  %v6277_v27 = vpop.f32.mrf.mxu3  ;;  %v388_v63 = vld [vmem:[%s5523_s14 + $0x378] sm:$0xff]  ;;  %v5195_v51 = vld [vmem:[%s5514_s11 + $0x88] sm:$0xff] }
 0x180   : > { %7705 = vst [vmem:[#allocation61_spill] sm:$0xff] %v6272_v33  ;;  %v4748_v40 = vpop.eup %4747  ;;  %4753 = vtanh.f32 %v5193_v19 }
 0x181   : > { %v1808_v34 = vpop.f32.mrf.mxu0  ;;  %7706 = vst [vmem:[#allocation62_spill] sm:$0xff] %v6277_v27  ;;  %4755 = vtanh.f32 %v5194_v55  ;;  %v1219_v55 = vmul.f32 %v6135_v4, %v5838_v10  ;;  %v389_v27 = vld [vmem:[%s5523_s14 + $0x380] sm:$0xff] }
 0x182   : > { %v1809_v53 = vadd.f32 %v1808_v34, %v1218_v31  ;;  %v6279_v13 = vpop.f32.mrf.mxu1  ;;  %v5197_v10 = vld [vmem:[%s5514_s11 + $0x80] sm:$0xff] }
 0x183   : > { %3334 = vperm.xlu1 %4660, %v4744_v56   ;;  %3339 = vperm.xlu2 %4661, %v4746_v49  }
 0x184   : > { %v4750_v6 = vpop.eup %4749  ;;  %v2133_v33 = vadd.f32 %v6154_v28, %v1809_v53  ;;  %3329 = vperm.xlu0 %4659, %v4748_v40   ;;  %4426 = vmatmul.msk.f32.gmra.mxu0 %vm1316_vm0, %v323_v25  ;;  %v324_v25 = vld [vmem:[%s5523_s14 + $0x178] sm:$0xff] }
 0x185   : > { %4491 = vmatmul.msk.f32.gmra.mxu3 %vm1316_vm0, %v388_v63  ;;  %v6286_v19 = vpop.permute.xlu2 %1084  ;;  %v6288_v31 = vpop.permute.xlu1 %1034  ;;  %4537 = vmatmul.msk.f32.gmra.mxu1 %vm2363_vm1, %v4750_v6  ;;  %v5196_v63 = vld [vmem:[%s5514_s11 + $0x90] sm:$0xff] }
 0x186   : > { %7707 = vst [vmem:[#allocation63_spill] sm:$0xff] %v6286_v19  ;;  %v6293_v56 = vpop.permute.xlu0 %1029  ;;  %v4752_v53 = vpop.eup %4751  ;;  %4757 = vtanh.f32 %v2133_v33 }
 0x187   : > { %7708 = vst [vmem:[#allocation64_spill] sm:$0xff] %v6288_v31  ;;  %v4754_v49 = vpop.eup %4753  ;;  %4759 = vtanh.f32 %v5195_v51  ;;  %v6302_v6 = vpop.f32.mrf.mxu3 }
 0x188   : > { %7709 = vst [vmem:[#allocation65_spill] sm:$0xff] %v6293_v56  ;;  %v4756_v40 = vpop.eup %4755  ;;  %4761 = vtanh.f32 %v5196_v63  ;;  %v5198_v63 = vld [vmem:[%s5514_s11 + $0xa0] sm:$0xff] }
 0x189   : > { %v1811_v34 = vpop.f32.mrf.mxu0  ;;  %4763 = vtanh.f32 %v5197_v10  ;;  %7710 = vst [vmem:[#allocation66_spill] sm:$0xff] %v6302_v6  ;;  %v325_v10 = vld [vmem:[%s5523_s14 + $0x180] sm:$0xff]  ;;  %v390_v6 = vld [vmem:[%s5523_s14 + $0x388] sm:$0xff] }
 0x18a   : > { %v1812_v19 = vadd.f32 %v1811_v34, %v1219_v55  ;;  %v6298_v31 = vpop.f32.mrf.mxu1 }
 0x18b   : > { %3349 = vperm.xlu1 %4660, %v4752_v53   ;;  %3354 = vperm.xlu2 %4661, %v4754_v49   ;;  %v1220_v53 = vmul.f32 %v6135_v4, %v5779_v5  ;;  %v5200_v5 = vld [vmem:[%s5514_s11 + $0x98] sm:$0xff] }
 0x18c   : > { %v2134_v33 = vadd.f32 %v6154_v28, %v1812_v19  ;;  %3344 = vperm.xlu0 %4659, %v4756_v40   ;;  %4427 = vmatmul.msk.f32.gmra.mxu0 %vm1316_vm0, %v324_v25  ;;  %v4758_v51 = vpop.eup %4757 }
 0x18d   : > { %4492 = vmatmul.msk.f32.gmra.mxu3 %vm1316_vm0, %v389_v27  ;;  %v6307_v55 = vpop.permute.xlu2 %1099  ;;  %v6309_v34 = vpop.permute.xlu1 %1049  ;;  %4538 = vmatmul.msk.f32.gmra.mxu1 %vm2363_vm1, %v4758_v51 }
 0x18e   : > { %7711 = vst [vmem:[#allocation67_spill] sm:$0xff] %v6307_v55  ;;  %4765 = vtanh.f32 %v2134_v33  ;;  %v6314_v19 = vpop.permute.xlu0 %1044  ;;  %v4760_v49 = vpop.eup %4759  ;;  %v5199_v55 = vld [vmem:[%s5514_s11 + $0xa8] sm:$0xff] }
 0x18f   : > { %7712 = vst [vmem:[#allocation68_spill] sm:$0xff] %v6309_v34  ;;  %v4762_v40 = vpop.eup %4761  ;;  %4767 = vtanh.f32 %v5198_v63  ;;  %v1221_v63 = vmul.f32 %v6135_v4, %v5861_v42 }
 0x190   : > { %7713 = vst [vmem:[#allocation69_spill] sm:$0xff] %v6314_v19  ;;  %v4764_v25 = vpop.eup %4763  ;;  %4769 = vtanh.f32 %v5199_v55  ;;  %v391_v19 = vld [vmem:[%s5523_s14 + $0x390] sm:$0xff] }
 0x191   : > { %v1814_v27 = vpop.f32.mrf.mxu0  ;;  %4771 = vtanh.f32 %v5200_v5  ;;  %v326_v5 = vld [vmem:[%s5523_s14 + $0x188] sm:$0xff] }
 0x192   : > { %v1815_v34 = vadd.f32 %v1814_v27, %v1220_v53  ;;  %v6319_v56 = vpop.f32.mrf.mxu1 }
 0x193   : > { %3364 = vperm.xlu1 %4660, %v4760_v49   ;;  %3369 = vperm.xlu2 %4661, %v4762_v40   ;;  %v6332_v49 = vpop.f32.mrf.mxu3 }
 0x194   : > { %v4766_v33 = vpop.eup %4765  ;;  %v2135_v51 = vadd.f32 %v6154_v28, %v1815_v34  ;;  %3359 = vperm.xlu0 %4659, %v4764_v25   ;;  %4428 = vmatmul.msk.f32.gmra.mxu0 %vm1316_vm0, %v325_v10  ;;  %7716 = vst [vmem:[#allocation72_spill] sm:$0xff] %v6332_v49  ;;  %v5203_v49 = vld [vmem:[%s5514_s11 + $0xb0] sm:$0xff] }
 0x195   : > { %4493 = vmatmul.msk.f32.gmra.mxu3 %vm1316_vm0, %v390_v6  ;;  %v6326_v55 = vpop.permute.xlu2 %1114  ;;  %v6328_v53 = vpop.permute.xlu1 %1064  ;;  %4539 = vmatmul.msk.f32.gmra.mxu1 %vm2363_vm1, %v4766_v33  ;;  %v5201_v6 = vld [vmem:[%s5514_s11 + $0xb8] sm:$0xff] }
 0x196   : > { %7714 = vst [vmem:[#allocation70_spill] sm:$0xff] %v6326_v55  ;;  %4773 = vtanh.f32 %v2135_v51  ;;  %v6335_v34 = vpop.permute.xlu0 %1059  ;;  %v4768_v40 = vpop.eup %4767  ;;  %v5202_v55 = vld [vmem:[%s5514_s11 + $0xc0] sm:$0xff] }
 0x197   : > { %7715 = vst [vmem:[#allocation71_spill] sm:$0xff] %v6328_v53  ;;  %v4770_v25 = vpop.eup %4769  ;;  %4775 = vtanh.f32 %v5201_v6 }
 0x198   : > { %7717 = vst [vmem:[#allocation73_spill] sm:$0xff] %v6335_v34  ;;  %v4772_v27 = vpop.eup %4771  ;;  %4777 = vtanh.f32 %v5202_v55  ;;  %v5206_v34 = vld [vmem:[%s5514_s11 + $0xc8] sm:$0xff] }
 0x199   : > { %v1817_v10 = vpop.f32.mrf.mxu0  ;;  %4779 = vtanh.f32 %v5203_v49  ;;  %v1222_v49 = vmul.f32 %v6135_v4, %v5857_v39 }
 0x19a   : > { %v1818_v53 = vadd.f32 %v1817_v10, %v1221_v63  ;;  %v6340_v42 = vpop.f32.mrf.mxu1 }
 0x19b   : > { %3379 = vperm.xlu1 %4660, %v4768_v40   ;;  %3384 = vperm.xlu2 %4661, %v4770_v25  }
 0x19c   : > { %v4774_v33 = vpop.eup %4773  ;;  %v2136_v51 = vadd.f32 %v6154_v28, %v1818_v53  ;;  %3374 = vperm.xlu0 %4659, %v4772_v27   ;;  %4429 = vmatmul.msk.f32.gmra.mxu0 %vm1316_vm0, %v326_v5  ;;  %v6356_v27 = vpop.f32.mrf.mxu3  ;;  %v327_v5 = vld [vmem:[%s5523_s14 + $0x190] sm:$0xff] }
 0x19d   : > { %4494 = vmatmul.msk.f32.gmra.mxu3 %vm1316_vm0, %v391_v19  ;;  %v6347_v55 = vpop.permute.xlu2 %1129  ;;  %v6349_v63 = vpop.permute.xlu1 %1079  ;;  %4540 = vmatmul.msk.f32.gmra.mxu1 %vm2363_vm1, %v4774_v33  ;;  %7721 = vst [vmem:[#allocation77_spill] sm:$0xff] %v6356_v27  ;;  %v5204_v19 = vld [vmem:[%s5514_s11 + $0xd0] sm:$0xff]  ;;  %v5209_v27 = vld [vmem:[%s5514_s11 + $0xe0] sm:$0xff] }
 0x19e   : > { %7718 = vst [vmem:[#allocation74_spill] sm:$0xff] %v6347_v55  ;;  %4781 = vtanh.f32 %v2136_v51  ;;  %v6354_v53 = vpop.permute.xlu0 %1074  ;;  %v4776_v40 = vpop.eup %4775  ;;  %v5205_v55 = vld [vmem:[%s5514_s11 + $0xd8] sm:$0xff] }
 0x19f   : > { %7719 = vst [vmem:[#allocation75_spill] sm:$0xff] %v6349_v63  ;;  %v4778_v25 = vpop.eup %4777  ;;  %4783 = vtanh.f32 %v5204_v19  ;;  %v392_v51 = vld [vmem:[%s5523_s14 + $0x398] sm:$0xff]  ;;  %v5207_v19 = vld [vmem:[%s5514_s11 + $0xe8] sm:$0xff] }
 0x1a0   : > { %7720 = vst [vmem:[#allocation76_spill] sm:$0xff] %v6354_v53  ;;  %v4780_v6 = vpop.eup %4779  ;;  %4785 = vtanh.f32 %v5205_v55 }
 0x1a1   : > { %v1820_v10 = vpop.f32.mrf.mxu0  ;;  %4787 = vtanh.f32 %v5206_v34  ;;  %v1223_v34 = vmul.f32 %v6135_v4, %v5798_v24 }
 0x1a2   : > { %v1821_v63 = vadd.f32 %v1820_v10, %v1222_v49  ;;  %v6361_v39 = vpop.f32.mrf.mxu1 }
 0x1a3   : > { %3394 = vperm.xlu1 %4660, %v4776_v40   ;;  %3399 = vperm.xlu2 %4661, %v4778_v25  }
 0x1a4   : > { %v4782_v33 = vpop.eup %4781  ;;  %v2137_v53 = vadd.f32 %v6154_v28, %v1821_v63  ;;  %3389 = vperm.xlu0 %4659, %v4780_v6   ;;  %4430 = vmatmul.msk.f32.gmra.mxu0 %vm1316_vm0, %v327_v5  ;;  %v328_v5 = vld [vmem:[%s5523_s14 + $0x198] sm:$0xff] }
 0x1a5   : > { %4495 = vmatmul.msk.f32.gmra.mxu3 %vm1316_vm0, %v392_v51  ;;  %v6368_v55 = vpop.permute.xlu2 %1144  ;;  %v6370_v49 = vpop.permute.xlu1 %1094  ;;  %4541 = vmatmul.msk.f32.gmra.mxu1 %vm2363_vm1, %v4782_v33  ;;  %v5208_v51 = vld [vmem:[%s5514_s11 + $0xf0] sm:$0xff] }
 0x1a6   : > { %7722 = vst [vmem:[#allocation78_spill] sm:$0xff] %v6368_v55  ;;  %4789 = vtanh.f32 %v2137_v53  ;;  %v6375_v63 = vpop.permute.xlu0 %1089  ;;  %v4784_v40 = vpop.eup %4783  ;;  %v393_v53 = vld [vmem:[%s5523_s14 + $0x3a0] sm:$0xff] }
 0x1a7   : > { %7723 = vst [vmem:[#allocation79_spill] sm:$0xff] %v6370_v49  ;;  %v4786_v25 = vpop.eup %4785  ;;  %4791 = vtanh.f32 %v5207_v19  ;;  %v6380_v55 = vpop.f32.mrf.mxu3 }
 0x1a8   : > { %7724 = vst [vmem:[#allocation80_spill] sm:$0xff] %v6375_v63  ;;  %v4788_v6 = vpop.eup %4787  ;;  %4793 = vtanh.f32 %v5208_v51  ;;  %v329_v51 = vld [vmem:[%s5523_s14 + $0x1a0] sm:$0xff] }
 0x1a9   : > { %v1823_v10 = vpop.f32.mrf.mxu0  ;;  %7725 = vst [vmem:[#allocation81_spill] sm:$0xff] %v6380_v55  ;;  %4795 = vtanh.f32 %v5209_v27  ;;  %v1224_v27 = vmul.f32 %v6135_v4, %v5880_v20  ;;  %v394_v55 = vld [vmem:[%s5523_s14 + $0x3a8] sm:$0xff]  ;;  %v5212_v20 = vld [vmem:[%s5514_s11 + $0xf8] sm:$0xff] }
 0x1aa   : > { %v1824_v49 = vadd.f32 %v1823_v10, %v1223_v34  ;;  %v6382_v24 = vpop.f32.mrf.mxu1  ;;  %v5210_v10 = vld [vmem:[%s5514_s11 + $0x100] sm:$0xff] }
 0x1ab   : > { %3409 = vperm.xlu1 %4660, %v4784_v40   ;;  %3414 = vperm.xlu2 %4661, %v4786_v25  }
 0x1ac   : > { %v4790_v33 = vpop.eup %4789  ;;  %v2138_v63 = vadd.f32 %v6154_v28, %v1824_v49  ;;  %3404 = vperm.xlu0 %4659, %v4788_v6   ;;  %4431 = vmatmul.msk.f32.gmra.mxu0 %vm1316_vm0, %v328_v5 }
 0x1ad   : > { %4496 = vmatmul.msk.f32.gmra.mxu3 %vm1316_vm0, %v393_v53  ;;  %v6389_v19 = vpop.permute.xlu2 %1159  ;;  %v6391_v34 = vpop.permute.xlu1 %1109  ;;  %4542 = vmatmul.msk.f32.gmra.mxu1 %vm2363_vm1, %v4790_v33  ;;  %v5211_v53 = vld [vmem:[%s5514_s11 + $0x108] sm:$0xff] }
 0x1ae   : > { %7726 = vst [vmem:[#allocation82_spill] sm:$0xff] %v6389_v19  ;;  %4797 = vtanh.f32 %v2138_v63  ;;  %v6396_v49 = vpop.permute.xlu0 %1104  ;;  %v4792_v40 = vpop.eup %4791 }
 0x1af   : > { %7727 = vst [vmem:[#allocation83_spill] sm:$0xff] %v6391_v34  ;;  %v4794_v25 = vpop.eup %4793  ;;  %4799 = vtanh.f32 %v5210_v10  ;;  %v6405_v33 = vpop.f32.mrf.mxu3 }
 0x1b0   : > { %7728 = vst [vmem:[#allocation84_spill] sm:$0xff] %v6396_v49  ;;  %v4796_v6 = vpop.eup %4795  ;;  %4801 = vtanh.f32 %v5211_v53 }
 0x1b1   : > { %v1826_v5 = vpop.f32.mrf.mxu0  ;;  %4803 = vtanh.f32 %v5212_v20  ;;  %7729 = vst [vmem:[#allocation85_spill] sm:$0xff] %v6405_v33  ;;  %v330_v20 = vld [vmem:[%s5523_s14 + $0x1a8] sm:$0xff] }
 0x1b2   : > { %v1827_v19 = vadd.f32 %v1826_v5, %v1224_v27  ;;  %v6401_v34 = vpop.f32.mrf.mxu1 }
 0x1b3   : > { %3424 = vperm.xlu1 %4660, %v4792_v40   ;;  %3429 = vperm.xlu2 %4661, %v4794_v25   ;;  %v1225_v40 = vmul.f32 %v6135_v4, %v5876_v2  ;;  %v5214_v2 = vld [vmem:[%s5514_s11 + $0x120] sm:$0xff] }
 0x1b4   : > { %v4798_v63 = vpop.eup %4797  ;;  %v2139_v49 = vadd.f32 %v6154_v28, %v1827_v19  ;;  %3419 = vperm.xlu0 %4659, %v4796_v6   ;;  %4432 = vmatmul.msk.f32.gmra.mxu0 %vm1316_vm0, %v329_v51  ;;  %v5213_v51 = vld [vmem:[%s5514_s11 + $0x118] sm:$0xff] }
 0x1b5   : > { %4497 = vmatmul.msk.f32.gmra.mxu3 %vm1316_vm0, %v394_v55  ;;  %v6410_v27 = vpop.permute.xlu2 %1174  ;;  %v6412_v10 = vpop.permute.xlu1 %1124  ;;  %4543 = vmatmul.msk.f32.gmra.mxu1 %vm2363_vm1, %v4798_v63  ;;  %v6422_v55 = vld [vmem:[%s7644_s5] ss:$0 sm:$0xff]  ;;  %v395_v63 = vld [vmem:[%s5523_s14 + $0x3b0] sm:$0xff] }
 0x1b6   : > { %7730 = vst [vmem:[#allocation86_spill] sm:$0xff] %v6410_v27  ;;  %4805 = vtanh.f32 %v2139_v49  ;;  %v6417_v19 = vpop.permute.xlu0 %1119  ;;  %v4800_v25 = vpop.eup %4799  ;;  %v2766_v33 = vadd.f32 %v6422_v55, %v5998_v14 }
 0x1b7   : > { %7731 = vst [vmem:[#allocation87_spill] sm:$0xff] %v6412_v10  ;;  %v4802_v6 = vpop.eup %4801  ;;  %4807 = vtanh.f32 %v5213_v51  ;;  %v5215_v10 = vld [vmem:[%s5514_s11 + $0x110] sm:$0xff] }
 0x1b8   : > { %7732 = vst [vmem:[#allocation88_spill] sm:$0xff] %v6417_v19  ;;  %v4804_v5 = vpop.eup %4803  ;;  %4809 = vtanh.f32 %v5214_v2 }
 0x1b9   : > { %v1829_v53 = vpop.f32.mrf.mxu0  ;;  %4811 = vtanh.f32 %v5215_v10  ;;  %v1226_v10 = vmul.f32 %v6135_v4, %v5817_v45  ;;  %v5216_v45 = vld [vmem:[%s5523_s14] sm:$0xff] }
 0x1ba   : > { %v1830_v49 = vadd.f32 %v1829_v53, %v1225_v40  ;;  %v6427_v27 = vpop.f32.mrf.mxu1 }
 0x1bb   : > { %3439 = vperm.xlu1 %4660, %v4800_v25   ;;  %3444 = vperm.xlu2 %4661, %v4802_v6   ;;  %v6440_v25 = vpop.f32.mrf.mxu3 }
 0x1bc   : > { %v4806_v19 = vpop.eup %4805  ;;  %v2140_v51 = vadd.f32 %v6154_v28, %v1830_v49  ;;  %3434 = vperm.xlu0 %4659, %v4804_v5   ;;  %4433 = vmatmul.msk.f32.gmra.mxu0 %vm1316_vm0, %v330_v20  ;;  %7734 = vst [vmem:[#allocation90_spill] sm:$0xff] %v6440_v25 }
 0x1bd   : > { %4498 = vmatmul.msk.f32.gmra.mxu3 %vm1316_vm0, %v395_v63  ;;  %v6436_v40 = vpop.permute.xlu1 %1139  ;;  %v3280_v53 = vpop.permute.xlu2 %3279  ;;  %4544 = vmatmul.msk.f32.gmra.mxu1 %vm2363_vm1, %v4806_v19  ;;  %v5217_v63 = vld [vmem:[%s5514_s11 + $0x130] sm:$0xff] }
 0x1be   : > { %7733 = vst [vmem:[#allocation89_spill] sm:$0xff] %v6436_v40  ;;  %4813 = vtanh.f32 %v2140_v51  ;;  %v6443_v14 = vpop.permute.xlu0 %1134  ;;  %v3917_v6 = vmul.f32 %v3280_v53, %v2766_v33  ;;  %v4808_v5 = vpop.eup %4807  ;;  %v331_v19 = vld [vmem:[%s5523_s14 + $0x1b0] sm:$0xff]  ;;  %v5218_v40 = vld [vmem:[%s5514_s11 + $0x138] sm:$0xff] }
 0x1bf   : > { %7735 = vst [vmem:[#allocation91_spill] sm:$0xff] %v6443_v14  ;;  %v4810_v20 = vpop.eup %4809  ;;  %4815 = vtanh.f32 %v5217_v63  ;;  %v396_v53 = vld [vmem:[%s5523_s14 + $0x3b8] sm:$0xff]  ;;  %v5219_v14 = vld [vmem:[%s5514_s11 + $0x128] sm:$0xff] }
 0x1c0   : > { %v4045_v2 = vadd.f32 %v5216_v45, %v3917_v6  ;;  %v4812_v49 = vpop.eup %4811  ;;  %4817 = vtanh.f32 %v5218_v40  ;;  %v2775_v6 = vadd.f32 %v6422_v55, %v6061_v48  ;;  %v5220_v63 = vld [vmem:[%s5523_s14 + $0x18] sm:$0xff] }
 0x1c1   : > { %v1832_v51 = vpop.f32.mrf.mxu0  ;;  %4819 = vtanh.f32 %v5219_v14  ;;  %v1227_v14 = vmul.f32 %v6135_v4, %v5899_v44  ;;  %v332_v44 = vld [vmem:[%s5523_s14 + $0x1b8] sm:$0xff] }
 0x1c2   : > { %4173 = vst.msk [vmem:[%s6449_s24] sm:$0xff] %vm1316_vm0, %v4045_v2  ;;  %v1833_v33 = vadd.f32 %v1832_v51, %v1226_v10  ;;  %v6459_v25 = vpop.f32.mrf.mxu1 }
 0x1c3   : > { %3454 = vperm.xlu1 %4660, %v4808_v5   ;;  %3459 = vperm.xlu2 %4661, %v4810_v20  }
 0x1c4   : > { %v4814_v29 = vpop.eup %4813  ;;  %v2141_v45 = vadd.f32 %v6154_v28, %v1833_v33  ;;  %3449 = vperm.xlu0 %4659, %v4812_v49   ;;  %4434 = vmatmul.msk.f32.gmra.mxu0 %vm1316_vm0, %v331_v19  ;;  %v6473_v49 = vpop.f32.mrf.mxu3  ;;  %v5221_v33 = vld [vmem:[%s5514_s11 + $0x148] sm:$0xff] }
 0x1c5   : > { %4499 = vmatmul.msk.f32.gmra.mxu3 %vm1316_vm0, %v396_v53  ;;  %v6466_v40 = vpop.permute.xlu1 %1154  ;;  %v3295_v10 = vpop.permute.xlu2 %3294  ;;  %4545 = vmatmul.msk.f32.gmra.mxu1 %vm2363_vm1, %v4814_v29 }
 0x1c6   : > { %7736 = vst [vmem:[#allocation92_spill] sm:$0xff] %v6466_v40  ;;  %4821 = vtanh.f32 %v2141_v45  ;;  %v6471_v48 = vpop.permute.xlu0 %1149  ;;  %v3920_v5 = vmul.f32 %v3295_v10, %v2775_v6  ;;  %v4816_v20 = vpop.eup %4815  ;;  %v5222_v45 = vld [vmem:[%s5514_s11 + $0x150] sm:$0xff]  ;;  %v397_v40 = vld [vmem:[%s5523_s14 + $0x3c0] sm:$0xff] }
 0x1c7   : > { %7737 = vst [vmem:[#allocation93_spill] sm:$0xff] %v6471_v48  ;;  %v4818_v2 = vpop.eup %4817  ;;  %4823 = vtanh.f32 %v5221_v33  ;;  %v5223_v48 = vld [vmem:[%s5514_s11 + $0x140] sm:$0xff] }
 0x1c8   : > { %v4048_v51 = vadd.f32 %v5220_v63, %v3920_v5  ;;  %v4820_v19 = vpop.eup %4819  ;;  %4825 = vtanh.f32 %v5222_v45  ;;  %v2784_v5 = vadd.f32 %v6422_v55, %v6122_v43 }
 0x1c9   : > { %v1835_v53 = vpop.f32.mrf.mxu0  ;;  %4827 = vtanh.f32 %v5223_v48 }
 0x1ca   : > { %4176 = vst.msk [vmem:[%s6449_s24 + $0x18] sm:$0xff] %vm1316_vm0, %v4048_v51  ;;  %v1836_v29 = vadd.f32 %v1835_v53, %v1227_v14  ;;  %v6483_v6 = vpop.f32.mrf.mxu1 }
 0x1cb   : > { %3469 = vperm.xlu1 %4660, %v4816_v20   ;;  %3474 = vperm.xlu2 %4661, %v4818_v2   ;;  %v1228_v20 = vmul.f32 %v6135_v4, %v5895_v41 }
 0x1cc   : > { %v4822_v10 = vpop.eup %4821  ;;  %v2142_v63 = vadd.f32 %v6154_v28, %v1836_v29  ;;  %3464 = vperm.xlu0 %4659, %v4820_v19   ;;  %4435 = vmatmul.msk.f32.gmra.mxu0 %vm1316_vm0, %v332_v44  ;;  %v5225_v44 = vld [vmem:[%s5514_s11 + $0x160] sm:$0xff]  ;;  %v6501_v41 = vpop.f32.mrf.mxu3 }
 0x1cd   : > { %4500 = vmatmul.msk.f32.gmra.mxu3 %vm1316_vm0, %v397_v40  ;;  %v6490_v14 = vpop.permute.xlu1 %1169  ;;  %v3310_v48 = vpop.permute.xlu2 %3309  ;;  %4546 = vmatmul.msk.f32.gmra.mxu1 %vm2363_vm1, %v4822_v10  ;;  %v5224_v40 = vld [vmem:[%s5523_s14 + $0x30] sm:$0xff]  ;;  %v333_v29 = vld [vmem:[%s5523_s14 + $0x1c0] sm:$0xff] }
 0x1ce   : > { %7738 = vst [vmem:[#allocation94_spill] sm:$0xff] %v6490_v14  ;;  %4829 = vtanh.f32 %v2142_v63  ;;  %v6495_v43 = vpop.permute.xlu0 %1164  ;;  %v3923_v2 = vmul.f32 %v3310_v48, %v2784_v5  ;;  %v4824_v51 = vpop.eup %4823  ;;  %v5226_v14 = vld [vmem:[%s5514_s11 + $0x168] sm:$0xff] }
 0x1cf   : > { %7739 = vst [vmem:[#allocation95_spill] sm:$0xff] %v6495_v43  ;;  %v4826_v19 = vpop.eup %4825  ;;  %4831 = vtanh.f32 %v5225_v44  ;;  %v398_v63 = vld [vmem:[%s5523_s14 + $0x3c8] sm:$0xff]  ;;  %v5227_v43 = vld [vmem:[%s5514_s11 + $0x158] sm:$0xff] }
 0x1d0   : > { %v4051_v33 = vadd.f32 %v5224_v40, %v3923_v2  ;;  %v4828_v53 = vpop.eup %4827  ;;  %4833 = vtanh.f32 %v5226_v14  ;;  %v2793_v2 = vadd.f32 %v6422_v55, %v6195_v32 }
 0x1d1   : > { %v1838_v45 = vpop.f32.mrf.mxu0  ;;  %4835 = vtanh.f32 %v5227_v43  ;;  %v1229_v43 = vmul.f32 %v6135_v4, %v5836_v7 }
 0x1d2   : > { %4179 = vst.msk [vmem:[%s6449_s24 + $0x30] sm:$0xff] %vm1316_vm0, %v4051_v33  ;;  %v1839_v10 = vadd.f32 %v1838_v45, %v1228_v20  ;;  %v6507_v5 = vpop.f32.mrf.mxu1 }
 0x1d3   : > { %3484 = vperm.xlu1 %4660, %v4824_v51   ;;  %3489 = vperm.xlu2 %4661, %v4826_v19  }
 0x1d4   : > { %v4830_v48 = vpop.eup %4829  ;;  %v2143_v40 = vadd.f32 %v6154_v28, %v1839_v10  ;;  %3479 = vperm.xlu0 %4659, %v4828_v53   ;;  %4436 = vmatmul.msk.f32.gmra.mxu0 %vm1316_vm0, %v333_v29  ;;  %v5228_v53 = vld [vmem:[%s5523_s14 + $0x48] sm:$0xff]  ;;  %v5229_v29 = vld [vmem:[%s5514_s11 + $0x178] sm:$0xff] }
 0x1d5   : > { %4501 = vmatmul.msk.f32.gmra.mxu3 %vm1316_vm0, %v398_v63  ;;  %v6514_v14 = vpop.permute.xlu1 %1184  ;;  %v3325_v20 = vpop.permute.xlu2 %3324  ;;  %4547 = vmatmul.msk.f32.gmra.mxu1 %vm2363_vm1, %v4830_v48  ;;  %v334_v63 = vld [vmem:[%s5523_s14 + $0x1c8] sm:$0xff]  ;;  %v399_v48 = vld [vmem:[%s5523_s14 + $0x3d0] sm:$0xff] }
 0x1d6   : > { %7740 = vst [vmem:[#allocation96_spill] sm:$0xff] %v6514_v14  ;;  %4837 = vtanh.f32 %v2143_v40  ;;  %v6519_v32 = vpop.permute.xlu0 %1179  ;;  %v3926_v51 = vmul.f32 %v3325_v20, %v2793_v2  ;;  %v4832_v19 = vpop.eup %4831  ;;  %v5230_v14 = vld [vmem:[%s5514_s11 + $0x180] sm:$0xff]  ;;  %v5231_v40 = vld [vmem:[%s5514_s11 + $0x170] sm:$0xff]  ;;  %v2772_v20 = vadd.f32 %v6422_v55, %v6040_v54 }
 0x1d7   : > { %7741 = vst [vmem:[#allocation97_spill] sm:$0xff] %v6519_v32  ;;  %v4834_v33 = vpop.eup %4833  ;;  %4839 = vtanh.f32 %v5229_v29 }
 0x1d8   : > { %v4054_v44 = vadd.f32 %v5228_v53, %v3926_v51  ;;  %v4836_v45 = vpop.eup %4835  ;;  %4841 = vtanh.f32 %v5230_v14  ;;  %v2802_v51 = vadd.f32 %v6422_v55, %v6258_v47  ;;  %v6535_v53 = vpop.f32.mrf.mxu3  ;;  %v1230_v47 = vmul.f32 %v6135_v4, %v5918_v23 }
 0x1d9   : > { %v1841_v10 = vpop.f32.mrf.mxu0  ;;  %4843 = vtanh.f32 %v5231_v40  ;;  %7742 = vst [vmem:[#allocation98_spill] sm:$0xff] %v6535_v53  ;;  %v335_v53 = vld [vmem:[%s5523_s14 + $0x1d0] sm:$0xff] }
 0x1da   : > { %4182 = vst.msk [vmem:[%s6449_s24 + $0x48] sm:$0xff] %vm1316_vm0, %v4054_v44  ;;  %v1842_v7 = vadd.f32 %v1841_v10, %v1229_v43  ;;  %v6529_v32 = vpop.f32.mrf.mxu1  ;;  %v2769_v43 = vadd.f32 %v6422_v55, %v6019_v9 }
 0x1db   : > { %3499 = vperm.xlu1 %4660, %v4832_v19   ;;  %3504 = vperm.xlu2 %4661, %v4834_v33  }
 0x1dc   : > { %v4838_v2 = vpop.eup %4837  ;;  %v2144_v14 = vadd.f32 %v6154_v28, %v1842_v7  ;;  %3494 = vperm.xlu0 %4659, %v4836_v45   ;;  %4437 = vmatmul.msk.f32.gmra.mxu0 %vm1316_vm0, %v334_v63  ;;  %v5232_v63 = vld [vmem:[%s5523_s14 + $0x10] sm:$0xff] }
 0x1dd   : > { %4502 = vmatmul.msk.f32.gmra.mxu3 %vm1316_vm0, %v399_v48  ;;  %v3290_v19 = vpop.permute.xlu1 %3289  ;;  %v3340_v54 = vpop.permute.xlu2 %3339  ;;  %4548 = vmatmul.msk.f32.gmra.mxu1 %vm2363_vm1, %v4838_v2  ;;  %v5233_v48 = vld [vmem:[%s5523_s14 + $0x60] sm:$0xff]  ;;  %v5235_v2 = vld [vmem:[%s5523_s14 + $0x8] sm:$0xff] }
 0x1de   : > { %4845 = vtanh.f32 %v2144_v14  ;;  %v3919_v33 = vmul.f32 %v3290_v19, %v2772_v20  ;;  %v3285_v44 = vpop.permute.xlu0 %3284  ;;  %v3929_v45 = vmul.f32 %v3340_v54, %v2802_v51  ;;  %v4840_v29 = vpop.eup %4839  ;;  %v5234_v14 = vld [vmem:[%s5514_s11 + $0x190] sm:$0xff]  ;;  %v5236_v51 = vld [vmem:[%s5514_s11 + $0x198] sm:$0xff] }
 0x1df   : > { %v3918_v9 = vmul.f32 %v3285_v44, %v2769_v43  ;;  %v4842_v10 = vpop.eup %4841  ;;  %4847 = vtanh.f32 %v5234_v14  ;;  %v400_v54 = vld [vmem:[%s5523_s14 + $0x3d8] sm:$0xff]  ;;  %v5237_v44 = vld [vmem:[%s5514_s11 + $0x188] sm:$0xff] }
 0x1e0   : > { %v4047_v7 = vadd.f32 %v5232_v63, %v3919_v33  ;;  %v4057_v23 = vadd.f32 %v5233_v48, %v3929_v45  ;;  %v4844_v40 = vpop.eup %4843  ;;  %4849 = vtanh.f32 %v5236_v51  ;;  %v2811_v63 = vadd.f32 %v6422_v55, %v6319_v56  ;;  %v6572_v56 = vpop.f32.mrf.mxu3  ;;  %v5238_v14 = vld [vmem:[%s5523_s14 + $0x28] sm:$0xff]  ;;  %v5241_v51 = vld [vmem:[%s5523_s14 + $0x20] sm:$0xff] }
 0x1e1   : > { %v4046_v20 = vadd.f32 %v5235_v2, %v3918_v9  ;;  %v1844_v19 = vpop.f32.mrf.mxu0  ;;  %4851 = vtanh.f32 %v5237_v44  ;;  %v2781_v9 = vadd.f32 %v6422_v55, %v6101_v11  ;;  %v1231_v11 = vmul.f32 %v6135_v4, %v5912_v17  ;;  %v5239_v17 = vld [vmem:[%s5523_s14 + $0x78] sm:$0xff] }
 0x1e2   : > { %4175 = vst.msk [vmem:[%s6449_s24 + $0x10] sm:$0xff] %vm1316_vm0, %v4047_v7  ;;  %v1845_v43 = vadd.f32 %v1844_v19, %v1230_v47  ;;  %v6557_v33 = vpop.f32.mrf.mxu1  ;;  %v2778_v7 = vadd.f32 %v6422_v55, %v6080_v30  ;;  %v5240_v19 = vld [vmem:[%s5514_s11 + $0x1a8] sm:$0xff]  ;;  %v336_v44 = vld [vmem:[%s5523_s14 + $0x1d8] sm:$0xff] }
 0x1e3   : > { %4174 = vst.msk [vmem:[%s6449_s24 + $0x8] sm:$0xff] %vm1316_vm0, %v4046_v20  ;;  %3514 = vperm.xlu1 %4660, %v4840_v29   ;;  %3519 = vperm.xlu2 %4661, %v4842_v10  }
 0x1e4   : > { %v4846_v45 = vpop.eup %4845  ;;  %4185 = vst.msk [vmem:[%s6449_s24 + $0x60] sm:$0xff] %vm1316_vm0, %v4057_v23  ;;  %v2145_v47 = vadd.f32 %v6154_v28, %v1845_v43  ;;  %3509 = vperm.xlu0 %4659, %v4844_v40   ;;  %4438 = vmatmul.msk.f32.gmra.mxu0 %vm1316_vm0, %v335_v53 }
 0x1e5   : > { %4503 = vmatmul.msk.f32.gmra.mxu3 %vm1316_vm0, %v400_v54  ;;  %v3305_v29 = vpop.permute.xlu1 %3304  ;;  %v3355_v10 = vpop.permute.xlu2 %3354  ;;  %4549 = vmatmul.msk.f32.gmra.mxu1 %vm2363_vm1, %v4846_v45  ;;  %v5242_v45 = vld [vmem:[%s5514_s11 + $0x1b0] sm:$0xff] }
 0x1e6   : > { %4853 = vtanh.f32 %v2145_v47  ;;  %v3922_v28 = vmul.f32 %v3305_v29, %v2781_v9  ;;  %v3300_v53 = vpop.permute.xlu0 %3299  ;;  %v3932_v30 = vmul.f32 %v3355_v10, %v2811_v63  ;;  %v4848_v48 = vpop.eup %4847  ;;  %v401_v63 = vld [vmem:[%s5523_s14 + $0x3e0] sm:$0xff]  ;;  %v2790_v10 = vadd.f32 %v6422_v55, %v6175_v37 }
 0x1e7   : > { %v3921_v23 = vmul.f32 %v3300_v53, %v2778_v7  ;;  %v4850_v40 = vpop.eup %4849  ;;  %4855 = vtanh.f32 %v5240_v19  ;;  %v5243_v47 = vld [vmem:[%s5514_s11 + $0x1a0] sm:$0xff] }
 0x1e8   : > { %v4050_v2 = vadd.f32 %v5238_v14, %v3922_v28  ;;  %v4060_v4 = vadd.f32 %v5239_v17, %v3932_v30  ;;  %v4852_v20 = vpop.eup %4851  ;;  %4857 = vtanh.f32 %v5242_v45  ;;  %v2820_v28 = vadd.f32 %v6422_v55, %v6382_v24  ;;  %v5246_v19 = vld [vmem:[%s5523_s14 + $0x40] sm:$0xff]  ;;  %v5249_v45 = vld [vmem:[%s5523_s14 + $0x38] sm:$0xff] }
 0x1e9   : > { %v4049_v43 = vadd.f32 %v5241_v51, %v3921_v23  ;;  %v1847_v54 = vpop.f32.mrf.mxu0  ;;  %4859 = vtanh.f32 %v5243_v47  ;;  %v2787_v30 = vadd.f32 %v6422_v55, %v6148_v8  ;;  %v337_v47 = vld [vmem:[%s5523_s14 + $0x1e0] sm:$0xff] }
 0x1ea   : > { %4178 = vst.msk [vmem:[%s6449_s24 + $0x28] sm:$0xff] %vm1316_vm0, %v4050_v2  ;;  %v1848_v9 = vadd.f32 %v1847_v54, %v1231_v11  ;;  %v6587_v7 = vpop.f32.mrf.mxu1  ;;  %v6598_v11 = vld [vmem:[%s7642_s3 + $0x1] ss:$0 sm:$0xff] }
 0x1eb   : > { %4177 = vst.msk [vmem:[%s6449_s24 + $0x20] sm:$0xff] %vm1316_vm0, %v4049_v43  ;;  %3529 = vperm.xlu1 %4660, %v4848_v48   ;;  %3534 = vperm.xlu2 %4661, %v4850_v40   ;;  %v6608_v48 = vld [vmem:[%s7642_s3] ss:$0 sm:$0xff] }
 0x1ec   : > { %v4854_v29 = vpop.eup %4853  ;;  %4188 = vst.msk [vmem:[%s6449_s24 + $0x78] sm:$0xff] %vm1316_vm0, %v4060_v4  ;;  %v2146_v53 = vadd.f32 %v6598_v11, %v1848_v9  ;;  %3524 = vperm.xlu0 %4659, %v4852_v20   ;;  %4439 = vmatmul.msk.f32.gmra.mxu0 %vm1316_vm0, %v336_v44  ;;  %v1232_v23 = vmul.f32 %v6608_v48, %v5855_v38  ;;  %v6613_v20 = vpop.f32.mrf.mxu3  ;;  %v5247_v38 = vld [vmem:[%s5523_s14 + $0x90] sm:$0xff]  ;;  %v5248_v44 = vld [vmem:[%s5514_s11 + $0x1c0] sm:$0xff] }
 0x1ed   : > { %4504 = vmatmul.msk.f32.gmra.mxu3 %vm1316_vm0, %v401_v63  ;;  %v3320_v37 = vpop.permute.xlu1 %3319  ;;  %v3370_v24 = vpop.permute.xlu2 %3369  ;;  %4550 = vmatmul.msk.f32.gmra.mxu1 %vm2363_vm1, %v4854_v29  ;;  %v5250_v29 = vld [vmem:[%s5514_s11 + $0x1c8] sm:$0xff] }
 0x1ee   : > { %4861 = vtanh.f32 %v2146_v53  ;;  %v3925_v40 = vmul.f32 %v3320_v37, %v2790_v10  ;;  %v3315_v8 = vpop.permute.xlu0 %3314  ;;  %v3935_v14 = vmul.f32 %v3370_v24, %v2820_v28  ;;  %v4856_v2 = vpop.eup %4855  ;;  %v402_v28 = vld [vmem:[%s5523_s14 + $0x3e8] sm:$0xff]  ;;  %v5251_v53 = vld [vmem:[%s5514_s11 + $0x1b8] sm:$0xff]  ;;  %v2799_v24 = vadd.f32 %v6422_v55, %v6237_v46 }
 0x1ef   : > { %v3924_v17 = vmul.f32 %v3315_v8, %v2787_v30  ;;  %v4858_v4 = vpop.eup %4857  ;;  %4863 = vtanh.f32 %v5248_v44  ;;  %v2796_v8 = vadd.f32 %v6422_v55, %v6216_v15  ;;  %v1233_v15 = vmul.f32 %v6608_v48, %v5935_v0 }
 0x1f0   : > { %v4053_v51 = vadd.f32 %v5246_v19, %v3925_v40  ;;  %v4063_v43 = vadd.f32 %v5247_v38, %v3935_v14  ;;  %v4860_v54 = vpop.eup %4859  ;;  %4865 = vtanh.f32 %v5250_v29  ;;  %v2829_v40 = vadd.f32 %v6422_v55, %v6459_v25  ;;  %v5252_v38 = vld [vmem:[%s5523_s14 + $0x58] sm:$0xff] }
 0x1f1   : > { %v4052_v9 = vadd.f32 %v5249_v45, %v3924_v17  ;;  %v1850_v63 = vpop.f32.mrf.mxu0  ;;  %4867 = vtanh.f32 %v5251_v53 }
 0x1f2   : > { %4181 = vst.msk [vmem:[%s6449_s24 + $0x40] sm:$0xff] %vm1316_vm0, %v4053_v51  ;;  %v1851_v10 = vadd.f32 %v1850_v63, %v1232_v23  ;;  %v6627_v30 = vpop.f32.mrf.mxu1  ;;  %v5255_v63 = vld [vmem:[%s5523_s14 + $0x50] sm:$0xff] }
 0x1f3   : > { %4180 = vst.msk [vmem:[%s6449_s24 + $0x38] sm:$0xff] %vm1316_vm0, %v4052_v9  ;;  %3544 = vperm.xlu1 %4660, %v4856_v2   ;;  %3549 = vperm.xlu2 %4661, %v4858_v4   ;;  %v5254_v9 = vld [vmem:[%s5514_s11 + $0x1d8] sm:$0xff] }
 0x1f4   : > { %v4862_v37 = vpop.eup %4861  ;;  %4191 = vst.msk [vmem:[%s6449_s24 + $0x90] sm:$0xff] %vm1316_vm0, %v4063_v43  ;;  %v2147_v23 = vadd.f32 %v6598_v11, %v1851_v10  ;;  %3539 = vperm.xlu0 %4659, %v4860_v54   ;;  %4440 = vmatmul.msk.f32.gmra.mxu0 %vm1316_vm0, %v337_v47  ;;  %v5253_v54 = vld [vmem:[%s5523_s14 + $0xa8] sm:$0xff]  ;;  %v6649_v53 = vpop.f32.mrf.mxu3 }
 0x1f5   : > { %4505 = vmatmul.msk.f32.gmra.mxu3 %vm1316_vm0, %v402_v28  ;;  %v3335_v14 = vpop.permute.xlu1 %3334  ;;  %v3385_v46 = vpop.permute.xlu2 %3384  ;;  %4551 = vmatmul.msk.f32.gmra.mxu1 %vm2363_vm1, %v4862_v37  ;;  %v338_v10 = vld [vmem:[%s5523_s14 + $0x1e8] sm:$0xff]  ;;  %v5256_v28 = vld [vmem:[%s5514_s11 + $0x1e0] sm:$0xff]  ;;  %v403_v37 = vld [vmem:[%s5523_s14 + $0x3f0] sm:$0xff] }
 0x1f6   : > { %4869 = vtanh.f32 %v2147_v23  ;;  %v3928_v25 = vmul.f32 %v3335_v14, %v2799_v24  ;;  %v3330_v2 = vpop.permute.xlu0 %3329  ;;  %v3938_v17 = vmul.f32 %v3385_v46, %v2829_v40  ;;  %v4864_v4 = vpop.eup %4863  ;;  %v5257_v24 = vld [vmem:[%s5514_s11 + $0x1d0] sm:$0xff]  ;;  %v2838_v14 = vadd.f32 %v6422_v55, %v6529_v32 }
 0x1f7   : > { %v3927_v19 = vmul.f32 %v3330_v2, %v2796_v8  ;;  %v4866_v51 = vpop.eup %4865  ;;  %4871 = vtanh.f32 %v5254_v9  ;;  %v2808_v8 = vadd.f32 %v6422_v55, %v6298_v31  ;;  %v5260_v9 = vld [vmem:[%s5514_s11 + $0x1f0] sm:$0xff] }
 0x1f8   : > { %v4056_v43 = vadd.f32 %v5252_v38, %v3928_v25  ;;  %v4066_v44 = vadd.f32 %v5253_v54, %v3938_v17  ;;  %v4868_v45 = vpop.eup %4867  ;;  %4873 = vtanh.f32 %v5256_v28  ;;  %v2805_v25 = vadd.f32 %v6422_v55, %v6279_v13  ;;  %v5258_v38 = vld [vmem:[%s5523_s14 + $0x70] sm:$0xff]  ;;  %v5259_v54 = vld [vmem:[%s5523_s14 + $0xc0] sm:$0xff]  ;;  %v5262_v28 = vld [vmem:[%s5514_s11 + $0x1f8] sm:$0xff] }
 0x1f9   : > { %v4055_v47 = vadd.f32 %v5255_v63, %v3927_v19  ;;  %v1853_v29 = vpop.f32.mrf.mxu0  ;;  %4875 = vtanh.f32 %v5257_v24  ;;  %v1234_v13 = vmul.f32 %v6608_v48, %v5931_v60  ;;  %v5261_v63 = vld [vmem:[%s5523_s14 + $0x68] sm:$0xff] }
 0x1fa   : > { %4184 = vst.msk [vmem:[%s6449_s24 + $0x58] sm:$0xff] %vm1316_vm0, %v4056_v43  ;;  %v1854_v0 = vadd.f32 %v1853_v29, %v1233_v15  ;;  %v6657_v40 = vpop.f32.mrf.mxu1 }
 0x1fb   : > { %4183 = vst.msk [vmem:[%s6449_s24 + $0x50] sm:$0xff] %vm1316_vm0, %v4055_v47  ;;  %3559 = vperm.xlu1 %4660, %v4864_v4   ;;  %3564 = vperm.xlu2 %4661, %v4866_v51  }
 0x1fc   : > { %v4870_v23 = vpop.eup %4869  ;;  %4194 = vst.msk [vmem:[%s6449_s24 + $0xa8] sm:$0xff] %vm1316_vm0, %v4066_v44  ;;  %v2148_v46 = vadd.f32 %v6598_v11, %v1854_v0  ;;  %3554 = vperm.xlu0 %4659, %v4868_v45   ;;  %4441 = vmatmul.msk.f32.gmra.mxu0 %vm1316_vm0, %v338_v10  ;;  %v339_v10 = vld [vmem:[%s5523_s14 + $0x1f0] sm:$0xff]  ;;  %v404_v0 = vld [vmem:[%s5523_s14 + $0x3f8] sm:$0xff] }
 0x1fd   : > { %4506 = vmatmul.msk.f32.gmra.mxu3 %vm1316_vm0, %v403_v37  ;;  %v3350_v2 = vpop.permute.xlu1 %3349  ;;  %v3400_v31 = vpop.permute.xlu2 %3399  ;;  %4552 = vmatmul.msk.f32.gmra.mxu1 %vm2363_vm1, %v4870_v23  ;;  %v5263_v37 = vld [vmem:[%s5514_s11 + $0x1e8] sm:$0xff] }
 0x1fe   : > { %4877 = vtanh.f32 %v2148_v46  ;;  %v3931_v32 = vmul.f32 %v3350_v2, %v2808_v8  ;;  %v3345_v17 = vpop.permute.xlu0 %3344  ;;  %v3941_v4 = vmul.f32 %v3400_v31, %v2838_v14  ;;  %v4872_v19 = vpop.eup %4871  ;;  %v2817_v8 = vadd.f32 %v6422_v55, %v6361_v39 }
 0x1ff   : > { %v3930_v51 = vmul.f32 %v3345_v17, %v2805_v25  ;;  %v4874_v15 = vpop.eup %4873  ;;  %4879 = vtanh.f32 %v5260_v9  ;;  %v6689_v14 = vpop.f32.mrf.mxu3  ;;  %v2847_v46 = vadd.f32 %v6422_v55, %v6627_v30  ;;  %v2814_v2 = vadd.f32 %v6422_v55, %v6340_v42 }
 0x200   : > { %v4059_v43 = vadd.f32 %v5258_v38, %v3931_v32  ;;  %v4069_v44 = vadd.f32 %v5259_v54, %v3941_v4  ;;  %v4876_v45 = vpop.eup %4875  ;;  %4881 = vtanh.f32 %v5262_v28  ;;  %v1235_v42 = vmul.f32 %v6608_v48, %v5874_v62  ;;  %v5265_v38 = vld [vmem:[%s5523_s14 + $0xd8] sm:$0xff]  ;;  %v5269_v62 = vld [vmem:[%s5514_s11 + $0x200] sm:$0xff] }
 0x201   : > { %v4058_v47 = vadd.f32 %v5261_v63, %v3930_v51  ;;  %v1856_v29 = vpop.f32.mrf.mxu0  ;;  %4883 = vtanh.f32 %v5263_v37 }
 0x202   : > { %4187 = vst.msk [vmem:[%s6449_s24 + $0x70] sm:$0xff] %vm1316_vm0, %v4059_v43  ;;  %v1857_v60 = vadd.f32 %v1856_v29, %v1234_v13  ;;  %v6685_v24 = vpop.f32.mrf.mxu1  ;;  %v5268_v29 = vld [vmem:[%s5514_s11 + $0x210] sm:$0xff] }
 0x203   : > { %4186 = vst.msk [vmem:[%s6449_s24 + $0x68] sm:$0xff] %vm1316_vm0, %v4058_v47  ;;  %3574 = vperm.xlu1 %4660, %v4872_v19   ;;  %3579 = vperm.xlu2 %4661, %v4874_v15   ;;  %v5264_v15 = vld [vmem:[%s5523_s14 + $0x88] sm:$0xff]  ;;  %v340_v47 = vld [vmem:[%s5523_s14 + $0x1f8] sm:$0xff] }
 0x204   : > { %v4878_v23 = vpop.eup %4877  ;;  %4197 = vst.msk [vmem:[%s6449_s24 + $0xc0] sm:$0xff] %vm1316_vm0, %v4069_v44  ;;  %v2149_v25 = vadd.f32 %v6598_v11, %v1857_v60  ;;  %3569 = vperm.xlu0 %4659, %v4876_v45   ;;  %4442 = vmatmul.msk.f32.gmra.mxu0 %vm1316_vm0, %v339_v10  ;;  %v5266_v44 = vld [vmem:[%s5514_s11 + $0x208] sm:$0xff]  ;;  %v5267_v45 = vld [vmem:[%s5523_s14 + $0x80] sm:$0xff] }
 0x205   : > { %4507 = vmatmul.msk.f32.gmra.mxu3 %vm1316_vm0, %v404_v0  ;;  %v3365_v39 = vpop.permute.xlu1 %3364  ;;  %v3415_v31 = vpop.permute.xlu2 %3414  ;;  %4553 = vmatmul.msk.f32.gmra.mxu1 %vm2363_vm1, %v4878_v23  ;;  %v2826_v0 = vadd.f32 %v6422_v55, %v6427_v27 }
 0x206   : > { %4885 = vtanh.f32 %v2149_v25  ;;  %v3934_v30 = vmul.f32 %v3365_v39, %v2817_v8  ;;  %v3360_v32 = vpop.permute.xlu0 %3359  ;;  %v3944_v17 = vmul.f32 %v3415_v31, %v2847_v46  ;;  %v4880_v4 = vpop.eup %4879  ;;  %v2823_v8 = vadd.f32 %v6422_v55, %v6401_v34  ;;  %v5270_v34 = vld [vmem:[%s5523_s14 + $0xa0] sm:$0xff] }
 0x207   : > { %v3933_v19 = vmul.f32 %v3360_v32, %v2814_v2  ;;  %v4882_v51 = vpop.eup %4881  ;;  %4887 = vtanh.f32 %v5266_v44  ;;  %v5274_v44 = vld [vmem:[%s5514_s11 + $0x228] sm:$0xff] }
 0x208   : > { %v4062_v13 = vadd.f32 %v5264_v15, %v3934_v30  ;;  %v4072_v43 = vadd.f32 %v5265_v38, %v3944_v17  ;;  %v4884_v54 = vpop.eup %4883  ;;  %4889 = vtanh.f32 %v5268_v29  ;;  %v1236_v17 = vmul.f32 %v6608_v48, %v5954_v61  ;;  %v5272_v15 = vld [vmem:[%s5514_s11 + $0x220] sm:$0xff]  ;;  %v5275_v61 = vld [vmem:[%s5514_s11 + $0x218] sm:$0xff] }
 0x209   : > { %v4061_v9 = vadd.f32 %v5267_v45, %v3933_v19  ;;  %v1859_v63 = vpop.f32.mrf.mxu0  ;;  %4891 = vtanh.f32 %v5269_v62  ;;  %v5271_v19 = vld [vmem:[%s5523_s14 + $0xf0] sm:$0xff] }
 0x20a   : > { %4190 = vst.msk [vmem:[%s6449_s24 + $0x88] sm:$0xff] %vm1316_vm0, %v4062_v13  ;;  %v1860_v10 = vadd.f32 %v1859_v63, %v1235_v42  ;;  %v2855_v28 = vpop.f32.mrf.mxu1  ;;  %v5273_v13 = vld [vmem:[%s5523_s14 + $0x98] sm:$0xff] }
 0x20b   : > { %4189 = vst.msk [vmem:[%s6449_s24 + $0x80] sm:$0xff] %vm1316_vm0, %v4061_v9  ;;  %3589 = vperm.xlu1 %4660, %v4880_v4   ;;  %3594 = vperm.xlu2 %4661, %v4882_v51   ;;  %v2856_v23 = vadd.f32 %v6422_v55, %v2855_v28 }
 0x20c   : > { %v4886_v60 = vpop.eup %4885  ;;  %4200 = vst.msk [vmem:[%s6449_s24 + $0xd8] sm:$0xff] %vm1316_vm0, %v4072_v43  ;;  %v2150_v37 = vadd.f32 %v6598_v11, %v1860_v10  ;;  %3584 = vperm.xlu0 %4659, %v4884_v54   ;;  %4443 = vmatmul.msk.f32.gmra.mxu0 %vm1316_vm0, %v340_v47  ;;  %v341_v54 = vld [vmem:[%s5523_s14 + $0x200] sm:$0xff]  ;;  %v2835_v47 = vadd.f32 %v6422_v55, %v6507_v5 }
 0x20d   : > { %v3380_v46 = vpop.permute.xlu1 %3379  ;;  %v3430_v25 = vpop.permute.xlu2 %3429  ;;  %4554 = vmatmul.msk.f32.gmra.mxu1 %vm2363_vm1, %v4886_v60  ;;  %v2832_v10 = vadd.f32 %v6422_v55, %v6483_v6  ;;  %v5277_v6 = vld [vmem:[%s5514_s11 + $0x238] sm:$0xff] }
 0x20e   : > { %4893 = vtanh.f32 %v2150_v37  ;;  %v3937_v27 = vmul.f32 %v3380_v46, %v2826_v0  ;;  %v3375_v2 = vpop.permute.xlu0 %3374  ;;  %v3947_v39 = vmul.f32 %v3430_v25, %v2856_v23  ;;  %v4888_v31 = vpop.eup %4887  ;;  %v1237_v23 = vmul.f32 %v6608_v48, %v5950_v57 }
 0x20f   : > { %v3936_v30 = vmul.f32 %v3375_v2, %v2823_v8  ;;  %v4890_v32 = vpop.eup %4889  ;;  %4895 = vtanh.f32 %v5272_v15  ;;  %v5276_v8 = vld [vmem:[%s5523_s14 + $0xb8] sm:$0xff] }
 0x210   : > { %v4065_v4 = vadd.f32 %v5270_v34, %v3937_v27  ;;  %v4075_v51 = vadd.f32 %v5271_v19, %v3947_v39  ;;  %v4892_v42 = vpop.eup %4891  ;;  %4897 = vtanh.f32 %v5274_v44  ;;  %v5278_v27 = vld [vmem:[%s5523_s14 + $0xb0] sm:$0xff]  ;;  %v2844_v34 = vadd.f32 %v6422_v55, %v6587_v7 }
 0x211   : > { %v4064_v38 = vadd.f32 %v5273_v13, %v3936_v30  ;;  %v1862_v43 = vpop.f32.mrf.mxu0  ;;  %4899 = vtanh.f32 %v5275_v61  ;;  %v2841_v19 = vadd.f32 %v6422_v55, %v6557_v33  ;;  %v5282_v33 = vld [vmem:[%s5514_s11 + $0x250] sm:$0xff]  ;;  %v5283_v61 = vld [vmem:[%s5523_s14 + $0xc8] sm:$0xff] }
 0x212   : > { %4193 = vst.msk [vmem:[%s6449_s24 + $0xa0] sm:$0xff] %vm1316_vm0, %v4065_v4  ;;  %v1863_v45 = vadd.f32 %v1862_v43, %v1236_v17  ;;  %v6737_v9 = vpop.f32.mrf.mxu1  ;;  %v1238_v43 = vmul.f32 %v6608_v48, %v5893_v3 }
 0x213   : > { %4192 = vst.msk [vmem:[%s6449_s24 + $0x98] sm:$0xff] %vm1316_vm0, %v4064_v38  ;;  %3604 = vperm.xlu1 %4660, %v4888_v31   ;;  %3609 = vperm.xlu2 %4661, %v4890_v32   ;;  %v5279_v31 = vld [vmem:[%s5514_s11 + $0x240] sm:$0xff]  ;;  %v5280_v32 = vld [vmem:[%s5514_s11 + $0x230] sm:$0xff] }
 0x214   : > { %v4894_v63 = vpop.eup %4893  ;;  %4203 = vst.msk [vmem:[%s6449_s24 + $0xf0] sm:$0xff] %vm1316_vm0, %v4075_v51  ;;  %v2151_v29 = vadd.f32 %v6598_v11, %v1863_v45  ;;  %3599 = vperm.xlu0 %4659, %v4892_v42   ;;  %4444 = vmatmul.msk.f32.gmra.mxu0 %vm1316_vm0, %v341_v54  ;;  %v5281_v54 = vld [vmem:[%s5523_s14 + $0xd0] sm:$0xff] }
 0x215   : > { %v3395_v62 = vpop.permute.xlu1 %3394  ;;  %4555 = vmatmul.msk.f32.gmra.mxu1 %vm2363_vm1, %v4894_v63  ;;  %v4896_v60 = vpop.eup %4895 }
 0x216   : > { %4901 = vtanh.f32 %v2151_v29  ;;  %v3940_v28 = vmul.f32 %v3395_v62, %v2835_v47  ;;  %v3390_v5 = vpop.permute.xlu0 %3389  ;;  %v4898_v37 = vpop.eup %4897  ;;  %v5284_v29 = vld [vmem:[%s5514_s11 + $0x258] sm:$0xff]  ;;  %v5285_v62 = vld [vmem:[%s5514_s11 + $0x248] sm:$0xff] }
 0x217   : > { %v3939_v0 = vmul.f32 %v3390_v5, %v2832_v10  ;;  %v4900_v25 = vpop.eup %4899  ;;  %4903 = vtanh.f32 %v5277_v6  ;;  %v2853_v5 = vadd.f32 %v6422_v55, %v6685_v24 }
 0x218   : > { %v4068_v46 = vadd.f32 %v5276_v8, %v3940_v28  ;;  %4905 = vtanh.f32 %v5279_v31 }
 0x219   : > { %v4067_v2 = vadd.f32 %v5278_v27, %v3939_v0  ;;  %v1865_v39 = vpop.f32.mrf.mxu0  ;;  %4907 = vtanh.f32 %v5280_v32 }
 0x21a   : > { %4196 = vst.msk [vmem:[%s6449_s24 + $0xb8] sm:$0xff] %vm1316_vm0, %v4068_v46  ;;  %v1866_v30 = vadd.f32 %v1865_v39, %v1237_v23  ;;  %v6759_v17 = vpop.f32.mrf.mxu1  ;;  %v3445_v23 = vpop.permute.xlu2 %3444  ;;  %v1239_v39 = vmul.f32 %v6608_v48, %v5973_v21 }
 0x21b   : > { %4195 = vst.msk [vmem:[%s6449_s24 + $0xb0] sm:$0xff] %vm1316_vm0, %v4067_v2  ;;  %3619 = vperm.xlu1 %4660, %v4896_v60   ;;  %3624 = vperm.xlu2 %4661, %v4898_v37   ;;  %v2850_v37 = vadd.f32 %v6422_v55, %v6657_v40  ;;  %v5286_v40 = vld [vmem:[%s5523_s14 + $0x108] sm:$0xff] }
 0x21c   : > { %v4902_v57 = vpop.eup %4901  ;;  %v2152_v4 = vadd.f32 %v6598_v11, %v1866_v30  ;;  %3614 = vperm.xlu0 %4659, %v4900_v25   ;;  %v5287_v30 = vld [vmem:[%s5523_s14 + $0xe8] sm:$0xff] }
 0x21d   : > { %v3410_v51 = vpop.permute.xlu1 %3409  ;;  %4556 = vmatmul.msk.f32.gmra.mxu1 %vm2363_vm1, %v4902_v57  ;;  %v4904_v13 = vpop.eup %4903 }
 0x21e   : > { %4909 = vtanh.f32 %v2152_v4  ;;  %v3943_v42 = vmul.f32 %v3410_v51, %v2844_v34  ;;  %v3405_v15 = vpop.permute.xlu0 %3404  ;;  %v4906_v7 = vpop.eup %4905  ;;  %v5288_v34 = vld [vmem:[%s5514_s11 + $0x268] sm:$0xff]  ;;  %v5289_v4 = vld [vmem:[%s5523_s14 + $0xe0] sm:$0xff] }
 0x21f   : > { %v3942_v38 = vmul.f32 %v3405_v15, %v2841_v19  ;;  %v4908_v45 = vpop.eup %4907  ;;  %4911 = vtanh.f32 %v5282_v33 }
 0x220   : > { %v4071_v44 = vadd.f32 %v5281_v54, %v3943_v42  ;;  %4913 = vtanh.f32 %v5284_v29  ;;  %v5290_v42 = vld [vmem:[%s5514_s11 + $0x270] sm:$0xff]  ;;  %v2859_v54 = vadd.f32 %v6422_v55, %v6737_v9  ;;  %v5292_v29 = vld [vmem:[%s5523_s14 + $0x100] sm:$0xff] }
 0x221   : > { %v4070_v63 = vadd.f32 %v5283_v61, %v3942_v38  ;;  %v1868_v47 = vpop.f32.mrf.mxu0  ;;  %4915 = vtanh.f32 %v5285_v62  ;;  %v5293_v9 = vld [vmem:[%s5514_s11 + $0x280] sm:$0xff] }
 0x222   : > { %4199 = vst.msk [vmem:[%s6449_s24 + $0xd0] sm:$0xff] %vm1316_vm0, %v4071_v44  ;;  %v1869_v10 = vadd.f32 %v1868_v47, %v1238_v43  ;;  %v2864_v28 = vpop.f32.mrf.mxu1  ;;  %v1240_v47 = vmul.f32 %v6608_v48, %v5969_v16 }
 0x223   : > { %4198 = vst.msk [vmem:[%s6449_s24 + $0xc8] sm:$0xff] %vm1316_vm0, %v4070_v63  ;;  %3634 = vperm.xlu1 %4660, %v4904_v13   ;;  %3639 = vperm.xlu2 %4661, %v4906_v7   ;;  %v2865_v0 = vadd.f32 %v6422_v55, %v2864_v28  ;;  %v5291_v13 = vld [vmem:[%s5514_s11 + $0x260] sm:$0xff]  ;;  %v2862_v7 = vadd.f32 %v6422_v55, %v6759_v17  ;;  %v5294_v28 = vld [vmem:[%s5523_s14 + $0xf8] sm:$0xff] }
 0x224   : > { %v4910_v3 = vpop.eup %4909  ;;  %v2153_v60 = vadd.f32 %v6598_v11, %v1869_v10  ;;  %3629 = vperm.xlu0 %4659, %v4908_v45  }
 0x225   : > { %v3425_v8 = vpop.permute.xlu1 %3424  ;;  %v3950_v46 = vmul.f32 %v3445_v23, %v2865_v0  ;;  %4557 = vmatmul.msk.f32.gmra.mxu1 %vm2363_vm1, %v4910_v3  ;;  %v4912_v6 = vpop.eup %4911 }
 0x226   : > { %4917 = vtanh.f32 %v2153_v60  ;;  %v3946_v25 = vmul.f32 %v3425_v8, %v2853_v5  ;;  %v3420_v24 = vpop.permute.xlu0 %3419  ;;  %v4914_v2 = vpop.eup %4913  ;;  %v5295_v60 = vld [vmem:[%s5514_s11 + $0x288] sm:$0xff] }
 0x227   : > { %v3945_v27 = vmul.f32 %v3420_v24, %v2850_v37  ;;  %v4078_v31 = vadd.f32 %v5286_v40, %v3950_v46  ;;  %v4916_v57 = vpop.eup %4915  ;;  %4919 = vtanh.f32 %v5288_v34  ;;  %v5296_v37 = vld [vmem:[%s5514_s11 + $0x278] sm:$0xff]  ;;  %v5299_v34 = vld [vmem:[%s5523_s14 + $0x110] sm:$0xff] }
 0x228   : > { %v4074_v32 = vadd.f32 %v5287_v30, %v3946_v25  ;;  %4921 = vtanh.f32 %v5290_v42  ;;  %v5297_v30 = vld [vmem:[%s5523_s14 + $0x118] sm:$0xff] }
 0x229   : > { %v4073_v19 = vadd.f32 %v5289_v4, %v3945_v27  ;;  %v1871_v51 = vpop.f32.mrf.mxu0  ;;  %4206 = vst.msk [vmem:[%s6449_s24 + $0x108] sm:$0xff] %vm1316_vm0, %v4078_v31  ;;  %4923 = vtanh.f32 %v5291_v13  ;;  %v1241_v31 = vmul.f32 %v6608_v48, %v5910_v18 }
 0x22a   : > { %v1872_v15 = vadd.f32 %v1871_v51, %v1239_v39  ;;  %4202 = vst.msk [vmem:[%s6449_s24 + $0xe8] sm:$0xff] %vm1316_vm0, %v4074_v32  ;;  %v2867_v21 = vpop.f32.mrf.mxu1  ;;  %v5300_v51 = vld [vmem:[%s5514_s11 + $0x2a0] sm:$0xff] }
 0x22b   : > { %3649 = vperm.xlu1 %4660, %v4912_v6   ;;  %3654 = vperm.xlu2 %4661, %v4914_v2   ;;  %4201 = vst.msk [vmem:[%s6449_s24 + $0xe0] sm:$0xff] %vm1316_vm0, %v4073_v19  ;;  %v2868_v25 = vadd.f32 %v6422_v55, %v2867_v21 }
 0x22c   : > { %v4918_v38 = vpop.eup %4917  ;;  %v2154_v43 = vadd.f32 %v6598_v11, %v1872_v15  ;;  %3644 = vperm.xlu0 %4659, %v4916_v57   ;;  %v5301_v15 = vld [vmem:[%s5514_s11 + $0x290] sm:$0xff] }
 0x22d   : > { %v3440_v44 = vpop.permute.xlu1 %3439  ;;  %4558 = vmatmul.msk.f32.gmra.mxu1 %vm2363_vm1, %v4918_v38  ;;  %v4920_v61 = vpop.eup %4919  ;;  %v6835_v38 = vld [vmem:[%s7644_s5] ss:$0 sm:$0xff] }
 0x22e   : > { %4925 = vtanh.f32 %v2154_v43  ;;  %v3949_v45 = vmul.f32 %v3440_v44, %v2862_v7  ;;  %v3435_v33 = vpop.permute.xlu0 %3434  ;;  %v4922_v63 = vpop.eup %4921 }
 0x22f   : > { %v3948_v17 = vmul.f32 %v3435_v33, %v2859_v54  ;;  %v4924_v62 = vpop.eup %4923  ;;  %4927 = vtanh.f32 %v5293_v9  ;;  %v3460_v43 = vpop.permute.xlu2 %3459  ;;  %v1242_v33 = vmul.f32 %v6608_v48, %v5992_v52  ;;  %v5306_v9 = vld [vmem:[%s5514_s11 + $0x2a8] sm:$0xff] }
 0x230   : > { %v4077_v10 = vadd.f32 %v5292_v29, %v3949_v45  ;;  %4929 = vtanh.f32 %v5295_v60 }
 0x231   : > { %v4076_v3 = vadd.f32 %v5294_v28, %v3948_v17  ;;  %v1874_v5 = vpop.f32.mrf.mxu0  ;;  %4931 = vtanh.f32 %v5296_v37 }
 0x232   : > { %4205 = vst.msk [vmem:[%s6449_s24 + $0x100] sm:$0xff] %vm1316_vm0, %v4077_v10  ;;  %v1875_v0 = vadd.f32 %v1874_v5, %v1240_v47  ;;  %v2870_v23 = vpop.f32.mrf.mxu1  ;;  %v5304_v47 = vld [vmem:[%s5514_s11 + $0x2b0] sm:$0xff]  ;;  %v5305_v10 = vld [vmem:[%s5514_s11 + $0x2b8] sm:$0xff] }
 0x233   : > { %4204 = vst.msk [vmem:[%s6449_s24 + $0xf8] sm:$0xff] %vm1316_vm0, %v4076_v3  ;;  %3664 = vperm.xlu1 %4660, %v4920_v61   ;;  %3669 = vperm.xlu2 %4661, %v4922_v63   ;;  %v2871_v46 = vadd.f32 %v6422_v55, %v2870_v23  ;;  %v5298_v55 = vld [vmem:[%s5514_s11 + $0x298] sm:$0xff]  ;;  %v5303_v61 = vld [vmem:[%s5523_s14 + $0x120] sm:$0xff] }
 0x234   : > { %v4926_v16 = vpop.eup %4925  ;;  %v2155_v8 = vadd.f32 %v6598_v11, %v1875_v0  ;;  %3659 = vperm.xlu0 %4659, %v4924_v62  }
 0x235   : > { %v3455_v24 = vpop.permute.xlu1 %3454  ;;  %4559 = vmatmul.msk.f32.gmra.mxu1 %vm2363_vm1, %v4926_v16  ;;  %v4928_v2 = vpop.eup %4927  ;;  %v1243_v16 = vmul.f32 %v6608_v48, %v5988_v35 }
 0x236   : > { %4933 = vtanh.f32 %v2155_v8  ;;  %v3952_v6 = vmul.f32 %v3455_v24, %v2871_v46  ;;  %v3450_v27 = vpop.permute.xlu0 %3449  ;;  %v4930_v40 = vpop.eup %4929  ;;  %v5307_v8 = vld [vmem:[%s5523_s14 + $0x128] sm:$0xff] }
 0x237   : > { %v3951_v39 = vmul.f32 %v3450_v27, %v2868_v25  ;;  %v4932_v57 = vpop.eup %4931  ;;  %4935 = vtanh.f32 %v5298_v55  ;;  %v5308_v24 = vld [vmem:[%s5514_s11 + $0x2c8] sm:$0xff]  ;;  %v5309_v27 = vld [vmem:[%s5514_s11 + $0x2d0] sm:$0xff] }
 0x238   : > { %v4080_v32 = vadd.f32 %v5297_v30, %v3952_v6  ;;  %4937 = vtanh.f32 %v5300_v51 }
 0x239   : > { %v4079_v4 = vadd.f32 %v5299_v34, %v3951_v39  ;;  %v1877_v19 = vpop.f32.mrf.mxu0  ;;  %4939 = vtanh.f32 %v5301_v15  ;;  %v5310_v39 = vld [vmem:[%s5514_s11 + $0x2c0] sm:$0xff] }
 0x23a   : > { %4208 = vst.msk [vmem:[%s6449_s24 + $0x118] sm:$0xff] %vm1316_vm0, %v4080_v32  ;;  %v1878_v42 = vadd.f32 %v1877_v19, %v1241_v31  ;;  %v2873_v13 = vpop.f32.mrf.mxu1  ;;  %v5311_v19 = vld [vmem:[%s5523_s14 + $0x130] sm:$0xff]  ;;  %v5312_v15 = vld [vmem:[%s5514_s11 + $0x2e0] sm:$0xff] }
 0x23b   : > { %4207 = vst.msk [vmem:[%s6449_s24 + $0x110] sm:$0xff] %vm1316_vm0, %v4079_v4  ;;  %3679 = vperm.xlu1 %4660, %v4928_v2   ;;  %3684 = vperm.xlu2 %4661, %v4930_v40   ;;  %v2874_v7 = vadd.f32 %v6835_v38, %v2873_v13  ;;  %v1244_v4 = vmul.f32 %v6608_v48, %v5929_v59 }
 0x23c   : > { %v4934_v18 = vpop.eup %4933  ;;  %v2156_v21 = vadd.f32 %v6598_v11, %v1878_v42  ;;  %3674 = vperm.xlu0 %4659, %v4932_v57  }
 0x23d   : > { %v3953_v54 = vmul.f32 %v3460_v43, %v2874_v7  ;;  %4560 = vmatmul.msk.f32.gmra.mxu1 %vm2363_vm1, %v4934_v18  ;;  %v4936_v44 = vpop.eup %4935  ;;  %v3470_v32 = vpop.permute.xlu1 %3469  ;;  %v5313_v18 = vld [vmem:[%s5514_s11 + $0x2e8] sm:$0xff]  ;;  %v5314_v7 = vld [vmem:[%s5514_s11 + $0x2d8] sm:$0xff] }
 0x23e   : > { %4941 = vtanh.f32 %v2156_v21  ;;  %v4938_v45 = vpop.eup %4937  ;;  %v3465_v60 = vpop.permute.xlu0 %3464 }
 0x23f   : > { %v4081_v17 = vadd.f32 %v5303_v61, %v3953_v54  ;;  %v4940_v63 = vpop.eup %4939  ;;  %4943 = vtanh.f32 %v5304_v47  ;;  %v5315_v47 = vld [vmem:[%s5523_s14 + $0x138] sm:$0xff] }
 0x240   : > { %4945 = vtanh.f32 %v5305_v10 }
 0x241   : > { %v1880_v29 = vpop.f32.mrf.mxu0  ;;  %4209 = vst.msk [vmem:[%s6449_s24 + $0x120] sm:$0xff] %vm1316_vm0, %v4081_v17  ;;  %4947 = vtanh.f32 %v5306_v9 }
 0x242   : > { %v1881_v62 = vadd.f32 %v1880_v29, %v1242_v33  ;;  %v2876_v28 = vpop.f32.mrf.mxu1 }
 0x243   : > { %3694 = vperm.xlu1 %4660, %v4936_v44   ;;  %3699 = vperm.xlu2 %4661, %v4938_v45   ;;  %v2877_v5 = vadd.f32 %v6835_v38, %v2876_v28  ;;  %v3475_v45 = vpop.permute.xlu2 %3474  ;;  %v5317_v28 = vld [vmem:[%s5514_s11 + $0x300] sm:$0xff] }
 0x244   : > { %v4942_v3 = vpop.eup %4941  ;;  %v2157_v52 = vadd.f32 %v6598_v11, %v1881_v62  ;;  %3689 = vperm.xlu0 %4659, %v4940_v63   ;;  %v1245_v63 = vmul.f32 %v6608_v48, %v6013_v26  ;;  %v5316_v62 = vld [vmem:[%s5514_s11 + $0x2f8] sm:$0xff] }
 0x245   : > { %v3954_v0 = vmul.f32 %v3465_v60, %v2877_v5  ;;  %4561 = vmatmul.msk.f32.gmra.mxu1 %vm2363_vm1, %v4942_v3  ;;  %v4944_v37 = vpop.eup %4943 }
 0x246   : > { %4949 = vtanh.f32 %v2157_v52  ;;  %v4946_v23 = vpop.eup %4945  ;;  %v5318_v52 = vld [vmem:[%s5514_s11 + $0x2f0] sm:$0xff] }
 0x247   : > { %v4082_v46 = vadd.f32 %v5307_v8, %v3954_v0  ;;  %v4948_v25 = vpop.eup %4947  ;;  %4951 = vtanh.f32 %v5308_v24 }
 0x248   : > { %4953 = vtanh.f32 %v5309_v27  ;;  %v5320_v27 = vld [vmem:[%s5514_s11 + $0x310] sm:$0xff] }
 0x249   : > { %v1883_v6 = vpop.f32.mrf.mxu0  ;;  %4210 = vst.msk [vmem:[%s6449_s24 + $0x128] sm:$0xff] %vm1316_vm0, %v4082_v46  ;;  %4955 = vtanh.f32 %v5310_v39  ;;  %v1246_v46 = vmul.f32 %v6608_v48, %v6007_v12  ;;  %v5321_v39 = vld [vmem:[%s5514_s11 + $0x318] sm:$0xff] }
 0x24a   : > { %v1884_v2 = vadd.f32 %v1883_v6, %v1243_v16  ;;  %v2879_v40 = vpop.f32.mrf.mxu1 }
 0x24b   : > { %3709 = vperm.xlu1 %4660, %v4944_v37   ;;  %3714 = vperm.xlu2 %4661, %v4946_v23   ;;  %v2880_v30 = vadd.f32 %v6835_v38, %v2879_v40  ;;  %v3480_v37 = vpop.permute.xlu0 %3479 }
 0x24c   : > { %v4950_v31 = vpop.eup %4949  ;;  %v2158_v35 = vadd.f32 %v6598_v11, %v1884_v2  ;;  %3704 = vperm.xlu0 %4659, %v4948_v25   ;;  %v5319_v25 = vld [vmem:[%s5523_s14 + $0x140] sm:$0xff] }
 0x24d   : > { %v3955_v57 = vmul.f32 %v3470_v32, %v2880_v30  ;;  %4562 = vmatmul.msk.f32.gmra.mxu1 %vm2363_vm1, %v4950_v31  ;;  %v4952_v55 = vpop.eup %4951  ;;  %v5322_v31 = vld [vmem:[%s5514_s11 + $0x308] sm:$0xff] }
 0x24e   : > { %4957 = vtanh.f32 %v2158_v35  ;;  %v4954_v34 = vpop.eup %4953 }
 0x24f   : > { %v4083_v51 = vadd.f32 %v5311_v19, %v3955_v57  ;;  %v4956_v42 = vpop.eup %4955  ;;  %4959 = vtanh.f32 %v5312_v15  ;;  %v3485_v57 = vpop.permute.xlu1 %3484  ;;  %v1247_v19 = vmul.f32 %v6608_v48, %v5948_v1 }
 0x250   : > { %4961 = vtanh.f32 %v5313_v18 }
 0x251   : > { %v1886_v13 = vpop.f32.mrf.mxu0  ;;  %4211 = vst.msk [vmem:[%s6449_s24 + $0x130] sm:$0xff] %vm1316_vm0, %v4083_v51  ;;  %4963 = vtanh.f32 %v5314_v7  ;;  %v5323_v51 = vld [vmem:[%s5523_s14 + $0x148] sm:$0xff] }
 0x252   : > { %v1887_v21 = vadd.f32 %v1886_v13, %v1244_v4  ;;  %v2882_v43 = vpop.f32.mrf.mxu1  ;;  %v5324_v13 = vld [vmem:[%s5514_s11 + $0x328] sm:$0xff] }
 0x253   : > { %3724 = vperm.xlu1 %4660, %v4952_v55   ;;  %3729 = vperm.xlu2 %4661, %v4954_v34   ;;  %v2883_v44 = vadd.f32 %v6835_v38, %v2882_v43  ;;  %v5326_v43 = vld [vmem:[%s5514_s11 + $0x320] sm:$0xff] }
 0x254   : > { %v4958_v54 = vpop.eup %4957  ;;  %v2159_v59 = vadd.f32 %v6598_v11, %v1887_v21  ;;  %3719 = vperm.xlu0 %4659, %v4956_v42   ;;  %v5325_v21 = vld [vmem:[%s5514_s11 + $0x330] sm:$0xff] }
 0x255   : > { %v3956_v33 = vmul.f32 %v3475_v45, %v2883_v44  ;;  %4563 = vmatmul.msk.f32.gmra.mxu1 %vm2363_vm1, %v4958_v54  ;;  %v4960_v61 = vpop.eup %4959  ;;  %v3490_v45 = vpop.permute.xlu2 %3489 }
 0x256   : > { %4965 = vtanh.f32 %v2159_v59  ;;  %v4962_v17 = vpop.eup %4961 }
 0x257   : > { %v4084_v29 = vadd.f32 %v5315_v47, %v3956_v33  ;;  %v4964_v10 = vpop.eup %4963  ;;  %4967 = vtanh.f32 %v5316_v62  ;;  %v5327_v47 = vld [vmem:[%s5523_s14 + $0x150] sm:$0xff]  ;;  %v5328_v62 = vld [vmem:[%s5514_s11 + $0x340] sm:$0xff] }
 0x258   : > { %4969 = vtanh.f32 %v5317_v28  ;;  %v5329_v28 = vld [vmem:[%s5514_s11 + $0x348] sm:$0xff] }
 0x259   : > { %v1889_v9 = vpop.f32.mrf.mxu0  ;;  %4212 = vst.msk [vmem:[%s6449_s24 + $0x138] sm:$0xff] %vm1316_vm0, %v4084_v29  ;;  %4971 = vtanh.f32 %v5318_v52  ;;  %v5330_v52 = vld [vmem:[%s5514_s11 + $0x338] sm:$0xff] }
 0x25a   : > { %v1890_v3 = vadd.f32 %v1889_v9, %v1245_v63  ;;  %v2885_v5 = vpop.f32.mrf.mxu1  ;;  %v1248_v63 = vmul.f32 %v6608_v48, %v6032_v22 }
 0x25b   : > { %3739 = vperm.xlu1 %4660, %v4960_v61   ;;  %3744 = vperm.xlu2 %4661, %v4962_v17   ;;  %v2886_v0 = vadd.f32 %v6835_v38, %v2885_v5 }
 0x25c   : > { %v4966_v60 = vpop.eup %4965  ;;  %v2160_v26 = vadd.f32 %v6598_v11, %v1890_v3  ;;  %3734 = vperm.xlu0 %4659, %v4964_v10  }
 0x25d   : > { %v3957_v23 = vmul.f32 %v3480_v37, %v2886_v0  ;;  %4564 = vmatmul.msk.f32.gmra.mxu1 %vm2363_vm1, %v4966_v60  ;;  %v4968_v16 = vpop.eup %4967  ;;  %v3495_v0 = vpop.permute.xlu0 %3494 }
 0x25e   : > { %4973 = vtanh.f32 %v2160_v26  ;;  %v4970_v8 = vpop.eup %4969 }
 0x25f   : > { %v4085_v24 = vadd.f32 %v5319_v25, %v3957_v23  ;;  %v4972_v6 = vpop.eup %4971  ;;  %4975 = vtanh.f32 %v5320_v27 }
 0x260   : > { %4977 = vtanh.f32 %v5321_v39 }
 0x261   : > { %v1892_v2 = vpop.f32.mrf.mxu0  ;;  %4213 = vst.msk [vmem:[%s6449_s24 + $0x140] sm:$0xff] %vm1316_vm0, %v4085_v24  ;;  %4979 = vtanh.f32 %v5322_v31 }
 0x262   : > { %v1893_v40 = vadd.f32 %v1892_v2, %v1246_v46  ;;  %v2888_v35 = vpop.f32.mrf.mxu1  ;;  %v5331_v46 = vld [vmem:[%s5523_s14 + $0x158] sm:$0xff]  ;;  %v5333_v2 = vld [vmem:[%s5514_s11 + $0x360] sm:$0xff] }
 0x263   : > { %3754 = vperm.xlu1 %4660, %v4968_v16   ;;  %3759 = vperm.xlu2 %4661, %v4970_v8   ;;  %v2889_v32 = vadd.f32 %v6835_v38, %v2888_v35  ;;  %v1249_v8 = vmul.f32 %v6608_v48, %v6028_v58 }
 0x264   : > { %v4974_v30 = vpop.eup %4973  ;;  %v2161_v12 = vadd.f32 %v6598_v11, %v1893_v40  ;;  %3749 = vperm.xlu0 %4659, %v4972_v6   ;;  %v5332_v6 = vld [vmem:[%s5514_s11 + $0x358] sm:$0xff]  ;;  %v5334_v40 = vld [vmem:[%s5514_s11 + $0x350] sm:$0xff] }
 0x265   : > { %v3958_v55 = vmul.f32 %v3485_v57, %v2889_v32  ;;  %4565 = vmatmul.msk.f32.gmra.mxu1 %vm2363_vm1, %v4974_v30  ;;  %v4976_v34 = vpop.eup %4975 }
 0x266   : > { %4981 = vtanh.f32 %v2161_v12  ;;  %v4978_v4 = vpop.eup %4977  ;;  %v3500_v12 = vpop.permute.xlu1 %3499 }
 0x267   : > { %v4086_v42 = vadd.f32 %v5323_v51, %v3958_v55  ;;  %v4980_v15 = vpop.eup %4979  ;;  %4983 = vtanh.f32 %v5324_v13 }
 0x268   : > { %4985 = vtanh.f32 %v5325_v21 }
 0x269   : > { %v1895_v18 = vpop.f32.mrf.mxu0  ;;  %4214 = vst.msk [vmem:[%s6449_s24 + $0x148] sm:$0xff] %vm1316_vm0, %v4086_v42  ;;  %4987 = vtanh.f32 %v5326_v43 }
 0x26a   : > { %v1896_v7 = vadd.f32 %v1895_v18, %v1247_v19  ;;  %v2891_v54 = vpop.f32.mrf.mxu1  ;;  %v5338_v18 = vld [vmem:[%s5514_s11 + $0x368] sm:$0xff] }
 0x26b   : > { %3769 = vperm.xlu1 %4660, %v4976_v34   ;;  %3774 = vperm.xlu2 %4661, %v4978_v4   ;;  %v2892_v44 = vadd.f32 %v6835_v38, %v2891_v54  ;;  %v1250_v34 = vmul.f32 %v6608_v48, %v5967_v36  ;;  %v5335_v4 = vld [vmem:[%s5523_s14 + $0x160] sm:$0xff]  ;;  %v3505_v54 = vpop.permute.xlu2 %3504 }
 0x26c   : > { %v4982_v59 = vpop.eup %4981  ;;  %v2162_v1 = vadd.f32 %v6598_v11, %v1896_v7  ;;  %3764 = vperm.xlu0 %4659, %v4980_v15   ;;  %v5337_v15 = vld [vmem:[%s5514_s11 + $0x378] sm:$0xff]  ;;  %v6938_v36 = vld [vmem:[%s7642_s3 + $0x1] ss:$0 sm:$0xff] }
 0x26d   : > { %v3959_v33 = vmul.f32 %v3490_v45, %v2892_v44  ;;  %4566 = vmatmul.msk.f32.gmra.mxu1 %vm2363_vm1, %v4982_v59  ;;  %v4984_v61 = vpop.eup %4983  ;;  %v6946_v45 = vld [vmem:[%s7642_s3] ss:$0 sm:$0xff] }
 0x26e   : > { %4989 = vtanh.f32 %v2162_v1  ;;  %v4986_v17 = vpop.eup %4985 }
 0x26f   : > { %v4087_v29 = vadd.f32 %v5327_v47, %v3959_v33  ;;  %v4988_v10 = vpop.eup %4987  ;;  %4991 = vtanh.f32 %v5328_v62  ;;  %v1251_v33 = vmul.f32 %v6946_v45, %v6053_v50  ;;  %v5342_v47 = vld [vmem:[%s5514_s11 + $0x388] sm:$0xff] }
 0x270   : > { %4993 = vtanh.f32 %v5329_v28 }
 0x271   : > { %v1898_v9 = vpop.f32.mrf.mxu0  ;;  %4215 = vst.msk [vmem:[%s6449_s24 + $0x150] sm:$0xff] %vm1316_vm0, %v4087_v29  ;;  %4995 = vtanh.f32 %v5330_v52 }
 0x272   : > { %v1899_v3 = vadd.f32 %v1898_v9, %v1248_v63  ;;  %v2894_v5 = vpop.f32.mrf.mxu1  ;;  %v5344_v9 = vld [vmem:[%s5514_s11 + $0x380] sm:$0xff] }
 0x273   : > { %3784 = vperm.xlu1 %4660, %v4984_v61   ;;  %3789 = vperm.xlu2 %4661, %v4986_v17   ;;  %v2895_v26 = vadd.f32 %v6835_v38, %v2894_v5  ;;  %v5341_v61 = vld [vmem:[%s5523_s14 + $0x168] sm:$0xff]  ;;  %v3510_v5 = vpop.permute.xlu0 %3509 }
 0x274   : > { %v4990_v60 = vpop.eup %4989  ;;  %v2163_v22 = vadd.f32 %v6598_v11, %v1899_v3  ;;  %3779 = vperm.xlu0 %4659, %v4988_v10   ;;  %v5343_v10 = vld [vmem:[%s5514_s11 + $0x390] sm:$0xff] }
 0x275   : > { %v3960_v37 = vmul.f32 %v3495_v0, %v2895_v26  ;;  %4567 = vmatmul.msk.f32.gmra.mxu1 %vm2363_vm1, %v4990_v60  ;;  %v4992_v23 = vpop.eup %4991  ;;  %v7743_v0 = vld [vmem:[#allocation23_spill] sm:$0xff] }
 0x276   : > { %4997 = vtanh.f32 %v2163_v22  ;;  %v4994_v16 = vpop.eup %4993 }
 0x277   : > { %v4088_v25 = vadd.f32 %v5331_v46, %v3960_v37  ;;  %v4996_v24 = vpop.eup %4995  ;;  %4999 = vtanh.f32 %v5332_v6  ;;  %v1252_v37 = vmul.f32 %v6946_v45, %v7743_v0  ;;  %v5346_v46 = vld [vmem:[%s5514_s11 + $0x3a0] sm:$0xff] }
 0x278   : > { %5001 = vtanh.f32 %v5333_v2 }
 0x279   : > { %v1901_v27 = vpop.f32.mrf.mxu0  ;;  %4216 = vst.msk [vmem:[%s6449_s24 + $0x158] sm:$0xff] %vm1316_vm0, %v4088_v25  ;;  %5003 = vtanh.f32 %v5334_v40 }
 0x27a   : > { %v1902_v39 = vadd.f32 %v1901_v27, %v1249_v8  ;;  %v2897_v31 = vpop.f32.mrf.mxu1  ;;  %v5347_v27 = vld [vmem:[%s5514_s11 + $0x3a8] sm:$0xff] }
 0x27b   : > { %3799 = vperm.xlu1 %4660, %v4992_v23   ;;  %3804 = vperm.xlu2 %4661, %v4994_v16   ;;  %v2898_v30 = vadd.f32 %v6835_v38, %v2897_v31  ;;  %v5345_v23 = vld [vmem:[%s5523_s14 + $0x170] sm:$0xff] }
 0x27c   : > { %v4998_v35 = vpop.eup %4997  ;;  %v2164_v58 = vadd.f32 %v6598_v11, %v1902_v39  ;;  %3794 = vperm.xlu0 %4659, %v4996_v24   ;;  %v5336_v11 = vld [vmem:[%s5514_s11 + $0x370] sm:$0xff]  ;;  %v7744_v24 = vld [vmem:[#allocation17_spill] sm:$0xff] }
 0x27d   : > { %v3961_v32 = vmul.f32 %v3500_v12, %v2898_v30  ;;  %4568 = vmatmul.msk.f32.gmra.mxu1 %vm2363_vm1, %v4998_v35  ;;  %v5000_v57 = vpop.eup %4999  ;;  %v1253_v6 = vmul.f32 %v6946_v45, %v7744_v24  ;;  %v5348_v39 = vld [vmem:[%s5514_s11 + $0x398] sm:$0xff]  ;;  %v3515_v30 = vpop.permute.xlu1 %3514  ;;  %v7745_v12 = vld [vmem:[#allocation2_spill] sm:$0xff] }
 0x27e   : > { %5005 = vtanh.f32 %v2164_v58  ;;  %v5002_v55 = vpop.eup %5001  ;;  %v7750_v24 = vld [vmem:[#allocation18_spill] sm:$0xff] }
 0x27f   : > { %v4089_v19 = vadd.f32 %v5335_v4, %v3961_v32  ;;  %v5004_v51 = vpop.eup %5003  ;;  %5007 = vtanh.f32 %v5336_v11  ;;  %v1914_v32 = vadd.f32 %v7745_v12, %v1253_v6  ;;  %v5349_v4 = vld [vmem:[%s5523_s14 + $0x178] sm:$0xff]  ;;  %v1256_v6 = vmul.f32 %v6946_v45, %v7750_v24 }
 0x280   : > { %5009 = vtanh.f32 %v5337_v15  ;;  %v5350_v11 = vld [vmem:[%s5514_s11 + $0x3b8] sm:$0xff]  ;;  %v7746_v15 = vld [vmem:[#allocation27_spill] sm:$0xff] }
 0x281   : > { %v1904_v42 = vpop.f32.mrf.mxu0  ;;  %4217 = vst.msk [vmem:[%s6449_s24 + $0x160] sm:$0xff] %vm1316_vm0, %v4089_v19  ;;  %5011 = vtanh.f32 %v5338_v18  ;;  %v5351_v18 = vld [vmem:[%s5514_s11 + $0x3c0] sm:$0xff] }
 0x282   : > { %v1905_v13 = vadd.f32 %v1904_v42, %v1250_v34  ;;  %v2900_v21 = vpop.f32.mrf.mxu1  ;;  %v2168_v42 = vadd.f32 %v6938_v36, %v1914_v32 }
 0x283   : > { %3814 = vperm.xlu1 %4660, %v5000_v57   ;;  %3819 = vperm.xlu2 %4661, %v5002_v55   ;;  %v2901_v43 = vadd.f32 %v6835_v38, %v2900_v21  ;;  %v5352_v21 = vld [vmem:[%s5514_s11 + $0x3b0] sm:$0xff] }
 0x284   : > { %v5006_v7 = vpop.eup %5005  ;;  %v2165_v48 = vadd.f32 %v6938_v36, %v1905_v13  ;;  %3809 = vperm.xlu0 %4659, %v5004_v51   ;;  %v1254_v13 = vmul.f32 %v6946_v45, %v7746_v15  ;;  %v5362_v15 = vld [vmem:[%s5514_s11 + $0x3f8] sm:$0xff] }
 0x285   : > { %v3962_v59 = vmul.f32 %v3505_v54, %v2901_v43  ;;  %4569 = vmatmul.msk.f32.gmra.mxu1 %vm2363_vm1, %v5006_v7  ;;  %v5008_v1 = vpop.eup %5007  ;;  %v3520_v54 = vpop.permute.xlu2 %3519 }
 0x286   : > { %5013 = vtanh.f32 %v2165_v48  ;;  %v5010_v44 = vpop.eup %5009 }
 0x287   : > { %v4090_v17 = vadd.f32 %v5341_v61, %v3962_v59  ;;  %v5012_v63 = vpop.eup %5011  ;;  %5015 = vtanh.f32 %v5342_v47  ;;  %v7747_v59 = vld [vmem:[#allocation3_spill] sm:$0xff] }
 0x288   : > { %5017 = vtanh.f32 %v5343_v10  ;;  %v7748_v10 = vld [vmem:[#allocation26_spill] sm:$0xff] }
 0x289   : > { %v1907_v29 = vpop.f32.mrf.mxu0  ;;  %4218 = vst.msk [vmem:[%s6449_s24 + $0x168] sm:$0xff] %vm1316_vm0, %v4090_v17  ;;  %5019 = vtanh.f32 %v5344_v9  ;;  %v5353_v17 = vld [vmem:[%s5523_s14 + $0x180] sm:$0xff] }
 0x28a   : > { %v1908_v62 = vadd.f32 %v1907_v29, %v1251_v33  ;;  %v2903_v28 = vpop.f32.mrf.mxu1  ;;  %v5354_v29 = vld [vmem:[%s5514_s11 + $0x3d0] sm:$0xff] }
 0x28b   : > { %3829 = vperm.xlu1 %4660, %v5008_v1   ;;  %3834 = vperm.xlu2 %4661, %v5010_v44   ;;  %v2904_v52 = vadd.f32 %v6835_v38, %v2903_v28  ;;  %v1917_v1 = vadd.f32 %v7747_v59, %v1254_v13  ;;  %v5355_v28 = vld [vmem:[%s5514_s11 + $0x3d8] sm:$0xff] }
 0x28c   : > { %v5014_v3 = vpop.eup %5013  ;;  %v2166_v50 = vadd.f32 %v6938_v36, %v1908_v62  ;;  %3824 = vperm.xlu0 %4659, %v5012_v63   ;;  %v1255_v62 = vmul.f32 %v6946_v45, %v7748_v10  ;;  %v5363_v59 = vld [vmem:[%s5523_s14 + $0x198] sm:$0xff] }
 0x28d   : > { %v3963_v60 = vmul.f32 %v3510_v5, %v2904_v52  ;;  %4570 = vmatmul.msk.f32.gmra.mxu1 %vm2363_vm1, %v5014_v3  ;;  %v5016_v22 = vpop.eup %5015  ;;  %v2169_v9 = vadd.f32 %v6938_v36, %v1917_v1  ;;  %v5356_v3 = vld [vmem:[%s5514_s11 + $0x3c8] sm:$0xff] }
 0x28e   : > { %5021 = vtanh.f32 %v2166_v50  ;;  %v5018_v26 = vpop.eup %5017 }
 0x28f   : > { %v4091_v16 = vadd.f32 %v5345_v23, %v3963_v60  ;;  %v5020_v8 = vpop.eup %5019  ;;  %5023 = vtanh.f32 %v5346_v46  ;;  %v3525_v60 = vpop.permute.xlu0 %3524 }
 0x290   : > { %5025 = vtanh.f32 %v5347_v27 }
 0x291   : > { %v1910_v25 = vpop.f32.mrf.mxu0  ;;  %4219 = vst.msk [vmem:[%s6449_s24 + $0x170] sm:$0xff] %vm1316_vm0, %v4091_v16  ;;  %5027 = vtanh.f32 %v5348_v39  ;;  %v5357_v16 = vld [vmem:[%s5523_s14 + $0x188] sm:$0xff]  ;;  %v5360_v39 = vld [vmem:[%s5514_s11 + $0x3e0] sm:$0xff] }
 0x292   : > { %v1911_v2 = vadd.f32 %v1910_v25, %v1252_v37  ;;  %v2906_v40 = vpop.f32.mrf.mxu1  ;;  %v5358_v25 = vld [vmem:[%s5514_s11 + $0x3e8] sm:$0xff] }
 0x293   : > { %3844 = vperm.xlu1 %4660, %v5016_v22   ;;  %3849 = vperm.xlu2 %4661, %v5018_v26   ;;  %v2907_v58 = vadd.f32 %v6835_v38, %v2906_v40  ;;  %v7749_v22 = vld [vmem:[#allocation4_spill] sm:$0xff] }
 0x294   : > { %v5022_v31 = vpop.eup %5021  ;;  %v2167_v35 = vadd.f32 %v6938_v36, %v1911_v2  ;;  %3839 = vperm.xlu0 %4659, %v5020_v8   ;;  %v1920_v26 = vadd.f32 %v7749_v22, %v1255_v62  ;;  %v5359_v2 = vld [vmem:[%s5514_s11 + $0x3f0] sm:$0xff]  ;;  %v7755_v62 = vld [vmem:[#allocation7_spill] sm:$0xff] }
 0x295   : > { %v3964_v57 = vmul.f32 %v3515_v30, %v2907_v58  ;;  %4571 = vmatmul.msk.f32.gmra.mxu1 %vm2363_vm1, %v5022_v31  ;;  %v5024_v55 = vpop.eup %5023  ;;  %v3530_v58 = vpop.permute.xlu1 %3529  ;;  %v7751_v30 = vld [vmem:[#allocation5_spill] sm:$0xff] }
 0x296   : > { %5029 = vtanh.f32 %v2167_v35  ;;  %v5026_v34 = vpop.eup %5025  ;;  %v2170_v27 = vadd.f32 %v6938_v36, %v1920_v26  ;;  %v1923_v12 = vadd.f32 %v7751_v30, %v1256_v6  ;;  %v7758_v6 = vld [vmem:[#allocation35_spill] sm:$0xff] }
 0x297   : > { %v4092_v19 = vadd.f32 %v5349_v4, %v3964_v57  ;;  %v5028_v51 = vpop.eup %5027  ;;  %5031 = vtanh.f32 %v5350_v11  ;;  %v7752_v11 = vld [vmem:[#allocation31_spill] sm:$0xff]  ;;  %v3540_v10 = vpop.permute.xlu0 %3539 }
 0x298   : > { %5033 = vtanh.f32 %v5351_v18 }
 0x299   : > { %4220 = vst.msk [vmem:[%s6449_s24 + $0x178] sm:$0xff] %vm1316_vm0, %v4092_v19  ;;  %5035 = vtanh.f32 %v5352_v21 }
 0x29a   : > { %v2909_v7 = vpop.f32.mrf.mxu1  ;;  %5037 = vtanh.f32 %v2168_v42  ;;  %v1257_v42 = vmul.f32 %v6946_v45, %v7752_v11 }
 0x29b   : > { %3859 = vperm.xlu1 %4660, %v5024_v55   ;;  %3864 = vperm.xlu2 %4661, %v5026_v34   ;;  %v2910_v43 = vadd.f32 %v6835_v38, %v2909_v7  ;;  %5039 = vtanh.f32 %v5354_v29  ;;  %v5361_v34 = vld [vmem:[%s5523_s14 + $0x190] sm:$0xff]  ;;  %v3535_v7 = vpop.permute.xlu2 %3534 }
 0x29c   : > { %v5030_v48 = vpop.eup %5029  ;;  %3854 = vperm.xlu0 %4659, %v5028_v51   ;;  %5041 = vtanh.f32 %v5355_v28  ;;  %v2171_v51 = vadd.f32 %v6938_v36, %v1923_v12  ;;  %v5366_v12 = vld [vmem:[%s5523_s14 + $0x1b0] sm:$0xff] }
 0x29d   : > { %4572 = vmatmul.msk.f32.vlgmr.msra.gmra.mxu2 %vm2363_vm1, %v5030_v48  ;;  %v3965_v44 = vmul.f32 %v3520_v54, %v2910_v43  ;;  %v5032_v33 = vpop.eup %5031  ;;  %5043 = vtanh.f32 %v5356_v3  ;;  %v7753_v48 = vld [vmem:[#allocation6_spill] sm:$0xff] }
 0x29e   : > { %v5034_v61 = vpop.eup %5033  ;;  %5045 = vtanh.f32 %v2169_v9  ;;  %v1926_v43 = vadd.f32 %v7753_v48, %v1257_v42  ;;  %v5364_v3 = vld [vmem:[%s5523_s14 + $0x1a0] sm:$0xff] }
 0x29f   : > { %v4093_v63 = vadd.f32 %v5353_v17, %v3965_v44  ;;  %v5036_v47 = vpop.eup %5035  ;;  %5047 = vtanh.f32 %v5358_v25  ;;  %v3555_v11 = vpop.permute.xlu0 %3554  ;;  %v7761_v42 = vld [vmem:[#allocation10_spill] sm:$0xff] }
 0x2a0   : > { %v5038_v52 = vpop.eup %5037  ;;  %5049 = vtanh.f32 %v5359_v2  ;;  %v2172_v17 = vadd.f32 %v6938_v36, %v1926_v43 }
 0x2a1   : > { %4221 = vst.msk [vmem:[%s6449_s24 + $0x180] sm:$0xff] %vm1316_vm0, %v4093_v63  ;;  %v5040_v37 = vpop.eup %5039  ;;  %5051 = vtanh.f32 %v5360_v39 }
 0x2a2   : > { %v2912_v50 = vpop.f32.mrf.mxu1  ;;  %v5042_v23 = vpop.eup %5041  ;;  %5053 = vtanh.f32 %v2170_v27  ;;  %v1260_v27 = vmul.f32 %v6946_v45, %v7758_v6 }
 0x2a3   : > { %3874 = vperm.xlu1 %4660, %v5032_v33   ;;  %3879 = vperm.xlu2 %4661, %v5034_v61   ;;  %v2913_v5 = vadd.f32 %v6835_v38, %v2912_v50  ;;  %v5044_v46 = vpop.eup %5043  ;;  %5055 = vtanh.f32 %v5362_v15  ;;  %v7754_v33 = vld [vmem:[#allocation30_spill] sm:$0xff] }
 0x2a4   : > { %3869 = vperm.xlu0 %4659, %v5036_v47   ;;  %v5046_v31 = vpop.eup %5045  ;;  %5057 = vtanh.f32 %v2171_v51  ;;  %v1258_v61 = vmul.f32 %v6946_v45, %v7754_v33  ;;  %v7763_v33 = vld [vmem:[#allocation11_spill] sm:$0xff] }
 0x2a5   : > { %4573 = vmatmul.msk.f32.gmra.mxu2 %vm2363_vm1, %v5038_v52  ;;  %v3966_v0 = vmul.f32 %v3525_v60, %v2913_v5  ;;  %v5048_v57 = vpop.eup %5047  ;;  %5059 = vtanh.f32 %v2172_v17  ;;  %v7756_v52 = vld [vmem:[#allocation20_spill] sm:$0xff] }
 0x2a6   : > { %v5050_v55 = vpop.eup %5049  ;;  %v1929_v9 = vadd.f32 %v7755_v62, %v1258_v61  ;;  %v1259_v5 = vmul.f32 %v6946_v45, %v7756_v52  ;;  %v7765_v52 = vld [vmem:[#allocation12_spill] sm:$0xff] }
 0x2a7   : > { %v4094_v8 = vadd.f32 %v5357_v16, %v3966_v0  ;;  %v5052_v19 = vpop.eup %5051 }
 0x2a8   : > { %v5054_v18 = vpop.eup %5053  ;;  %v2173_v60 = vadd.f32 %v6938_v36, %v1929_v9 }
 0x2a9   : > { %4222 = vst.msk [vmem:[%s6449_s24 + $0x188] sm:$0xff] %vm1316_vm0, %v4094_v8  ;;  %v5056_v44 = vpop.eup %5055 }
 0x2aa   : > { %v2915_v40 = vpop.f32.mrf.mxu1  ;;  %v5058_v47 = vpop.eup %5057  ;;  %5061 = vtanh.f32 %v2173_v60 }
 0x2ab   : > { %3889 = vperm.xlu1 %4660, %v5040_v37   ;;  %3894 = vperm.xlu2 %4661, %v5042_v23   ;;  %v2916_v35 = vadd.f32 %v6835_v38, %v2915_v40  ;;  %v5060_v26 = vpop.eup %5059  ;;  %v3545_v37 = vpop.permute.xlu1 %3544  ;;  %v7757_v23 = vld [vmem:[#allocation8_spill] sm:$0xff] }
 0x2ac   : > { %3884 = vperm.xlu0 %4659, %v5044_v46   ;;  %v1932_v16 = vadd.f32 %v7757_v23, %v1259_v5  ;;  %v5365_v46 = vld [vmem:[%s5523_s14 + $0x1a8] sm:$0xff] }
 0x2ad   : > { %4574 = vmatmul.msk.f32.gmra.mxu2 %vm2363_vm1, %v5046_v31  ;;  %v3967_v32 = vmul.f32 %v3530_v58, %v2916_v35  ;;  %v3550_v31 = vpop.permute.xlu2 %3549  ;;  %v7759_v35 = vld [vmem:[#allocation9_spill] sm:$0xff] }
 0x2ae   : > { %v2174_v24 = vadd.f32 %v6938_v36, %v1932_v16  ;;  %v1935_v58 = vadd.f32 %v7759_v35, %v1260_v27 }
 0x2af   : > { %v4095_v4 = vadd.f32 %v5361_v34, %v3967_v32 }
 0x2b0   : > { %v5062_v39 = vpop.eup %5061  ;;  %5063 = vtanh.f32 %v2174_v24  ;;  %v2175_v34 = vadd.f32 %v6938_v36, %v1935_v58  ;;  %v7767_v24 = vld [vmem:[#allocation13_spill] sm:$0xff] }
 0x2b1   : > { %4223 = vst.msk [vmem:[%s6449_s24 + $0x190] sm:$0xff] %vm1316_vm0, %v4095_v4 }
 0x2b2   : > { %v2918_v13 = vpop.f32.mrf.mxu1  ;;  %5065 = vtanh.f32 %v2175_v34 }
 0x2b3   : > { %3904 = vperm.xlu1 %4660, %v5048_v57   ;;  %3909 = vperm.xlu2 %4661, %v5050_v55   ;;  %v2919_v21 = vadd.f32 %v6835_v38, %v2918_v13  ;;  %v7760_v57 = vld [vmem:[#allocation33_spill] sm:$0xff] }
 0x2b4   : > { %3899 = vperm.xlu0 %4659, %v5052_v19   ;;  %v1261_v55 = vmul.f32 %v6946_v45, %v7760_v57  ;;  %v7769_v57 = vld [vmem:[#allocation14_spill] sm:$0xff] }
 0x2b5   : > { %4575 = vmatmul.msk.f32.gmra.mxu2 %vm2363_vm1, %v5054_v18  ;;  %v3968_v54 = vmul.f32 %v3535_v7, %v2919_v21  ;;  %v5367_v18 = vld [vmem:[%s5523_s14 + $0x1b8] sm:$0xff]  ;;  %v7762_v7 = vld [vmem:[#allocation22_spill] sm:$0xff] }
 0x2b6   : > { %v5064_v19 = vpop.eup %5063  ;;  %v1938_v15 = vadd.f32 %v7761_v42, %v1261_v55  ;;  %v1262_v48 = vmul.f32 %v6946_v45, %v7762_v7  ;;  %v7771_v7 = vld [vmem:[#allocation15_spill] sm:$0xff] }
 0x2b7   : > { %v4096_v1 = vadd.f32 %v5363_v59, %v3968_v54 }
 0x2b8   : > { %v2176_v43 = vadd.f32 %v6938_v36, %v1938_v15  ;;  %v5066_v59 = vpop.eup %5065  ;;  %v1941_v61 = vadd.f32 %v7763_v33, %v1262_v48 }
 0x2b9   : > { %4224 = vst.msk [vmem:[%s6449_s24 + $0x198] sm:$0xff] %vm1316_vm0, %v4096_v1 }
 0x2ba   : > { %v2921_v63 = vpop.f32.mrf.mxu1  ;;  %5067 = vtanh.f32 %v2176_v43 }
 0x2bb   : > { %v2922_v29 = vadd.f32 %v6835_v38, %v2921_v63  ;;  %v5368_v63 = vld [vmem:[%s5523_s14 + $0x1c0] sm:$0xff] }
 0x2bc   : > { %3914 = vperm.xlu0 %4659, %v5056_v44   ;;  %v3560_v44 = vpop.permute.xlu1 %3559 }
 0x2bd   : > { %4576 = vmatmul.msk.f32.gmra.mxu2 %vm2363_vm1, %v5058_v47  ;;  %v3969_v28 = vmul.f32 %v3540_v10, %v2922_v29  ;;  %v2177_v29 = vadd.f32 %v6938_v36, %v1941_v61  ;;  %v7764_v10 = vld [vmem:[#allocation38_spill] sm:$0xff] }
 0x2be   : > { %v1263_v62 = vmul.f32 %v6946_v45, %v7764_v10 }
 0x2bf   : > { %v4097_v50 = vadd.f32 %v5364_v3, %v3969_v28  ;;  %5069 = vtanh.f32 %v2177_v29  ;;  %v7773_v29 = vld [vmem:[#allocation16_spill] sm:$0xff] }
 0x2c0   : > { %v5068_v28 = vpop.eup %5067  ;;  %v1944_v5 = vadd.f32 %v7765_v52, %v1263_v62 }
 0x2c1   : > { %4225 = vst.msk [vmem:[%s6449_s24 + $0x1a0] sm:$0xff] %vm1316_vm0, %v4097_v50  ;;  %v3565_v50 = vpop.permute.xlu2 %3564 }
 0x2c2   : > { %v2924_v22 = vpop.f32.mrf.mxu1  ;;  %v2178_v23 = vadd.f32 %v6938_v36, %v1944_v5 }
 0x2c3   : > { %v2925_v0 = vadd.f32 %v6835_v38, %v2924_v22  ;;  %v5369_v22 = vld [vmem:[%s5523_s14 + $0x1c8] sm:$0xff] }
 0x2c4   : > { %5071 = vtanh.f32 %v2178_v23 }
 0x2c5   : > { %4577 = vmatmul.msk.f32.gmra.mxu2 %vm2363_vm1, %v5060_v26  ;;  %v3970_v8 = vmul.f32 %v3545_v37, %v2925_v0  ;;  %v7766_v0 = vld [vmem:[#allocation37_spill] sm:$0xff] }
 0x2c6   : > { %v1264_v37 = vmul.f32 %v6946_v45, %v7766_v0  ;;  %v7775_v0 = vld [vmem:[#allocation19_spill] sm:$0xff] }
 0x2c7   : > { %v4098_v25 = vadd.f32 %v5365_v46, %v3970_v8  ;;  %v5070_v8 = vpop.eup %5069 }
 0x2c8   : > { %v1947_v6 = vadd.f32 %v7767_v24, %v1264_v37 }
 0x2c9   : > { %4226 = vst.msk [vmem:[%s6449_s24 + $0x1a8] sm:$0xff] %vm1316_vm0, %v4098_v25  ;;  %v3570_v25 = vpop.permute.xlu0 %3569 }
 0x2ca   : > { %v2927_v2 = vpop.f32.mrf.mxu1  ;;  %v2179_v35 = vadd.f32 %v6938_v36, %v1947_v6 }
 0x2cb   : > { %v2928_v40 = vadd.f32 %v6835_v38, %v2927_v2  ;;  %v5370_v2 = vld [vmem:[%s5523_s14 + $0x1d0] sm:$0xff] }
 0x2cc   : > { %5073 = vtanh.f32 %v2179_v35 }
 0x2cd   : > { %4578 = vmatmul.msk.f32.gmra.mxu2 %vm2363_vm1, %v5062_v39  ;;  %v3971_v30 = vmul.f32 %v3550_v31, %v2928_v40  ;;  %v7768_v40 = vld [vmem:[#allocation25_spill] sm:$0xff] }
 0x2ce   : > { %v1265_v31 = vmul.f32 %v6946_v45, %v7768_v40  ;;  %v7777_v40 = vld [vmem:[#allocation21_spill] sm:$0xff] }
 0x2cf   : > { %v4099_v32 = vadd.f32 %v5366_v12, %v3971_v30  ;;  %v5072_v30 = vpop.eup %5071 }
 0x2d0   : > { %v1950_v55 = vadd.f32 %v7769_v57, %v1265_v31 }
 0x2d1   : > { %4227 = vst.msk [vmem:[%s6449_s24 + $0x1b0] sm:$0xff] %vm1316_vm0, %v4099_v32  ;;  %v3575_v32 = vpop.permute.xlu1 %3574 }
 0x2d2   : > { %v2930_v4 = vpop.f32.mrf.mxu1 }
 0x2d3   : > { %v2931_v51 = vadd.f32 %v6835_v38, %v2930_v4  ;;  %v5371_v4 = vld [vmem:[%s5523_s14 + $0x1d8] sm:$0xff] }
 0x2d5   : > { %4579 = vmatmul.msk.f32.gmra.mxu2 %vm2363_vm1, %v5064_v19  ;;  %v3972_v13 = vmul.f32 %v3555_v11, %v2931_v51  ;;  %v2180_v51 = vadd.f32 %v6938_v36, %v1950_v55  ;;  %v7770_v11 = vld [vmem:[#allocation42_spill] sm:$0xff] }
 0x2d6   : > { %v1266_v42 = vmul.f32 %v6946_v45, %v7770_v11  ;;  %v7780_v11 = vld [vmem:[#allocation32_spill] sm:$0xff] }
 0x2d7   : > { %v4100_v21 = vadd.f32 %v5367_v18, %v3972_v13  ;;  %v5074_v13 = vpop.eup %5073  ;;  %5075 = vtanh.f32 %v2180_v51 }
 0x2d8   : > { %v1953_v48 = vadd.f32 %v7771_v7, %v1266_v42  ;;  %v1271_v42 = vmul.f32 %v6946_v45, %v7780_v11  ;;  %v5376_v7 = vld [vmem:[%s5523_s14 + $0x200] sm:$0xff] }
 0x2d9   : > { %4228 = vst.msk [vmem:[%s6449_s24 + $0x1b8] sm:$0xff] %vm1316_vm0, %v4100_v21  ;;  %v3580_v21 = vpop.permute.xlu2 %3579 }
 0x2da   : > { %v2933_v54 = vpop.f32.mrf.mxu1  ;;  %v2181_v33 = vadd.f32 %v6938_v36, %v1953_v48 }
 0x2db   : > { %v2934_v1 = vadd.f32 %v6835_v38, %v2933_v54  ;;  %v5372_v54 = vld [vmem:[%s5523_s14 + $0x1e0] sm:$0xff] }
 0x2dc   : > { %5077 = vtanh.f32 %v2181_v33  ;;  %v7782_v33 = vld [vmem:[#allocation50_spill] sm:$0xff] }
 0x2dd   : > { %4580 = vmatmul.msk.f32.gmra.mxu2 %vm2363_vm1, %v5066_v59  ;;  %v3973_v17 = vmul.f32 %v3560_v44, %v2934_v1  ;;  %v7772_v1 = vld [vmem:[#allocation41_spill] sm:$0xff] }
 0x2de   : > { %v1267_v44 = vmul.f32 %v6946_v45, %v7772_v1 }
 0x2df   : > { %v4101_v47 = vadd.f32 %v5368_v63, %v3973_v17  ;;  %v5076_v17 = vpop.eup %5075 }
 0x2e0   : > { %v1956_v10 = vadd.f32 %v7773_v29, %v1267_v44  ;;  %v5377_v29 = vld [vmem:[%s5523_s14 + $0x208] sm:$0xff] }
 0x2e1   : > { %4229 = vst.msk [vmem:[%s6449_s24 + $0x1c0] sm:$0xff] %vm1316_vm0, %v4101_v47  ;;  %v3585_v47 = vpop.permute.xlu0 %3584 }
 0x2e2   : > { %v2936_v9 = vpop.f32.mrf.mxu1  ;;  %v2182_v52 = vadd.f32 %v6938_v36, %v1956_v10 }
 0x2e3   : > { %v2937_v3 = vadd.f32 %v6835_v38, %v2936_v9  ;;  %v5373_v9 = vld [vmem:[%s5523_s14 + $0x1e8] sm:$0xff] }
 0x2e4   : > { %5079 = vtanh.f32 %v2182_v52 }
 0x2e5   : > { %4581 = vmatmul.msk.f32.gmra.mxu2 %vm2363_vm1, %v5068_v28  ;;  %v3974_v60 = vmul.f32 %v3565_v50, %v2937_v3  ;;  %v7774_v3 = vld [vmem:[#allocation29_spill] sm:$0xff] }
 0x2e6   : > { %v1268_v50 = vmul.f32 %v6946_v45, %v7774_v3 }
 0x2e7   : > { %v4102_v26 = vadd.f32 %v5369_v22, %v3974_v60  ;;  %v5078_v60 = vpop.eup %5077 }
 0x2e8   : > { %v1959_v37 = vadd.f32 %v7775_v0, %v1268_v50  ;;  %v7784_v50 = vld [vmem:[#allocation49_spill] sm:$0xff]  ;;  %v5378_v0 = vld [vmem:[%s5523_s14 + $0x210] sm:$0xff] }
 0x2e9   : > { %4230 = vst.msk [vmem:[%s6449_s24 + $0x1c8] sm:$0xff] %vm1316_vm0, %v4102_v26  ;;  %v3590_v26 = vpop.permute.xlu1 %3589  ;;  %v1273_v52 = vmul.f32 %v6946_v45, %v7784_v50 }
 0x2ea   : > { %v2939_v16 = vpop.f32.mrf.mxu1 }
 0x2eb   : > { %v2940_v46 = vadd.f32 %v6835_v38, %v2939_v16  ;;  %v5374_v16 = vld [vmem:[%s5523_s14 + $0x1f0] sm:$0xff] }
 0x2ed   : > { %4582 = vmatmul.msk.f32.gmra.mxu2 %vm2363_vm1, %v5070_v8  ;;  %v3975_v27 = vmul.f32 %v3570_v25, %v2940_v46  ;;  %v2183_v46 = vadd.f32 %v6938_v36, %v1959_v37  ;;  %v7776_v25 = vld [vmem:[#allocation46_spill] sm:$0xff] }
 0x2ee   : > { %v1269_v24 = vmul.f32 %v6946_v45, %v7776_v25  ;;  %v7786_v25 = vld [vmem:[#allocation36_spill] sm:$0xff] }
 0x2ef   : > { %v4103_v39 = vadd.f32 %v5370_v2, %v3975_v27  ;;  %v5080_v27 = vpop.eup %5079  ;;  %5081 = vtanh.f32 %v2183_v46 }
 0x2f0   : > { %v1962_v31 = vadd.f32 %v7777_v40, %v1269_v24  ;;  %v1274_v24 = vmul.f32 %v6946_v45, %v7786_v25  ;;  %v5380_v40 = vld [vmem:[%s5523_s14 + $0x218] sm:$0xff] }
 0x2f1   : > { %4231 = vst.msk [vmem:[%s6449_s24 + $0x1d0] sm:$0xff] %vm1316_vm0, %v4103_v39  ;;  %v3595_v39 = vpop.permute.xlu2 %3594 }
 0x2f2   : > { %v2942_v58 = vpop.f32.mrf.mxu1  ;;  %v2184_v57 = vadd.f32 %v6938_v36, %v1962_v31 }
 0x2f3   : > { %v2943_v12 = vadd.f32 %v6835_v38, %v2942_v58  ;;  %v5375_v58 = vld [vmem:[%s5523_s14 + $0x1f8] sm:$0xff] }
 0x2f4   : > { %5083 = vtanh.f32 %v2184_v57  ;;  %v7788_v57 = vld [vmem:[#allocation54_spill] sm:$0xff] }
 0x2f5   : > { %4583 = vmatmul.msk.f32.gmra.mxu2 %vm2363_vm1, %v5072_v30  ;;  %v3976_v34 = vmul.f32 %v3575_v32, %v2943_v12  ;;  %v7778_v12 = vld [vmem:[#allocation45_spill] sm:$0xff]  ;;  %v5082_v55 = vpop.eup %5081 }
 0x2f6   : > { %v1270_v32 = vmul.f32 %v6946_v45, %v7778_v12 }
 0x2f7   : > { %v4104_v19 = vadd.f32 %v5371_v4, %v3976_v34  ;;  %v7779_v34 = vld [vmem:[#allocation24_spill] sm:$0xff] }
 0x2f8   : > { %v1965_v4 = vadd.f32 %v7779_v34, %v1270_v32 }
 0x2f9   : > { %4232 = vst.msk [vmem:[%s6449_s24 + $0x1d8] sm:$0xff] %vm1316_vm0, %v4104_v19 }
 0x2fa   : > { %v2945_v15 = vpop.f32.mrf.mxu1 }
 0x2fb   : > { %v2946_v18 = vadd.f32 %v6835_v38, %v2945_v15  ;;  %v2185_v15 = vadd.f32 %v6938_v36, %v1965_v4 }
 0x2fd   : > { %4584 = vmatmul.msk.f32.gmra.mxu2 %vm2363_vm1, %v5074_v13  ;;  %v3977_v43 = vmul.f32 %v3580_v21, %v2946_v18  ;;  %v3600_v13 = vpop.permute.xlu0 %3599  ;;  %v5084_v21 = vpop.eup %5083  ;;  %5085 = vtanh.f32 %v2185_v15 }
 0x2ff   : > { %v4105_v59 = vadd.f32 %v5372_v54, %v3977_v43  ;;  %v7781_v43 = vld [vmem:[#allocation28_spill] sm:$0xff] }
 0x300   : > { %v1968_v54 = vadd.f32 %v7781_v43, %v1271_v42  ;;  %v7789_v42 = vld [vmem:[#allocation47_spill] sm:$0xff] }
 0x301   : > { %4233 = vst.msk [vmem:[%s6449_s24 + $0x1e0] sm:$0xff] %vm1316_vm0, %v4105_v59 }
 0x302   : > { %v2948_v61 = vpop.f32.mrf.mxu1  ;;  %v2186_v44 = vadd.f32 %v6938_v36, %v1968_v54 }
 0x303   : > { %v2949_v63 = vadd.f32 %v6835_v38, %v2948_v61  ;;  %v1272_v61 = vmul.f32 %v6946_v45, %v7782_v33  ;;  %v7791_v33 = vld [vmem:[#allocation53_spill] sm:$0xff] }
 0x304   : > { %5087 = vtanh.f32 %v2186_v44 }
 0x305   : > { %4585 = vmatmul.msk.f32.gmra.mxu2 %vm2363_vm1, %v5076_v17  ;;  %v3978_v62 = vmul.f32 %v3585_v47, %v2949_v63  ;;  %v3605_v17 = vpop.permute.xlu1 %3604  ;;  %v5086_v47 = vpop.eup %5085 }
 0x307   : > { %v4106_v28 = vadd.f32 %v5373_v9, %v3978_v62  ;;  %v7783_v62 = vld [vmem:[#allocation34_spill] sm:$0xff] }
 0x308   : > { %v1971_v9 = vadd.f32 %v7783_v62, %v1272_v61 }
 0x309   : > { %4234 = vst.msk [vmem:[%s6449_s24 + $0x1e8] sm:$0xff] %vm1316_vm0, %v4106_v28 }
 0x30a   : > { %v2951_v5 = vpop.f32.mrf.mxu1 }
 0x30b   : > { %v2952_v22 = vadd.f32 %v6835_v38, %v2951_v5  ;;  %v2187_v5 = vadd.f32 %v6938_v36, %v1971_v9 }
 0x30d   : > { %4586 = vmatmul.msk.f32.gmra.mxu2 %vm2363_vm1, %v5078_v60  ;;  %v3979_v23 = vmul.f32 %v3590_v26, %v2952_v22  ;;  %v3610_v60 = vpop.permute.xlu2 %3609  ;;  %v5088_v26 = vpop.eup %5087  ;;  %5089 = vtanh.f32 %v2187_v5 }
 0x30e   : > { %v3620_v34 = vpop.permute.xlu1 %3619 }
 0x30f   : > { %v4107_v8 = vadd.f32 %v5374_v16, %v3979_v23  ;;  %v7785_v23 = vld [vmem:[#allocation39_spill] sm:$0xff] }
 0x310   : > { %v1974_v16 = vadd.f32 %v7785_v23, %v1273_v52  ;;  %v7793_v52 = vld [vmem:[#allocation58_spill] sm:$0xff] }
 0x311   : > { %4235 = vst.msk [vmem:[%s6449_s24 + $0x1f0] sm:$0xff] %vm1316_vm0, %v4107_v8  ;;  %v7165_v8 = vld [vmem:[%s7644_s5] ss:$0 sm:$0xff] }
 0x312   : > { %v2954_v6 = vpop.f32.mrf.mxu1 }
 0x313   : > { %v2955_v2 = vadd.f32 %v6835_v38, %v2954_v6  ;;  %v2188_v6 = vadd.f32 %v6938_v36, %v1974_v16 }
 0x315   : > { %4587 = vmatmul.msk.f32.gmra.mxu2 %vm2363_vm1, %v5080_v27  ;;  %v3980_v35 = vmul.f32 %v3595_v39, %v2955_v2  ;;  %v3615_v27 = vpop.permute.xlu0 %3614  ;;  %v5090_v39 = vpop.eup %5089  ;;  %5091 = vtanh.f32 %v2188_v6 }
 0x316   : > { %v3625_v43 = vpop.permute.xlu2 %3624  ;;  %v3635_v23 = vpop.permute.xlu1 %3634 }
 0x317   : > { %v4108_v30 = vadd.f32 %v5375_v58, %v3980_v35  ;;  %v7787_v35 = vld [vmem:[#allocation43_spill] sm:$0xff] }
 0x318   : > { %v1977_v58 = vadd.f32 %v7787_v35, %v1274_v24  ;;  %v7795_v24 = vld [vmem:[#allocation62_spill] sm:$0xff] }
 0x319   : > { %4236 = vst.msk [vmem:[%s6449_s24 + $0x1f8] sm:$0xff] %vm1316_vm0, %v4108_v30 }
 0x31a   : > { %v2189_v32 = vadd.f32 %v6938_v36, %v1977_v58 }
 0x31c   : > { %5093 = vtanh.f32 %v2189_v32 }
 0x31d   : > { %4588 = vmatmul.msk.f32.gmra.mxu2 %vm2363_vm1, %v5082_v55  ;;  %v1275_v55 = vmul.f32 %v6946_v45, %v7788_v57  ;;  %v3630_v62 = vpop.permute.xlu0 %3629  ;;  %v7797_v57 = vld [vmem:[#allocation66_spill] sm:$0xff] }
 0x31e   : > { %v3640_v35 = vpop.permute.xlu2 %3639 }
 0x31f   : > { %v1980_v15 = vadd.f32 %v7789_v42, %v1275_v55 }
 0x320   : > { %v2957_v19 = vpop.f32.mrf.mxu2 }
 0x321   : > { %v2958_v51 = vadd.f32 %v6835_v38, %v2957_v19  ;;  %v5092_v19 = vpop.eup %5091 }
 0x323   : > { %v3981_v18 = vmul.f32 %v3600_v13, %v2958_v51  ;;  %v5381_v51 = vld [vmem:[%s5523_s14 + $0x220] sm:$0xff] }
 0x325   : > { %v4109_v48 = vadd.f32 %v5376_v7, %v3981_v18  ;;  %4589 = vmatmul.msk.f32.gmra.mxu2 %vm2363_vm1, %v5084_v21  ;;  %v7790_v21 = vld [vmem:[#allocation52_spill] sm:$0xff]  ;;  %v3645_v42 = vpop.permute.xlu0 %3644 }
 0x326   : > { %v1276_v7 = vmul.f32 %v6946_v45, %v7790_v21 }
 0x327   : > { %4237 = vst.msk [vmem:[%s6449_s24 + $0x200] sm:$0xff] %vm1316_vm0, %v4109_v48  ;;  %v2190_v48 = vadd.f32 %v6938_v36, %v1980_v15 }
 0x328   : > { %v2960_v59 = vpop.f32.mrf.mxu2  ;;  %v1983_v61 = vadd.f32 %v7791_v33, %v1276_v7  ;;  %v7799_v7 = vld [vmem:[#allocation72_spill] sm:$0xff]  ;;  %v3650_v33 = vpop.permute.xlu1 %3649 }
 0x329   : > { %v2961_v1 = vadd.f32 %v6835_v38, %v2960_v59  ;;  %v5094_v59 = vpop.eup %5093  ;;  %5095 = vtanh.f32 %v2190_v48 }
 0x32b   : > { %v3982_v63 = vmul.f32 %v3605_v17, %v2961_v1  ;;  %v5382_v1 = vld [vmem:[%s5523_s14 + $0x228] sm:$0xff] }
 0x32d   : > { %v4110_v10 = vadd.f32 %v5377_v29, %v3982_v63  ;;  %4590 = vmatmul.msk.f32.gmra.mxu2 %vm2363_vm1, %v5086_v47  ;;  %v7792_v47 = vld [vmem:[#allocation40_spill] sm:$0xff] }
 0x32e   : > { %v1277_v29 = vmul.f32 %v6946_v45, %v7792_v47 }
 0x32f   : > { %4238 = vst.msk [vmem:[%s6449_s24 + $0x208] sm:$0xff] %vm1316_vm0, %v4110_v10  ;;  %v2191_v10 = vadd.f32 %v6938_v36, %v1983_v61 }
 0x330   : > { %v2963_v28 = vpop.f32.mrf.mxu2  ;;  %v1986_v5 = vadd.f32 %v7793_v52, %v1277_v29  ;;  %v7801_v29 = vld [vmem:[#allocation77_spill] sm:$0xff]  ;;  %v3655_v52 = vpop.permute.xlu2 %3654 }
 0x331   : > { %v2964_v3 = vadd.f32 %v6835_v38, %v2963_v28  ;;  %v5096_v28 = vpop.eup %5095  ;;  %5097 = vtanh.f32 %v2191_v10 }
 0x333   : > { %v3983_v22 = vmul.f32 %v3610_v60, %v2964_v3  ;;  %v5383_v3 = vld [vmem:[%s5523_s14 + $0x230] sm:$0xff] }
 0x335   : > { %v4111_v37 = vadd.f32 %v5378_v0, %v3983_v22  ;;  %4591 = vmatmul.msk.f32.gmra.mxu2 %vm2363_vm1, %v5088_v26  ;;  %v2192_v26 = vadd.f32 %v6938_v36, %v1986_v5  ;;  %v7794_v0 = vld [vmem:[#allocation57_spill] sm:$0xff] }
 0x337   : > { %4239 = vst.msk [vmem:[%s6449_s24 + $0x210] sm:$0xff] %vm1316_vm0, %v4111_v37  ;;  %v1278_v37 = vmul.f32 %v6946_v45, %v7794_v0  ;;  %5099 = vtanh.f32 %v2192_v26  ;;  %v7803_v0 = vld [vmem:[#allocation81_spill] sm:$0xff] }
 0x338   : > { %v2966_v38 = vpop.f32.mrf.mxu2 }
 0x339   : > { %v2967_v46 = vadd.f32 %v7165_v8, %v2966_v38  ;;  %v5098_v38 = vpop.eup %5097  ;;  %v1989_v6 = vadd.f32 %v7795_v24, %v1278_v37  ;;  %v3660_v24 = vpop.permute.xlu0 %3659 }
 0x33b   : > { %v3984_v2 = vmul.f32 %v3615_v27, %v2967_v46  ;;  %v5384_v46 = vld [vmem:[%s5523_s14 + $0x238] sm:$0xff] }
 0x33d   : > { %v4112_v31 = vadd.f32 %v5380_v40, %v3984_v2  ;;  %4592 = vmatmul.msk.f32.gmra.mxu2 %vm2363_vm1, %v5090_v39  ;;  %v7796_v39 = vld [vmem:[#allocation56_spill] sm:$0xff] }
 0x33e   : > { %v1279_v40 = vmul.f32 %v6946_v45, %v7796_v39 }
 0x33f   : > { %4240 = vst.msk [vmem:[%s6449_s24 + $0x218] sm:$0xff] %vm1316_vm0, %v4112_v31  ;;  %v2193_v31 = vadd.f32 %v6938_v36, %v1989_v6 }
 0x340   : > { %v2969_v30 = vpop.f32.mrf.mxu2  ;;  %v1992_v55 = vadd.f32 %v7797_v57, %v1279_v40  ;;  %v7805_v40 = vld [vmem:[#allocation85_spill] sm:$0xff]  ;;  %v3665_v57 = vpop.permute.xlu1 %3664 }
 0x341   : > { %v2970_v12 = vadd.f32 %v7165_v8, %v2969_v30  ;;  %v5100_v30 = vpop.eup %5099  ;;  %5101 = vtanh.f32 %v2193_v31 }
 0x343   : > { %v3985_v4 = vmul.f32 %v3620_v34, %v2970_v12  ;;  %v5385_v12 = vld [vmem:[%s5523_s14 + $0x240] sm:$0xff] }
 0x345   : > { %v4113_v11 = vadd.f32 %v5381_v51, %v3985_v4  ;;  %4593 = vmatmul.msk.f32.gmra.mxu2 %vm2363_vm1, %v5092_v19  ;;  %v7798_v19 = vld [vmem:[#allocation44_spill] sm:$0xff] }
 0x346   : > { %v1280_v51 = vmul.f32 %v6946_v45, %v7798_v19 }
 0x347   : > { %4241 = vst.msk [vmem:[%s6449_s24 + $0x220] sm:$0xff] %vm1316_vm0, %v4113_v11  ;;  %v2194_v11 = vadd.f32 %v6938_v36, %v1992_v55 }
 0x348   : > { %v2972_v13 = vpop.f32.mrf.mxu2  ;;  %v1995_v48 = vadd.f32 %v7799_v7, %v1280_v51  ;;  %v7807_v51 = vld [vmem:[#allocation90_spill] sm:$0xff]  ;;  %v3670_v7 = vpop.permute.xlu2 %3669 }
 0x349   : > { %v2973_v18 = vadd.f32 %v7165_v8, %v2972_v13  ;;  %v5102_v13 = vpop.eup %5101  ;;  %5103 = vtanh.f32 %v2194_v11 }
 0x34b   : > { %v3986_v54 = vmul.f32 %v3625_v43, %v2973_v18  ;;  %v5386_v18 = vld [vmem:[%s5523_s14 + $0x248] sm:$0xff] }
 0x34d   : > { %v4114_v44 = vadd.f32 %v5382_v1, %v3986_v54  ;;  %4594 = vmatmul.msk.f32.gmra.mxu2 %vm2363_vm1, %v5094_v59  ;;  %v2195_v59 = vadd.f32 %v6938_v36, %v1995_v48  ;;  %v7800_v1 = vld [vmem:[#allocation61_spill] sm:$0xff] }
 0x34f   : > { %4242 = vst.msk [vmem:[%s6449_s24 + $0x228] sm:$0xff] %vm1316_vm0, %v4114_v44  ;;  %v1281_v44 = vmul.f32 %v6946_v45, %v7800_v1  ;;  %5105 = vtanh.f32 %v2195_v59 }
 0x350   : > { %v2975_v17 = vpop.f32.mrf.mxu2 }
 0x351   : > { %v2976_v63 = vadd.f32 %v7165_v8, %v2975_v17  ;;  %v5104_v17 = vpop.eup %5103  ;;  %v1998_v10 = vadd.f32 %v7801_v29, %v1281_v44 }
 0x353   : > { %v3987_v9 = vmul.f32 %v3630_v62, %v2976_v63  ;;  %v5387_v63 = vld [vmem:[%s5523_s14 + $0x250] sm:$0xff] }
 0x355   : > { %v4115_v50 = vadd.f32 %v5383_v3, %v3987_v9  ;;  %4595 = vmatmul.msk.f32.gmra.mxu2 %vm2363_vm1, %v5096_v28  ;;  %v7802_v28 = vld [vmem:[#allocation60_spill] sm:$0xff] }
 0x356   : > { %v1282_v3 = vmul.f32 %v6946_v45, %v7802_v28 }
 0x357   : > { %4243 = vst.msk [vmem:[%s6449_s24 + $0x230] sm:$0xff] %vm1316_vm0, %v4115_v50  ;;  %v2196_v50 = vadd.f32 %v6938_v36, %v1998_v10 }
 0x358   : > { %v2978_v60 = vpop.f32.mrf.mxu2  ;;  %v2001_v37 = vadd.f32 %v7803_v0, %v1282_v3 }
 0x359   : > { %v2979_v22 = vadd.f32 %v7165_v8, %v2978_v60  ;;  %v5106_v60 = vpop.eup %5105  ;;  %5107 = vtanh.f32 %v2196_v50 }
 0x35b   : > { %v3988_v16 = vmul.f32 %v3635_v23, %v2979_v22  ;;  %v5388_v22 = vld [vmem:[%s5523_s14 + $0x258] sm:$0xff] }
 0x35d   : > { %v4116_v25 = vadd.f32 %v5384_v46, %v3988_v16  ;;  %4596 = vmatmul.msk.f32.gmra.mxu2 %vm2363_vm1, %v5098_v38  ;;  %v7804_v38 = vld [vmem:[#allocation48_spill] sm:$0xff] }
 0x35e   : > { %v1283_v46 = vmul.f32 %v6946_v45, %v7804_v38 }
 0x35f   : > { %4244 = vst.msk [vmem:[%s6449_s24 + $0x238] sm:$0xff] %vm1316_vm0, %v4116_v25  ;;  %v2197_v25 = vadd.f32 %v6938_v36, %v2001_v37  ;;  %v5393_v37 = vld [vmem:[%s5523_s14 + $0x280] sm:$0xff] }
 0x360   : > { %v2981_v27 = vpop.f32.mrf.mxu2  ;;  %v2004_v31 = vadd.f32 %v7805_v40, %v1283_v46 }
 0x361   : > { %v2982_v2 = vadd.f32 %v7165_v8, %v2981_v27  ;;  %v5108_v27 = vpop.eup %5107  ;;  %5109 = vtanh.f32 %v2197_v25 }
 0x363   : > { %v3989_v58 = vmul.f32 %v3640_v35, %v2982_v2  ;;  %v5389_v2 = vld [vmem:[%s5523_s14 + $0x260] sm:$0xff] }
 0x365   : > { %v4117_v32 = vadd.f32 %v5385_v12, %v3989_v58  ;;  %4597 = vmatmul.msk.f32.gmra.mxu2 %vm2363_vm1, %v5100_v30  ;;  %v7806_v30 = vld [vmem:[#allocation65_spill] sm:$0xff] }
 0x366   : > { %v1284_v12 = vmul.f32 %v6946_v45, %v7806_v30 }
 0x367   : > { %4245 = vst.msk [vmem:[%s6449_s24 + $0x240] sm:$0xff] %vm1316_vm0, %v4117_v32  ;;  %v2198_v32 = vadd.f32 %v6938_v36, %v2004_v31  ;;  %v5394_v31 = vld [vmem:[%s5523_s14 + $0x288] sm:$0xff] }
 0x368   : > { %v2984_v34 = vpop.f32.mrf.mxu2  ;;  %v2007_v11 = vadd.f32 %v7807_v51, %v1284_v12 }
 0x369   : > { %v2985_v4 = vadd.f32 %v7165_v8, %v2984_v34  ;;  %v5110_v34 = vpop.eup %5109  ;;  %5111 = vtanh.f32 %v2198_v32 }
 0x36b   : > { %v3990_v15 = vmul.f32 %v3645_v42, %v2985_v4  ;;  %v5390_v4 = vld [vmem:[%s5523_s14 + $0x268] sm:$0xff] }
 0x36d   : > { %v4118_v21 = vadd.f32 %v5386_v18, %v3990_v15  ;;  %4598 = vmatmul.msk.f32.gmra.mxu2 %vm2363_vm1, %v5102_v13  ;;  %v7808_v13 = vld [vmem:[#allocation64_spill] sm:$0xff] }
 0x36e   : > { %v1285_v18 = vmul.f32 %v6946_v45, %v7808_v13 }
 0x36f   : > { %4246 = vst.msk [vmem:[%s6449_s24 + $0x248] sm:$0xff] %vm1316_vm0, %v4118_v21  ;;  %v2199_v21 = vadd.f32 %v6938_v36, %v2007_v11  ;;  %v5395_v11 = vld [vmem:[%s5523_s14 + $0x290] sm:$0xff] }
 0x370   : > { %v2987_v43 = vpop.f32.mrf.mxu2  ;;  %v2010_v1 = vadd.f32 %v6473_v49, %v1285_v18 }
 0x371   : > { %v2988_v54 = vadd.f32 %v7165_v8, %v2987_v43  ;;  %v5112_v43 = vpop.eup %5111  ;;  %5113 = vtanh.f32 %v2199_v21  ;;  %v7328_v21 = vld [vmem:[%s7642_s3 + $0x1] ss:$0 sm:$0xff] }
 0x373   : > { %v3991_v61 = vmul.f32 %v3650_v33, %v2988_v54  ;;  %v5391_v54 = vld [vmem:[%s5523_s14 + $0x270] sm:$0xff] }
 0x375   : > { %v4119_v47 = vadd.f32 %v5387_v63, %v3991_v61  ;;  %4599 = vmatmul.msk.f32.gmra.mxu2 %vm2363_vm1, %v5104_v17  ;;  %v7809_v61 = vld [vmem:[#allocation51_spill] sm:$0xff]  ;;  %v2200_v63 = vadd.f32 %v6938_v36, %v2010_v1 }
 0x376   : > { %v1286_v17 = vmul.f32 %v6946_v45, %v7809_v61 }
 0x377   : > { %4247 = vst.msk [vmem:[%s6449_s24 + $0x250] sm:$0xff] %vm1316_vm0, %v4119_v47  ;;  %v3675_v47 = vpop.permute.xlu0 %3674  ;;  %v5114_v10 = vpop.eup %5113  ;;  %5115 = vtanh.f32 %v2200_v63 }
 0x378   : > { %v2990_v62 = vpop.f32.mrf.mxu2  ;;  %v2013_v49 = vadd.f32 %v6501_v41, %v1286_v17  ;;  %v7811_v41 = vld [vmem:[#allocation98_spill] sm:$0xff]  ;;  %v7815_v17 = vld [vmem:[#allocation71_spill] sm:$0xff] }
 0x379   : > { %v2991_v9 = vadd.f32 %v7165_v8, %v2990_v62  ;;  %v7279_v62 = vpop.f32.mrf.mxu3 }
 0x37b   : > { %v3992_v5 = vmul.f32 %v3655_v52, %v2991_v9  ;;  %v5392_v9 = vld [vmem:[%s5523_s14 + $0x278] sm:$0xff] }
 0x37c   : > { %v7810_v52 = vld [vmem:[#allocation69_spill] sm:$0xff] }
 0x37d   : > { %v4120_v26 = vadd.f32 %v5388_v22, %v3992_v5  ;;  %4600 = vmatmul.msk.f32.gmra.mxu2 %vm2363_vm1, %v5106_v60  ;;  %v1287_v5 = vmul.f32 %v6946_v45, %v7810_v52  ;;  %v2201_v60 = vadd.f32 %v6938_v36, %v2013_v49  ;;  %v3680_v22 = vpop.permute.xlu1 %3679  ;;  %v5116_v0 = vpop.eup %5115  ;;  %v5399_v49 = vld [vmem:[%s5523_s14 + $0x2a0] sm:$0xff] }
 0x37f   : > { %4248 = vst.msk [vmem:[%s6449_s24 + $0x258] sm:$0xff] %vm1316_vm0, %v4120_v26  ;;  %5117 = vtanh.f32 %v2201_v60 }
 0x380   : > { %v2993_v23 = vpop.f32.mrf.mxu2 }
 0x381   : > { %v2994_v16 = vadd.f32 %v7165_v8, %v2993_v23  ;;  %v7293_v38 = vpop.f32.mrf.mxu3 }
 0x383   : > { %v3993_v6 = vmul.f32 %v3660_v24, %v2994_v16  ;;  %v2016_v16 = vadd.f32 %v7811_v41, %v1287_v5  ;;  %v7812_v24 = vld [vmem:[#allocation68_spill] sm:$0xff]  ;;  %v7816_v5 = vld [vmem:[#allocation59_spill] sm:$0xff] }
 0x385   : > { %v4121_v39 = vadd.f32 %v5389_v2, %v3993_v6  ;;  %4601 = vmatmul.msk.f32.gmra.mxu2 %vm2363_vm1, %v5108_v27  ;;  %v1288_v6 = vmul.f32 %v6946_v45, %v7812_v24  ;;  %v2202_v27 = vadd.f32 %v6938_v36, %v2016_v16  ;;  %v3685_v2 = vpop.permute.xlu2 %3684  ;;  %v5118_v40 = vpop.eup %5117  ;;  %v7817_v24 = vld [vmem:[#allocation76_spill] sm:$0xff] }
 0x387   : > { %4249 = vst.msk [vmem:[%s6449_s24 + $0x260] sm:$0xff] %vm1316_vm0, %v4121_v39  ;;  %5119 = vtanh.f32 %v2202_v27 }
 0x388   : > { %v2996_v35 = vpop.f32.mrf.mxu2 }
 0x389   : > { %v2997_v58 = vadd.f32 %v7165_v8, %v2996_v35  ;;  %v7306_v12 = vpop.f32.mrf.mxu3 }
 0x38b   : > { %v3994_v55 = vmul.f32 %v3665_v57, %v2997_v58  ;;  %v2019_v58 = vadd.f32 %v6572_v56, %v1288_v6  ;;  %v7813_v57 = vld [vmem:[#allocation55_spill] sm:$0xff] }
 0x38d   : > { %v4122_v19 = vadd.f32 %v5390_v4, %v3994_v55  ;;  %4602 = vmatmul.msk.f32.gmra.mxu2 %vm2363_vm1, %v5110_v34  ;;  %v1289_v55 = vmul.f32 %v6946_v45, %v7813_v57  ;;  %v2203_v34 = vadd.f32 %v6938_v36, %v2019_v58  ;;  %v3690_v4 = vpop.permute.xlu0 %3689  ;;  %v5120_v51 = vpop.eup %5119  ;;  %v7321_v36 = vld [vmem:[%s7642_s3] ss:$0 sm:$0xff]  ;;  %v7814_v45 = vld [vmem:[#allocation73_spill] sm:$0xff]  ;;  %v7818_v57 = vld [vmem:[#allocation75_spill] sm:$0xff] }
 0x38e   : > { %v1290_v18 = vmul.f32 %v7321_v36, %v7814_v45  ;;  %v1291_v63 = vmul.f32 %v7321_v36, %v7815_v17  ;;  %v1292_v60 = vmul.f32 %v7321_v36, %v7816_v5  ;;  %v1293_v6 = vmul.f32 %v7321_v36, %v7817_v24 }
 0x38f   : > { %4250 = vst.msk [vmem:[%s6449_s24 + $0x268] sm:$0xff] %vm1316_vm0, %v4122_v19  ;;  %5121 = vtanh.f32 %v2203_v34  ;;  %v2022_v56 = vadd.f32 %v6613_v20, %v1289_v55  ;;  %v1294_v55 = vmul.f32 %v7321_v36, %v7818_v57 }
 0x390   : > { %v2999_v42 = vpop.f32.mrf.mxu2 }
 0x391   : > { %v3000_v15 = vadd.f32 %v7165_v8, %v2999_v42  ;;  %v2204_v20 = vadd.f32 %v7328_v21, %v2022_v56 }
 0x393   : > { %v3995_v48 = vmul.f32 %v3670_v7, %v3000_v15  ;;  %v3695_v7 = vpop.permute.xlu1 %3694  ;;  %5123 = vtanh.f32 %v2204_v20 }
 0x395   : > { %v4123_v59 = vadd.f32 %v5391_v54, %v3995_v48  ;;  %4603 = vmatmul.msk.f32.gmra.mxu2 %vm2363_vm1, %v5112_v43  ;;  %v7331_v48 = vpop.f32.mrf.mxu3  ;;  %v5122_v54 = vpop.eup %5121 }
 0x397   : > { %4251 = vst.msk [vmem:[%s6449_s24 + $0x270] sm:$0xff] %vm1316_vm0, %v4123_v59  ;;  %v5398_v59 = vld [vmem:[%s5523_s14 + $0x298] sm:$0xff] }
 0x398   : > { %v3002_v44 = vpop.f32.mrf.mxu2 }
 0x399   : > { %v3003_v33 = vadd.f32 %v7165_v8, %v3002_v44  ;;  %v2025_v44 = vadd.f32 %v6649_v53, %v1290_v18  ;;  %v2028_v53 = vadd.f32 %v6689_v14, %v1291_v63  ;;  %v2031_v14 = vadd.f32 %v7279_v62, %v1292_v60 }
 0x39a   : > { %v2034_v62 = vadd.f32 %v7293_v38, %v1293_v6  ;;  %v2037_v38 = vadd.f32 %v7306_v12, %v1294_v55 }
 0x39b   : > { %v3996_v29 = vmul.f32 %v3675_v47, %v3003_v33  ;;  %v2205_v47 = vadd.f32 %v7328_v21, %v2025_v44  ;;  %v2207_v27 = vadd.f32 %v7328_v21, %v2031_v14 }
 0x39c   : > { %v2208_v34 = vadd.f32 %v7328_v21, %v2034_v62  ;;  %v2209_v18 = vadd.f32 %v7328_v21, %v2037_v38 }
 0x39d   : > { %v4124_v28 = vadd.f32 %v5392_v9, %v3996_v29  ;;  %4604 = vmatmul.msk.f32.gmra.mxu2 %vm2363_vm1, %v5114_v10  ;;  %v3700_v29 = vpop.permute.xlu2 %3699  ;;  %v5124_v9 = vpop.eup %5123  ;;  %5125 = vtanh.f32 %v2205_v47 }
 0x39f   : > { %4252 = vst.msk [vmem:[%s6449_s24 + $0x278] sm:$0xff] %vm1316_vm0, %v4124_v28  ;;  %v7342_v28 = vpop.f32.mrf.mxu3 }
 0x3a0   : > { %v3005_v3 = vpop.f32.mrf.mxu2 }
 0x3a1   : > { %v3006_v50 = vadd.f32 %v7165_v8, %v3005_v3 }
 0x3a3   : > { %v3997_v26 = vmul.f32 %v3680_v22, %v3006_v50  ;;  %v2206_v22 = vadd.f32 %v7328_v21, %v2028_v53 }
 0x3a5   : > { %v4125_v23 = vadd.f32 %v5393_v37, %v3997_v26  ;;  %4605 = vmatmul.msk.f32.gmra.mxu2 %vm2363_vm1, %v5116_v0  ;;  %v3705_v26 = vpop.permute.xlu0 %3704  ;;  %v5126_v37 = vpop.eup %5125  ;;  %5127 = vtanh.f32 %v2206_v22 }
 0x3a6   : > { %5129 = vtanh.f32 %v2207_v27 }
 0x3a7   : > { %4253 = vst.msk [vmem:[%s6449_s24 + $0x280] sm:$0xff] %vm1316_vm0, %v4125_v23  ;;  %v5400_v23 = vld [vmem:[%s5523_s14 + $0x2a8] sm:$0xff]  ;;  %v7356_v16 = vpop.f32.mrf.mxu3  ;;  %5131 = vtanh.f32 %v2208_v34 }
 0x3a8   : > { %v3008_v46 = vpop.f32.mrf.mxu2  ;;  %5133 = vtanh.f32 %v2209_v18 }
 0x3a9   : > { %v3009_v25 = vadd.f32 %v7165_v8, %v3008_v46 }
 0x3ab   : > { %v3998_v39 = vmul.f32 %v3685_v2, %v3009_v25  ;;  %v3710_v2 = vpop.permute.xlu1 %3709 }
 0x3ad   : > { %v4126_v35 = vadd.f32 %v5394_v31, %v3998_v39  ;;  %4606 = vmatmul.msk.f32.gmra.mxu2 %vm2363_vm1, %v5118_v40  ;;  %v5128_v40 = vpop.eup %5127  ;;  %v5401_v31 = vld [vmem:[%s5523_s14 + $0x2b0] sm:$0xff]  ;;  %v3720_v20 = vpop.permute.xlu0 %3719 }
 0x3af   : > { %4254 = vst.msk [vmem:[%s6449_s24 + $0x288] sm:$0xff] %vm1316_vm0, %v4126_v35 }
 0x3b0   : > { %v3011_v30 = vpop.f32.mrf.mxu2 }
 0x3b1   : > { %v3012_v32 = vadd.f32 %v7165_v8, %v3011_v30  ;;  %v7369_v30 = vpop.f32.mrf.mxu3 }
 0x3b3   : > { %v3999_v19 = vmul.f32 %v3690_v4, %v3012_v32  ;;  %v3715_v4 = vpop.permute.xlu2 %3714  ;;  %v3725_v47 = vpop.permute.xlu1 %3724 }
 0x3b5   : > { %v4127_v42 = vadd.f32 %v5395_v11, %v3999_v19  ;;  %4607 = vmatmul.msk.f32.gmra.mxu2 %vm2363_vm1, %v5120_v51  ;;  %v5130_v51 = vpop.eup %5129  ;;  %v5402_v11 = vld [vmem:[%s5523_s14 + $0x2b8] sm:$0xff]  ;;  %v3735_v24 = vpop.permute.xlu0 %3734 }
 0x3b7   : > { %4255 = vst.msk [vmem:[%s6449_s24 + $0x290] sm:$0xff] %vm1316_vm0, %v4127_v42 }
 0x3b8   : > { %v3014_v15 = vpop.f32.mrf.mxu2 }
 0x3b9   : > { %v3015_v13 = vadd.f32 %v7165_v8, %v3014_v15 }
 0x3bb   : > { %v4000_v43 = vmul.f32 %v3695_v7, %v3015_v13  ;;  %v7819_v13 = vld [vmem:[#allocation63_spill] sm:$0xff]  ;;  %v2051_v7 = vpop.f32.mrf.mxu3  ;;  %v3730_v5 = vpop.permute.xlu2 %3729 }
 0x3bc   : > { %v1295_v45 = vmul.f32 %v7321_v36, %v7819_v13  ;;  %v3740_v57 = vpop.permute.xlu1 %3739 }
 0x3bd   : > { %v4128_v1 = vadd.f32 %v5398_v59, %v4000_v43  ;;  %4608 = vmatmul.msk.f32.gmra.mxu2 %vm2363_vm1, %v5122_v54  ;;  %v5132_v54 = vpop.eup %5131  ;;  %v5403_v59 = vld [vmem:[%s5523_s14 + $0x2c0] sm:$0xff] }
 0x3be   : > { %v2040_v12 = vadd.f32 %v7331_v48, %v1295_v45 }
 0x3bf   : > { %4256 = vst.msk [vmem:[%s6449_s24 + $0x298] sm:$0xff] %vm1316_vm0, %v4128_v1 }
 0x3c0   : > { %v3017_v33 = vpop.f32.mrf.mxu2  ;;  %v2210_v63 = vadd.f32 %v7328_v21, %v2040_v12 }
 0x3c1   : > { %v3018_v61 = vadd.f32 %v7165_v8, %v3017_v33 }
 0x3c2   : > { %5135 = vtanh.f32 %v2210_v63  ;;  %v7825_v63 = vld [vmem:[#allocation70_spill] sm:$0xff] }
 0x3c3   : > { %v4001_v10 = vmul.f32 %v3700_v29, %v3018_v61  ;;  %v7820_v61 = vld [vmem:[#allocation80_spill] sm:$0xff] }
 0x3c4   : > { %v1296_v17 = vmul.f32 %v7321_v36, %v7820_v61 }
 0x3c5   : > { %v4129_v3 = vadd.f32 %v5399_v49, %v4001_v10  ;;  %4609 = vmatmul.msk.f32.gmra.mxu2 %vm2363_vm1, %v5124_v9  ;;  %v5134_v10 = vpop.eup %5133  ;;  %v2054_v9 = vpop.f32.mrf.mxu3  ;;  %v5404_v49 = vld [vmem:[%s5523_s14 + $0x2c8] sm:$0xff] }
 0x3c6   : > { %v2043_v48 = vadd.f32 %v7342_v28, %v1296_v17 }
 0x3c7   : > { %4257 = vst.msk [vmem:[%s6449_s24 + $0x2a0] sm:$0xff] %vm1316_vm0, %v4129_v3 }
 0x3c8   : > { %v3020_v50 = vpop.f32.mrf.mxu2  ;;  %v5136_v22 = vpop.eup %5135 }
 0x3c9   : > { %v3021_v52 = vadd.f32 %v7165_v8, %v3020_v50 }
 0x3cb   : > { %v4002_v0 = vmul.f32 %v3705_v26, %v3021_v52  ;;  %v2211_v52 = vadd.f32 %v7328_v21, %v2043_v48  ;;  %v7821_v26 = vld [vmem:[#allocation79_spill] sm:$0xff] }
 0x3cd   : > { %v4130_v41 = vadd.f32 %v5400_v23, %v4002_v0  ;;  %4610 = vmatmul.msk.f32.gmra.mxu2 %vm2363_vm1, %v5126_v37  ;;  %v1297_v0 = vmul.f32 %v7321_v36, %v7821_v26  ;;  %v5405_v37 = vld [vmem:[%s5523_s14 + $0x2d0] sm:$0xff]  ;;  %5137 = vtanh.f32 %v2211_v52  ;;  %v5410_v26 = vld [vmem:[%s5523_s14 + $0x2f8] sm:$0xff] }
 0x3cf   : > { %4258 = vst.msk [vmem:[%s6449_s24 + $0x2a8] sm:$0xff] %vm1316_vm0, %v4130_v41  ;;  %v2046_v28 = vadd.f32 %v7356_v16, %v1297_v0  ;;  %v2057_v41 = vpop.f32.mrf.mxu3 }
 0x3d0   : > { %v3023_v46 = vpop.f32.mrf.mxu2 }
 0x3d1   : > { %v3024_v25 = vadd.f32 %v7165_v8, %v3023_v46 }
 0x3d3   : > { %v4003_v39 = vmul.f32 %v3710_v2, %v3024_v25  ;;  %v2212_v25 = vadd.f32 %v7328_v21, %v2046_v28  ;;  %v5138_v27 = vpop.eup %5137  ;;  %v7822_v2 = vld [vmem:[#allocation67_spill] sm:$0xff] }
 0x3d5   : > { %v4131_v35 = vadd.f32 %v5401_v31, %v4003_v39  ;;  %4611 = vmatmul.msk.f32.gmra.mxu2 %vm2363_vm1, %v5128_v40  ;;  %v1298_v39 = vmul.f32 %v7321_v36, %v7822_v2  ;;  %v5406_v40 = vld [vmem:[%s5523_s14 + $0x2d8] sm:$0xff]  ;;  %5139 = vtanh.f32 %v2212_v25  ;;  %v5411_v2 = vld [vmem:[%s5523_s14 + $0x300] sm:$0xff] }
 0x3d7   : > { %4259 = vst.msk [vmem:[%s6449_s24 + $0x2b0] sm:$0xff] %vm1316_vm0, %v4131_v35  ;;  %v2049_v16 = vadd.f32 %v7369_v30, %v1298_v39  ;;  %v2060_v62 = vpop.f32.mrf.mxu3 }
 0x3d8   : > { %v3026_v58 = vpop.f32.mrf.mxu2 }
 0x3d9   : > { %v3027_v32 = vadd.f32 %v7165_v8, %v3026_v58 }
 0x3db   : > { %v4004_v19 = vmul.f32 %v3715_v4, %v3027_v32  ;;  %v2213_v32 = vadd.f32 %v7328_v21, %v2049_v16  ;;  %v5140_v34 = vpop.eup %5139  ;;  %v7823_v4 = vld [vmem:[#allocation84_spill] sm:$0xff] }
 0x3dd   : > { %v4132_v42 = vadd.f32 %v5402_v11, %v4004_v19  ;;  %4612 = vmatmul.msk.f32.gmra.mxu2 %vm2363_vm1, %v5130_v51  ;;  %v1299_v19 = vmul.f32 %v7321_v36, %v7823_v4  ;;  %v5407_v51 = vld [vmem:[%s5523_s14 + $0x2e0] sm:$0xff]  ;;  %5141 = vtanh.f32 %v2213_v32  ;;  %v5412_v4 = vld [vmem:[%s5523_s14 + $0x308] sm:$0xff] }
 0x3df   : > { %4260 = vst.msk [vmem:[%s6449_s24 + $0x2b8] sm:$0xff] %vm1316_vm0, %v4132_v42  ;;  %v2052_v30 = vadd.f32 %v2051_v7, %v1299_v19  ;;  %v2063_v13 = vpop.f32.mrf.mxu3 }
 0x3e0   : > { %v3029_v56 = vpop.f32.mrf.mxu2 }
 0x3e1   : > { %v3030_v15 = vadd.f32 %v7165_v8, %v3029_v56  ;;  %v2214_v56 = vadd.f32 %v7328_v21, %v2052_v30 }
 0x3e3   : > { %v4005_v43 = vmul.f32 %v3720_v20, %v3030_v15  ;;  %v3745_v15 = vpop.permute.xlu2 %3744  ;;  %v5142_v18 = vpop.eup %5141  ;;  %v7824_v20 = vld [vmem:[#allocation83_spill] sm:$0xff]  ;;  %5143 = vtanh.f32 %v2214_v56 }
 0x3e5   : > { %v4133_v1 = vadd.f32 %v5403_v59, %v4005_v43  ;;  %4613 = vmatmul.msk.f32.gmra.mxu2 %vm2363_vm1, %v5132_v54  ;;  %v1300_v43 = vmul.f32 %v7321_v36, %v7824_v20  ;;  %v5408_v54 = vld [vmem:[%s5523_s14 + $0x2e8] sm:$0xff]  ;;  %v5413_v20 = vld [vmem:[%s5523_s14 + $0x310] sm:$0xff] }
 0x3e7   : > { %4261 = vst.msk [vmem:[%s6449_s24 + $0x2c0] sm:$0xff] %vm1316_vm0, %v4133_v1  ;;  %v2055_v7 = vadd.f32 %v2054_v9, %v1300_v43 }
 0x3e8   : > { %v3032_v44 = vpop.f32.mrf.mxu2 }
 0x3e9   : > { %v3033_v33 = vadd.f32 %v7165_v8, %v3032_v44  ;;  %v2215_v44 = vadd.f32 %v7328_v21, %v2055_v7  ;;  %v5144_v17 = vpop.eup %5143 }
 0x3eb   : > { %v4006_v29 = vmul.f32 %v3725_v47, %v3033_v33  ;;  %v3750_v33 = vpop.permute.xlu0 %3749  ;;  %v1301_v47 = vmul.f32 %v7321_v36, %v7825_v63  ;;  %5145 = vtanh.f32 %v2215_v44 }
 0x3ed   : > { %v4134_v3 = vadd.f32 %v5404_v49, %v4006_v29  ;;  %4614 = vmatmul.msk.f32.gmra.mxu2 %vm2363_vm1, %v5134_v10  ;;  %v2066_v29 = vpop.f32.mrf.mxu3  ;;  %v5409_v10 = vld [vmem:[%s5523_s14 + $0x2f0] sm:$0xff]  ;;  %v2058_v9 = vadd.f32 %v2057_v41, %v1301_v47  ;;  %v5414_v47 = vld [vmem:[%s5523_s14 + $0x318] sm:$0xff] }
 0x3ef   : > { %4262 = vst.msk [vmem:[%s6449_s24 + $0x2c8] sm:$0xff] %vm1316_vm0, %v4134_v3 }
 0x3f0   : > { %v3035_v53 = vpop.f32.mrf.mxu2 }
 0x3f1   : > { %v3036_v50 = vadd.f32 %v7165_v8, %v3035_v53  ;;  %v2216_v53 = vadd.f32 %v7328_v21, %v2058_v9 }
 0x3f3   : > { %v4007_v60 = vmul.f32 %v3730_v5, %v3036_v50  ;;  %v3755_v50 = vpop.permute.xlu1 %3754  ;;  %v5146_v5 = vpop.eup %5145  ;;  %5147 = vtanh.f32 %v2216_v53 }
 0x3f5   : > { %v4135_v23 = vadd.f32 %v5405_v37, %v4007_v60  ;;  %4615 = vmatmul.msk.f32.gmra.mxu2 %vm2363_vm1, %v5136_v22  ;;  %v7826_v60 = vld [vmem:[#allocation88_spill] sm:$0xff] }
 0x3f6   : > { %v1302_v22 = vmul.f32 %v7321_v36, %v7826_v60  ;;  %v5415_v60 = vld [vmem:[%s5523_s14 + $0x320] sm:$0xff] }
 0x3f7   : > { %4263 = vst.msk [vmem:[%s6449_s24 + $0x2d0] sm:$0xff] %vm1316_vm0, %v4135_v23  ;;  %v2069_v23 = vpop.f32.mrf.mxu3 }
 0x3f8   : > { %v3038_v14 = vpop.f32.mrf.mxu2  ;;  %v2061_v37 = vadd.f32 %v2060_v62, %v1302_v22 }
 0x3f9   : > { %v3039_v46 = vadd.f32 %v7165_v8, %v3038_v14 }
 0x3fa   : > { %v2217_v14 = vadd.f32 %v7328_v21, %v2061_v37 }
 0x3fb   : > { %v4008_v6 = vmul.f32 %v3735_v24, %v3039_v46  ;;  %v3760_v46 = vpop.permute.xlu2 %3759  ;;  %v5148_v24 = vpop.eup %5147 }
 0x3fc   : > { %5149 = vtanh.f32 %v2217_v14 }
 0x3fd   : > { %v4136_v31 = vadd.f32 %v5406_v40, %v4008_v6  ;;  %4616 = vmatmul.msk.f32.gmra.mxu2 %vm2363_vm1, %v5138_v27  ;;  %v7827_v6 = vld [vmem:[#allocation87_spill] sm:$0xff] }
 0x3fe   : > { %v1303_v27 = vmul.f32 %v7321_v36, %v7827_v6  ;;  %v5416_v6 = vld [vmem:[%s5523_s14 + $0x328] sm:$0xff] }
 0x3ff   : > { %4264 = vst.msk [vmem:[%s6449_s24 + $0x2d8] sm:$0xff] %vm1316_vm0, %v4136_v31  ;;  %v2072_v16 = vpop.f32.mrf.mxu3 }
 0x400   : > { %v3041_v35 = vpop.f32.mrf.mxu2  ;;  %v2064_v40 = vadd.f32 %v2063_v13, %v1303_v27 }
 0x401   : > { %v3042_v58 = vadd.f32 %v7165_v8, %v3041_v35 }
 0x402   : > { %v2218_v62 = vadd.f32 %v7328_v21, %v2064_v40 }
 0x403   : > { %v4009_v55 = vmul.f32 %v3740_v57, %v3042_v58  ;;  %v3765_v58 = vpop.permute.xlu0 %3764  ;;  %v5150_v57 = vpop.eup %5149 }
 0x404   : > { %5151 = vtanh.f32 %v2218_v62 }
 0x405   : > { %v4137_v11 = vadd.f32 %v5407_v51, %v4009_v55  ;;  %4617 = vmatmul.msk.f32.gmra.mxu2 %vm2363_vm1, %v5140_v34  ;;  %v7828_v55 = vld [vmem:[#allocation74_spill] sm:$0xff] }
 0x406   : > { %v1304_v34 = vmul.f32 %v7321_v36, %v7828_v55  ;;  %v5417_v55 = vld [vmem:[%s5523_s14 + $0x330] sm:$0xff] }
 0x407   : > { %4265 = vst.msk [vmem:[%s6449_s24 + $0x2e0] sm:$0xff] %vm1316_vm0, %v4137_v11  ;;  %v2075_v56 = vpop.f32.mrf.mxu3 }
 0x408   : > { %v3044_v42 = vpop.f32.mrf.mxu2  ;;  %v2067_v51 = vadd.f32 %v2066_v29, %v1304_v34 }
 0x409   : > { %v3045_v38 = vadd.f32 %v7165_v8, %v3044_v42 }
 0x40a   : > { %v2219_v42 = vadd.f32 %v7328_v21, %v2067_v51  ;;  %v5152_v13 = vpop.eup %5151 }
 0x40b   : > { %v4010_v45 = vmul.f32 %v3745_v15, %v3045_v38  ;;  %v3770_v38 = vpop.permute.xlu1 %3769 }
 0x40c   : > { %5153 = vtanh.f32 %v2219_v42 }
 0x40d   : > { %v4138_v59 = vadd.f32 %v5408_v54, %v4010_v45  ;;  %4618 = vmatmul.msk.f32.gmra.mxu2 %vm2363_vm1, %v5142_v18  ;;  %v7829_v45 = vld [vmem:[#allocation91_spill] sm:$0xff] }
 0x40e   : > { %v1305_v18 = vmul.f32 %v7321_v36, %v7829_v45  ;;  %v5418_v45 = vld [vmem:[%s5523_s14 + $0x338] sm:$0xff] }
 0x40f   : > { %4266 = vst.msk [vmem:[%s6449_s24 + $0x2e8] sm:$0xff] %vm1316_vm0, %v4138_v59  ;;  %v2078_v63 = vpop.f32.mrf.mxu3 }
 0x410   : > { %v3047_v1 = vpop.f32.mrf.mxu2  ;;  %v2070_v54 = vadd.f32 %v2069_v23, %v1305_v18 }
 0x411   : > { %v3048_v12 = vadd.f32 %v7165_v8, %v3047_v1 }
 0x412   : > { %v2220_v1 = vadd.f32 %v7328_v21, %v2070_v54 }
 0x413   : > { %v4011_v61 = vmul.f32 %v3750_v33, %v3048_v12  ;;  %v3775_v12 = vpop.permute.xlu2 %3774  ;;  %v5154_v33 = vpop.eup %5153 }
 0x414   : > { %5155 = vtanh.f32 %v2220_v1 }
 0x415   : > { %v4139_v49 = vadd.f32 %v5409_v10, %v4011_v61  ;;  %4619 = vmatmul.msk.f32.gmra.mxu2 %vm2363_vm1, %v5144_v17  ;;  %v7830_v61 = vld [vmem:[#allocation89_spill] sm:$0xff] }
 0x416   : > { %v1306_v17 = vmul.f32 %v7321_v36, %v7830_v61 }
 0x417   : > { %4267 = vst.msk [vmem:[%s6449_s24 + $0x2f0] sm:$0xff] %vm1316_vm0, %v4139_v49 }
 0x418   : > { %v3050_v3 = vpop.f32.mrf.mxu2  ;;  %v2073_v10 = vadd.f32 %v2072_v16, %v1306_v17  ;;  %v5419_v17 = vld [vmem:[%s5523_s14 + $0x340] sm:$0xff] }
 0x419   : > { %v3051_v48 = vadd.f32 %v7165_v8, %v3050_v3 }
 0x41a   : > { %v2221_v3 = vadd.f32 %v7328_v21, %v2073_v10 }
 0x41b   : > { %v4012_v52 = vmul.f32 %v3755_v50, %v3051_v48  ;;  %v3780_v48 = vpop.permute.xlu0 %3779  ;;  %v5156_v50 = vpop.eup %5155 }
 0x41c   : > { %5157 = vtanh.f32 %v2221_v3 }
 0x41d   : > { %v4140_v0 = vadd.f32 %v5410_v26, %v4012_v52  ;;  %4620 = vmatmul.msk.f32.gmra.mxu2 %vm2363_vm1, %v5146_v5  ;;  %v7831_v52 = vld [vmem:[#allocation78_spill] sm:$0xff] }
 0x41e   : > { %v1307_v5 = vmul.f32 %v7321_v36, %v7831_v52  ;;  %v5420_v52 = vld [vmem:[%s5523_s14 + $0x348] sm:$0xff] }
 0x41f   : > { %4268 = vst.msk [vmem:[%s6449_s24 + $0x2f8] sm:$0xff] %vm1316_vm0, %v4140_v0  ;;  %v2081_v0 = vpop.f32.mrf.mxu3 }
 0x420   : > { %v3053_v28 = vpop.f32.mrf.mxu2  ;;  %v2076_v26 = vadd.f32 %v2075_v56, %v1307_v5 }
 0x421   : > { %v3054_v41 = vadd.f32 %v7165_v8, %v3053_v28 }
 0x422   : > { %v2222_v28 = vadd.f32 %v7328_v21, %v2076_v26 }
 0x423   : > { %v4013_v25 = vmul.f32 %v3760_v46, %v3054_v41  ;;  %v3785_v41 = vpop.permute.xlu1 %3784  ;;  %v5158_v46 = vpop.eup %5157 }
 0x424   : > { %5159 = vtanh.f32 %v2222_v28 }
 0x425   : > { %v4141_v39 = vadd.f32 %v5411_v2, %v4013_v25  ;;  %4621 = vmatmul.msk.f32.gmra.mxu2 %vm2363_vm1, %v5148_v24  ;;  %v7832_v25 = vld [vmem:[#allocation93_spill] sm:$0xff] }
 0x426   : > { %v1308_v24 = vmul.f32 %v7321_v36, %v7832_v25  ;;  %v5421_v25 = vld [vmem:[%s5523_s14 + $0x350] sm:$0xff] }
 0x427   : > { %4269 = vst.msk [vmem:[%s6449_s24 + $0x300] sm:$0xff] %vm1316_vm0, %v4141_v39  ;;  %v2084_v40 = vpop.f32.mrf.mxu3 }
 0x428   : > { %v3056_v31 = vpop.f32.mrf.mxu2  ;;  %v2079_v2 = vadd.f32 %v2078_v63, %v1308_v24 }
 0x429   : > { %v3057_v35 = vadd.f32 %v7165_v8, %v3056_v31 }
 0x42a   : > { %v2223_v16 = vadd.f32 %v7328_v21, %v2079_v2 }
 0x42b   : > { %v4014_v32 = vmul.f32 %v3765_v58, %v3057_v35  ;;  %v3790_v35 = vpop.permute.xlu2 %3789  ;;  %v5160_v58 = vpop.eup %5159 }
 0x42c   : > { %5161 = vtanh.f32 %v2223_v16 }
 0x42d   : > { %v4142_v19 = vadd.f32 %v5412_v4, %v4014_v32  ;;  %4622 = vmatmul.msk.f32.gmra.mxu2 %vm2363_vm1, %v5150_v57  ;;  %v7833_v32 = vld [vmem:[#allocation92_spill] sm:$0xff] }
 0x42e   : > { %v1309_v57 = vmul.f32 %v7321_v36, %v7833_v32  ;;  %v5422_v32 = vld [vmem:[%s5523_s14 + $0x358] sm:$0xff] }
 0x42f   : > { %4270 = vst.msk [vmem:[%s6449_s24 + $0x308] sm:$0xff] %vm1316_vm0, %v4142_v19  ;;  %v2087_v42 = vpop.f32.mrf.mxu3 }
 0x430   : > { %v3059_v11 = vpop.f32.mrf.mxu2  ;;  %v2082_v4 = vadd.f32 %v2081_v0, %v1309_v57 }
 0x431   : > { %v3060_v30 = vadd.f32 %v7165_v8, %v3059_v11 }
 0x432   : > { %v2224_v11 = vadd.f32 %v7328_v21, %v2082_v4  ;;  %v5162_v56 = vpop.eup %5161 }
 0x433   : > { %v4015_v15 = vmul.f32 %v3770_v38, %v3060_v30  ;;  %v3795_v30 = vpop.permute.xlu0 %3794 }
 0x434   : > { %5163 = vtanh.f32 %v2224_v11 }
 0x435   : > { %v4143_v43 = vadd.f32 %v5413_v20, %v4015_v15  ;;  %4623 = vmatmul.msk.f32.gmra.mxu2 %vm2363_vm1, %v5152_v13  ;;  %v7834_v15 = vld [vmem:[#allocation82_spill] sm:$0xff] }
 0x436   : > { %v1310_v13 = vmul.f32 %v7321_v36, %v7834_v15  ;;  %v5424_v15 = vld [vmem:[%s5523_s14 + $0x360] sm:$0xff] }
 0x437   : > { %4271 = vst.msk [vmem:[%s6449_s24 + $0x310] sm:$0xff] %vm1316_vm0, %v4143_v43  ;;  %v2090_v61 = vpop.f32.mrf.mxu3 }
 0x438   : > { %v3062_v59 = vpop.f32.mrf.mxu2  ;;  %v2085_v20 = vadd.f32 %v2084_v40, %v1310_v13 }
 0x439   : > { %v3063_v7 = vadd.f32 %v7165_v8, %v3062_v59 }
 0x43a   : > { %v2225_v59 = vadd.f32 %v7328_v21, %v2085_v20 }
 0x43b   : > { %v4016_v44 = vmul.f32 %v3775_v12, %v3063_v7  ;;  %v3800_v7 = vpop.permute.xlu1 %3799  ;;  %v5164_v12 = vpop.eup %5163 }
 0x43c   : > { %5165 = vtanh.f32 %v2225_v59 }
 0x43d   : > { %v4144_v29 = vadd.f32 %v5414_v47, %v4016_v44  ;;  %4624 = vmatmul.msk.f32.gmra.mxu2 %vm2363_vm1, %v5154_v33  ;;  %v7835_v44 = vld [vmem:[#allocation95_spill] sm:$0xff] }
 0x43e   : > { %v1311_v33 = vmul.f32 %v7321_v36, %v7835_v44 }
 0x43f   : > { %4272 = vst.msk [vmem:[%s6449_s24 + $0x318] sm:$0xff] %vm1316_vm0, %v4144_v29 }
 0x440   : > { %v3065_v49 = vpop.f32.mrf.mxu2  ;;  %v2088_v47 = vadd.f32 %v2087_v42, %v1311_v33 }
 0x441   : > { %v3066_v9 = vadd.f32 %v7165_v8, %v3065_v49 }
 0x442   : > { %v2226_v49 = vadd.f32 %v7328_v21, %v2088_v47 }
 0x443   : > { %v4017_v53 = vmul.f32 %v3780_v48, %v3066_v9  ;;  %v3805_v9 = vpop.permute.xlu2 %3804  ;;  %v5166_v48 = vpop.eup %5165 }
 0x444   : > { %5167 = vtanh.f32 %v2226_v49 }
 0x445   : > { %v4145_v22 = vadd.f32 %v5415_v60, %v4017_v53  ;;  %4625 = vmatmul.msk.f32.gmra.mxu2 %vm2363_vm1, %v5156_v50  ;;  %v7836_v53 = vld [vmem:[#allocation94_spill] sm:$0xff] }
 0x446   : > { %v1312_v50 = vmul.f32 %v7321_v36, %v7836_v53 }
 0x447   : > { %4273 = vst.msk [vmem:[%s6449_s24 + $0x320] sm:$0xff] %vm1316_vm0, %v4145_v22  ;;  %v2093_v22 = vpop.f32.mrf.mxu3 }
 0x448   : > { %v3068_v37 = vpop.f32.mrf.mxu2  ;;  %v2091_v60 = vadd.f32 %v2090_v61, %v1312_v50 }
 0x449   : > { %v3069_v23 = vadd.f32 %v7165_v8, %v3068_v37 }
 0x44a   : > { %v2227_v37 = vadd.f32 %v7328_v21, %v2091_v60 }
 0x44b   : > { %v4018_v14 = vmul.f32 %v3785_v41, %v3069_v23  ;;  %v3810_v23 = vpop.permute.xlu0 %3809  ;;  %v5168_v41 = vpop.eup %5167 }
 0x44c   : > { %5169 = vtanh.f32 %v2227_v37 }
 0x44d   : > { %v4146_v27 = vadd.f32 %v5416_v6, %v4018_v14  ;;  %4626 = vmatmul.msk.f32.gmra.mxu2 %vm2363_vm1, %v5158_v46  ;;  %v7837_v14 = vld [vmem:[#allocation86_spill] sm:$0xff] }
 0x44e   : > { %v1313_v46 = vmul.f32 %v7321_v36, %v7837_v14 }
 0x44f   : > { %4274 = vst.msk [vmem:[%s6449_s24 + $0x328] sm:$0xff] %vm1316_vm0, %v4146_v27  ;;  %v2096_v2 = vpop.f32.mrf.mxu3 }
 0x450   : > { %v3071_v39 = vpop.f32.mrf.mxu2  ;;  %v2094_v6 = vadd.f32 %v2093_v22, %v1313_v46 }
 0x451   : > { %v3072_v31 = vadd.f32 %v7165_v8, %v3071_v39 }
 0x452   : > { %v2228_v40 = vadd.f32 %v7328_v21, %v2094_v6 }
 0x453   : > { %v4019_v62 = vmul.f32 %v3790_v35, %v3072_v31  ;;  %v3815_v31 = vpop.permute.xlu1 %3814  ;;  %v5170_v35 = vpop.eup %5169 }
 0x454   : > { %5171 = vtanh.f32 %v2228_v40 }
 0x455   : > { %v4147_v34 = vadd.f32 %v5417_v55, %v4019_v62  ;;  %4627 = vmatmul.msk.f32.gmra.mxu2 %vm2363_vm1, %v5160_v58  ;;  %v7838_v62 = vld [vmem:[#allocation97_spill] sm:$0xff] }
 0x456   : > { %v1314_v58 = vmul.f32 %v7321_v36, %v7838_v62 }
 0x457   : > { %4275 = vst.msk [vmem:[%s6449_s24 + $0x330] sm:$0xff] %vm1316_vm0, %v4147_v34  ;;  %v2099_v11 = vpop.f32.mrf.mxu3 }
 0x458   : > { %v3074_v19 = vpop.f32.mrf.mxu2  ;;  %v2097_v55 = vadd.f32 %v2096_v2, %v1314_v58 }
 0x459   : > { %v3075_v51 = vadd.f32 %v7165_v8, %v3074_v19 }
 0x45a   : > { %v2229_v19 = vadd.f32 %v7328_v21, %v2097_v55  ;;  %v5172_v42 = vpop.eup %5171 }
 0x45b   : > { %v4020_v38 = vmul.f32 %v3795_v30, %v3075_v51  ;;  %v3820_v51 = vpop.permute.xlu2 %3819  ;;  %v3830_v33 = vpop.permute.xlu1 %3829 }
 0x45c   : > { %5173 = vtanh.f32 %v2229_v19 }
 0x45d   : > { %v4148_v18 = vadd.f32 %v5418_v45, %v4020_v38  ;;  %4628 = vmatmul.msk.f32.gmra.mxu2 %vm2363_vm1, %v5162_v56  ;;  %v7839_v38 = vld [vmem:[#allocation96_spill] sm:$0xff] }
 0x45e   : > { %v1315_v56 = vmul.f32 %v7321_v36, %v7839_v38  ;;  %v5425_v36 = vld [vmem:[%s5523_s14 + $0x368] sm:$0xff] }
 0x45f   : > { %4276 = vst.msk [vmem:[%s6449_s24 + $0x338] sm:$0xff] %vm1316_vm0, %v4148_v18 }
 0x460   : > { %v3077_v43 = vpop.f32.mrf.mxu2  ;;  %v2100_v45 = vadd.f32 %v2099_v11, %v1315_v56  ;;  %v5433_v11 = vld [vmem:[%s5523_s14 + $0x3a8] sm:$0xff] }
 0x461   : > { %v3078_v54 = vadd.f32 %v7165_v8, %v3077_v43 }
 0x462   : > { %v2230_v43 = vadd.f32 %v7328_v21, %v2100_v45  ;;  %v5426_v21 = vld [vmem:[%s5523_s14 + $0x370] sm:$0xff] }
 0x463   : > { %v4021_v1 = vmul.f32 %v3800_v7, %v3078_v54  ;;  %v3825_v54 = vpop.permute.xlu0 %3824  ;;  %v5174_v7 = vpop.eup %5173 }
 0x464   : > { %5175 = vtanh.f32 %v2230_v43 }
 0x465   : > { %v4149_v63 = vadd.f32 %v5419_v17, %v4021_v1  ;;  %4629 = vmatmul.msk.f32.gmra.mxu2 %vm2363_vm1, %v5164_v12 }
 0x467   : > { %4277 = vst.msk [vmem:[%s6449_s24 + $0x340] sm:$0xff] %vm1316_vm0, %v4149_v63 }
 0x468   : > { %v3080_v29 = vpop.f32.mrf.mxu2 }
 0x469   : > { %v3081_v10 = vadd.f32 %v7165_v8, %v3080_v29 }
 0x46a   : > { %v5176_v17 = vpop.eup %5175 }
 0x46b   : > { %v4022_v3 = vmul.f32 %v3805_v9, %v3081_v10  ;;  %v3835_v10 = vpop.permute.xlu2 %3834  ;;  %v5427_v9 = vld [vmem:[%s5523_s14 + $0x378] sm:$0xff]  ;;  %v3840_v50 = vpop.permute.xlu0 %3839 }
 0x46d   : > { %v4150_v5 = vadd.f32 %v5420_v52, %v4022_v3  ;;  %4630 = vmatmul.msk.f32.gmra.mxu2 %vm2363_vm1, %v5166_v48 }
 0x46f   : > { %4278 = vst.msk [vmem:[%s6449_s24 + $0x348] sm:$0xff] %vm1316_vm0, %v4150_v5  ;;  %v5428_v5 = vld [vmem:[%s5523_s14 + $0x380] sm:$0xff] }
 0x470   : > { %v3083_v26 = vpop.f32.mrf.mxu2 }
 0x471   : > { %v3084_v0 = vadd.f32 %v7165_v8, %v3083_v26 }
 0x473   : > { %v4023_v28 = vmul.f32 %v3810_v23, %v3084_v0  ;;  %v3845_v0 = vpop.permute.xlu1 %3844  ;;  %v5429_v23 = vld [vmem:[%s5523_s14 + $0x388] sm:$0xff]  ;;  %v3850_v46 = vpop.permute.xlu2 %3849 }
 0x475   : > { %v4151_v24 = vadd.f32 %v5421_v25, %v4023_v28  ;;  %4631 = vmatmul.msk.f32.gmra.mxu2 %vm2363_vm1, %v5168_v41 }
 0x477   : > { %4279 = vst.msk [vmem:[%s6449_s24 + $0x350] sm:$0xff] %vm1316_vm0, %v4151_v24  ;;  %v5430_v24 = vld [vmem:[%s5523_s14 + $0x390] sm:$0xff] }
 0x478   : > { %v3086_v27 = vpop.f32.mrf.mxu2 }
 0x479   : > { %v3087_v39 = vadd.f32 %v7165_v8, %v3086_v27  ;;  %v7547_v8 = vld [vmem:[%s7644_s5] ss:$0 sm:$0xff] }
 0x47b   : > { %v4024_v16 = vmul.f32 %v3815_v31, %v3087_v39  ;;  %v3855_v39 = vpop.permute.xlu0 %3854  ;;  %v5431_v31 = vld [vmem:[%s5523_s14 + $0x398] sm:$0xff]  ;;  %v3860_v58 = vpop.permute.xlu1 %3859 }
 0x47c   : > { %v3865_v19 = vpop.permute.xlu2 %3864 }
 0x47d   : > { %v4152_v57 = vadd.f32 %v5422_v32, %v4024_v16  ;;  %4632 = vmatmul.msk.f32.gmra.mxu2 %vm2363_vm1, %v5170_v35 }
 0x47f   : > { %4280 = vst.msk [vmem:[%s6449_s24 + $0x358] sm:$0xff] %vm1316_vm0, %v4152_v57  ;;  %v5432_v57 = vld [vmem:[%s5523_s14 + $0x3a0] sm:$0xff] }
 0x480   : > { %v3089_v34 = vpop.f32.mrf.mxu2 }
 0x481   : > { %v3090_v4 = vadd.f32 %v7547_v8, %v3089_v34 }
 0x483   : > { %v4025_v30 = vmul.f32 %v3820_v51, %v3090_v4  ;;  %v3870_v56 = vpop.permute.xlu0 %3869  ;;  %v3875_v43 = vpop.permute.xlu1 %3874 }
 0x485   : > { %v4153_v13 = vadd.f32 %v5424_v15, %v4025_v30  ;;  %4633 = vmatmul.msk.f32.gmra.mxu2 %vm2363_vm1, %v5172_v42 }
 0x487   : > { %4281 = vst.msk [vmem:[%s6449_s24 + $0x360] sm:$0xff] %vm1316_vm0, %v4153_v13  ;;  %v5434_v13 = vld [vmem:[%s5523_s14 + $0x3b0] sm:$0xff] }
 0x488   : > { %v3092_v18 = vpop.f32.mrf.mxu2 }
 0x489   : > { %v3093_v20 = vadd.f32 %v7547_v8, %v3092_v18 }
 0x48b   : > { %v4026_v59 = vmul.f32 %v3825_v54, %v3093_v20 }
 0x48d   : > { %v4154_v1 = vadd.f32 %v5425_v36, %v4026_v59  ;;  %4634 = vmatmul.msk.f32.gmra.mxu2 %vm2363_vm1, %v5174_v7  ;;  %v5435_v59 = vld [vmem:[%s5523_s14 + $0x3b8] sm:$0xff] }
 0x48f   : > { %4282 = vst.msk [vmem:[%s6449_s24 + $0x368] sm:$0xff] %vm1316_vm0, %v4154_v1 }
 0x490   : > { %v3095_v12 = vpop.f32.mrf.mxu2 }
 0x491   : > { %v3096_v44 = vadd.f32 %v7547_v8, %v3095_v12  ;;  %v3880_v12 = vpop.permute.xlu2 %3879 }
 0x493   : > { %v4027_v61 = vmul.f32 %v3830_v33, %v3096_v44  ;;  %v5436_v33 = vld [vmem:[%s5523_s14 + $0x3c0] sm:$0xff] }
 0x495   : > { %v4155_v63 = vadd.f32 %v5426_v21, %v4027_v61  ;;  %4635 = vmatmul.msk.f32.gmra.mxu2 %vm2363_vm1, %v5176_v17 }
 0x497   : > { %4283 = vst.msk [vmem:[%s6449_s24 + $0x370] sm:$0xff] %vm1316_vm0, %v4155_v63  ;;  %v3885_v63 = vpop.permute.xlu0 %3884 }
 0x498   : > { %v3098_v47 = vpop.f32.mrf.mxu2 }
 0x499   : > { %v3099_v29 = vadd.f32 %v7547_v8, %v3098_v47 }
 0x49b   : > { %v4028_v49 = vmul.f32 %v3835_v10, %v3099_v29  ;;  %v5437_v29 = vld [vmem:[%s5523_s14 + $0x3c8] sm:$0xff] }
 0x49d   : > { %v4156_v3 = vadd.f32 %v5427_v9, %v4028_v49 }
 0x49f   : > { %4284 = vst.msk [vmem:[%s6449_s24 + $0x378] sm:$0xff] %vm1316_vm0, %v4156_v3  ;;  %v3890_v3 = vpop.permute.xlu1 %3889 }
 0x4a0   : > { %v3101_v48 = vpop.f32.mrf.mxu2 }
 0x4a1   : > { %v3102_v53 = vadd.f32 %v7547_v8, %v3101_v48 }
 0x4a3   : > { %v4029_v52 = vmul.f32 %v3840_v50, %v3102_v53  ;;  %v5438_v53 = vld [vmem:[%s5523_s14 + $0x3d0] sm:$0xff] }
 0x4a5   : > { %v4157_v60 = vadd.f32 %v5428_v5, %v4029_v52 }
 0x4a7   : > { %4285 = vst.msk [vmem:[%s6449_s24 + $0x380] sm:$0xff] %vm1316_vm0, %v4157_v60  ;;  %v3895_v60 = vpop.permute.xlu2 %3894 }
 0x4a8   : > { %v3104_v22 = vpop.f32.mrf.mxu2 }
 0x4a9   : > { %v3105_v26 = vadd.f32 %v7547_v8, %v3104_v22 }
 0x4ab   : > { %v4030_v37 = vmul.f32 %v3845_v0, %v3105_v26  ;;  %v5439_v26 = vld [vmem:[%s5523_s14 + $0x3d8] sm:$0xff] }
 0x4ad   : > { %v4158_v28 = vadd.f32 %v5429_v23, %v4030_v37 }
 0x4af   : > { %4286 = vst.msk [vmem:[%s6449_s24 + $0x388] sm:$0xff] %vm1316_vm0, %v4158_v28  ;;  %v3900_v28 = vpop.permute.xlu0 %3899 }
 0x4b0   : > { %v3107_v41 = vpop.f32.mrf.mxu2 }
 0x4b1   : > { %v3108_v14 = vadd.f32 %v7547_v8, %v3107_v41 }
 0x4b3   : > { %v4031_v25 = vmul.f32 %v3850_v46, %v3108_v14  ;;  %v5440_v14 = vld [vmem:[%s5523_s14 + $0x3e0] sm:$0xff] }
 0x4b5   : > { %v4159_v6 = vadd.f32 %v5430_v24, %v4031_v25 }
 0x4b7   : > { %4287 = vst.msk [vmem:[%s6449_s24 + $0x390] sm:$0xff] %vm1316_vm0, %v4159_v6  ;;  %v3905_v6 = vpop.permute.xlu1 %3904 }
 0x4b8   : > { %v3110_v27 = vpop.f32.mrf.mxu2 }
 0x4b9   : > { %v3111_v2 = vadd.f32 %v7547_v8, %v3110_v27 }
 0x4bb   : > { %v4032_v40 = vmul.f32 %v3855_v39, %v3111_v2  ;;  %v5441_v2 = vld [vmem:[%s5523_s14 + $0x3e8] sm:$0xff] }
 0x4bd   : > { %v4160_v16 = vadd.f32 %v5431_v31, %v4032_v40 }
 0x4bf   : > { %4288 = vst.msk [vmem:[%s6449_s24 + $0x398] sm:$0xff] %vm1316_vm0, %v4160_v16  ;;  %v3910_v16 = vpop.permute.xlu2 %3909 }
 0x4c0   : > { %v3113_v35 = vpop.f32.mrf.mxu2 }
 0x4c1   : > { %v3114_v62 = vadd.f32 %v7547_v8, %v3113_v35 }
 0x4c3   : > { %v4033_v32 = vmul.f32 %v3860_v58, %v3114_v62  ;;  %v5442_v62 = vld [vmem:[%s5523_s14 + $0x3f0] sm:$0xff] }
 0x4c5   : > { %v4161_v55 = vadd.f32 %v5432_v57, %v4033_v32 }
 0x4c7   : > { %4289 = vst.msk [vmem:[%s6449_s24 + $0x3a0] sm:$0xff] %vm1316_vm0, %v4161_v55  ;;  %v3915_v55 = vpop.permute.xlu0 %3914 }
 0x4c8   : > { %v3116_v34 = vpop.f32.mrf.mxu2 }
 0x4c9   : > { %v3117_v4 = vadd.f32 %v7547_v8, %v3116_v34 }
 0x4cb   : > { %v4034_v51 = vmul.f32 %v3865_v19, %v3117_v4  ;;  %v5443_v4 = vld [vmem:[%s5523_s14 + $0x3f8] sm:$0xff] }
 0x4cd   : > { %v4162_v30 = vadd.f32 %v5433_v11, %v4034_v51 }
 0x4cf   : > { %4290 = vst.msk [vmem:[%s6449_s24 + $0x3a8] sm:$0xff] %vm1316_vm0, %v4162_v30 }
 0x4d0   : > { %v3119_v42 = vpop.f32.mrf.mxu2 }
 0x4d1   : > { %v3120_v38 = vadd.f32 %v7547_v8, %v3119_v42 }
 0x4d3   : > { %v4035_v15 = vmul.f32 %v3870_v56, %v3120_v38 }
 0x4d5   : > { %v4163_v45 = vadd.f32 %v5434_v13, %v4035_v15 }
 0x4d7   : > { %4291 = vst.msk [vmem:[%s6449_s24 + $0x3b0] sm:$0xff] %vm1316_vm0, %v4163_v45 }
 0x4d8   : > { %v3122_v18 = vpop.f32.mrf.mxu2 }
 0x4d9   : > { %v3123_v20 = vadd.f32 %v7547_v8, %v3122_v18 }
 0x4db   : > { %v4036_v54 = vmul.f32 %v3875_v43, %v3123_v20 }
 0x4dd   : > { %v4164_v7 = vadd.f32 %v5435_v59, %v4036_v54 }
 0x4df   : > { %4292 = vst.msk [vmem:[%s6449_s24 + $0x3b8] sm:$0xff] %vm1316_vm0, %v4164_v7 }
 0x4e0   : > { %v3125_v36 = vpop.f32.mrf.mxu2 }
 0x4e1   : > { %v3126_v1 = vadd.f32 %v7547_v8, %v3125_v36 }
 0x4e3   : > { %v4037_v44 = vmul.f32 %v3880_v12, %v3126_v1 }
 0x4e5   : > { %v4165_v61 = vadd.f32 %v5436_v33, %v4037_v44 }
 0x4e7   : > { %4293 = vst.msk [vmem:[%s6449_s24 + $0x3c0] sm:$0xff] %vm1316_vm0, %v4165_v61 }
 0x4e8   : > { %v3128_v17 = vpop.f32.mrf.mxu2 }
 0x4e9   : > { %v3129_v21 = vadd.f32 %v7547_v8, %v3128_v17 }
 0x4eb   : > { %v4038_v47 = vmul.f32 %v3885_v63, %v3129_v21 }
 0x4ed   : > { %v4166_v10 = vadd.f32 %v5437_v29, %v4038_v47 }
 0x4ef   : > { %4294 = vst.msk [vmem:[%s6449_s24 + $0x3c8] sm:$0xff] %vm1316_vm0, %v4166_v10 }
 0x4f0   : > { %v3131_v49 = vpop.f32.mrf.mxu2 }
 0x4f1   : > { %v3132_v9 = vadd.f32 %v7547_v8, %v3131_v49 }
 0x4f3   : > { %v4039_v48 = vmul.f32 %v3890_v3, %v3132_v9 }
 0x4f5   : > { %v4167_v50 = vadd.f32 %v5438_v53, %v4039_v48 }
 0x4f7   : > { %4295 = vst.msk [vmem:[%s6449_s24 + $0x3d0] sm:$0xff] %vm1316_vm0, %v4167_v50 }
 0x4f8   : > { %v3134_v52 = vpop.f32.mrf.mxu2 }
 0x4f9   : > { %v3135_v5 = vadd.f32 %v7547_v8, %v3134_v52 }
 0x4fb   : > { %v4040_v22 = vmul.f32 %v3895_v60, %v3135_v5 }
 0x4fd   : > { %v4168_v0 = vadd.f32 %v5439_v26, %v4040_v22 }
 0x4ff   : > { %4296 = vst.msk [vmem:[%s6449_s24 + $0x3d8] sm:$0xff] %vm1316_vm0, %v4168_v0 }
 0x500   : > { %v3137_v37 = vpop.f32.mrf.mxu2 }
 0x501   : > { %v3138_v23 = vadd.f32 %v7547_v8, %v3137_v37 }
 0x503   : > { %v4041_v41 = vmul.f32 %v3900_v28, %v3138_v23 }
 0x505   : > { %v4169_v46 = vadd.f32 %v5440_v14, %v4041_v41 }
 0x507   : > { %4297 = vst.msk [vmem:[%s6449_s24 + $0x3e0] sm:$0xff] %vm1316_vm0, %v4169_v46 }
 0x508   : > { %v3140_v25 = vpop.f32.mrf.mxu2 }
 0x509   : > { %v3141_v24 = vadd.f32 %v7547_v8, %v3140_v25 }
 0x50b   : > { %v4042_v27 = vmul.f32 %v3905_v6, %v3141_v24 }
 0x50d   : > { %v4170_v39 = vadd.f32 %v5441_v2, %v4042_v27 }
 0x50f   : > { %4298 = vst.msk [vmem:[%s6449_s24 + $0x3e8] sm:$0xff] %vm1316_vm0, %v4170_v39 }
 0x510   : > { %v3143_v40 = vpop.f32.mrf.mxu2 }
 0x511   : > { %v3144_v31 = vadd.f32 %v7547_v8, %v3143_v40 }
 0x513   : > { %v4043_v35 = vmul.f32 %v3910_v16, %v3144_v31 }
 0x515   : > { %v4171_v58 = vadd.f32 %v5442_v62, %v4043_v35 }
 0x517   : > { %4299 = vst.msk [vmem:[%s6449_s24 + $0x3f0] sm:$0xff] %vm1316_vm0, %v4171_v58 }
 0x518   : > { %v3146_v32 = vpop.f32.mrf.mxu2 }
 0x519   : > { %v3147_v57 = vadd.f32 %v7547_v8, %v3146_v32 }
 0x51b   : > { %v4044_v34 = vmul.f32 %v3915_v55, %v3147_v57 }
 0x51d   : > { %v4172_v19 = vadd.f32 %v5443_v4, %v4044_v34 }
 0x51f   : > { %4300 = vst.msk [vmem:[%s6449_s24 + $0x3f8] sm:$0xff] %vm1316_vm0, %v4172_v19 }
 0x520 PF: > { %s16_s21 = sadd.s32 1, %s5450_s21  }
 0x521   : > { %p13_p4 = scmp.ge.s32.totalorder %s16_s21, 4  }
 0x523   :  { %15 = sbr.rel (!%p13_p4) target bundleno = 1 (0x1), region = 77 }

</bundles_post_ra>
